<compile_context>
chip_gen: v7x
topology: tpu7x:2x2x1
jax: 0.10.0
libtpu: 0.0.40
codegen_flags: <defaults>
</compile_context>

<pallas_src>
import functools

import jax
import jax.numpy as jnp
from jax import lax
from jax.experimental import pallas as pl
from jax.experimental.pallas import tpu as pltpu


def conv_attention_kernel(x_ref, wq_ref, wkv_ref, wo_ref, b_ref, o_ref, *,
                          heads, dim_head, q_tile):
    # Per grid step (b, qi):
    #   x_ref:   (1, C, N)     bf16 channels-first input, full spatial (K/V source; query tile sliced)
    #   wq_ref:  (hid, C)      bf16 q weights, head-major rows, softmax scale pre-folded
    #   wkv_ref: (2*hid, C)    bf16 k rows then v rows, head-major within each block
    #   wo_ref:  (hid, C)      bf16 output-projection weights (rows head-major: h*dh + d)
    #   b_ref:   (C, 1)        f32 output-projection bias
    #   o_ref:   (1, C, TQ)    f32 channels-first output tile (lane-dense store)
    hid = heads * dim_head

    x = x_ref[0]                                                    # [C, N]  bf16
    q_start = pl.multiple_of(pl.program_id(1) * q_tile, q_tile)
    xq = x_ref[0, :, pl.ds(q_start, q_tile)]                        # [C, TQ] bf16

    # Fused 1x1-conv projections for ALL heads (contraction depth = C), once per step.
    kv_all = jnp.dot(wkv_ref[...], x,
                     preferred_element_type=jnp.float32)            # [2*hid, N] f32
    q_all = jnp.dot(wq_ref[...], xq,
                    preferred_element_type=jnp.float32)             # [hid, TQ] f32 (pre-scaled)
    k_all = kv_all[:hid].astype(jnp.bfloat16)                       # [hid, N]
    v_all = kv_all[hid:].astype(jnp.bfloat16)                       # [hid, N]
    q_all = q_all.astype(jnp.bfloat16)                              # [hid, TQ]

    outs = []
    for h in range(heads):                                          # static, fully unrolled
        rows = slice(h * dim_head, (h + 1) * dim_head)
        q_h = q_all[rows]                                           # [DH, TQ]
        k_h = k_all[rows]                                           # [DH, N]
        v_h = v_all[rows]                                           # [DH, N]

        # sim[i, j] = sum_d q[d, i] k[d, j]   (scale already folded into wq)
        sim = lax.dot_general(q_h, k_h, (((0,), (0,)), ((), ())),
                              preferred_element_type=jnp.float32)   # [TQ, N] f32
        sim = sim - jnp.max(sim, axis=-1, keepdims=True)
        p = jnp.exp(sim)
        p = p * pl.reciprocal(jnp.sum(p, axis=-1, keepdims=True), approx=True)

        # out[d, i] = sum_j v[d, j] attn[i, j]
        out_h = lax.dot_general(v_h, p.astype(jnp.bfloat16),
                                (((1,), (1,)), ((), ())),
                                preferred_element_type=jnp.float32)  # [DH, TQ]
        outs.append(out_h.astype(jnp.bfloat16))

    out_all = jnp.concatenate(outs, axis=0)                          # [hid, TQ] (head-major rows)

    # Single hid-deep output projection: o[c, i] = sum_r wo[r, c] out_all[r, i]
    o = lax.dot_general(wo_ref[...], out_all, (((0,), (0,)), ((), ())),
                        preferred_element_type=jnp.float32)          # [C, TQ] f32
    o_ref[0] = (o + b_ref[...]).astype(o_ref.dtype)                  # lane-dense store


def _pick_q_tile(n, q_tile):
    if n % q_tile == 0:
        return q_tile
    # largest multiple of 128 (<= q_tile) that divides N
    t = (min(q_tile, n) // 128) * 128
    while t >= 128:
        if n % t == 0:
            return t
        t -= 128
    # TODO(synk): pad N to a multiple of 128 for odd spatial sizes instead of a full-N tile.
    return n


def conv_attention(x_nchw, w_qkv, w_out, b_out, *, heads, dim_head, q_tile=128):
    B, C, H, W = x_nchw.shape
    N = H * W
    hid = heads * dim_head
    scale = float(dim_head) ** (-0.5)

    tq = _pick_q_tile(N, q_tile)
    n_q = N // tq

    # NCHW is already channels-first: flattening spatial is a pure reshape (no HBM transpose).
    # bf16 inputs halve the DMA traffic; all matmuls accumulate in f32.
    x_bcn = x_nchw.reshape(B, C, N).astype(jnp.bfloat16)

    # Weight layout plumbing done once in the wrapper (tiny tensors), not in the kernel.
    # w_qkv rows: [q-block | k-block | v-block], each head-major (channel = h*dh + d).
    wq = (w_qkv[:hid] * scale).astype(jnp.bfloat16)                  # [hid, C], scale folded
    wkv = w_qkv[hid:].astype(jnp.bfloat16)                           # [2*hid, C]
    wo = w_out.T.astype(jnp.bfloat16)                                # [hid, C], rows head-major
    b2d = b_out.reshape(C, 1).astype(jnp.float32)

    kernel = functools.partial(conv_attention_kernel, heads=heads,
                               dim_head=dim_head, q_tile=tq)

    flops = int(B * (8 * hid * C * N + 4 * hid * N * N))
    cost = pl.CostEstimate(
        flops=flops,
        transcendentals=int(B * heads * N * N),
        bytes_accessed=int(B * C * N * 2          # bf16 x in
                           + B * C * N * 4        # f32 out
                           + 4 * hid * C * 2      # bf16 weights
                           + C * 4),              # f32 bias
    )

    out_bcn = pl.pallas_call(
        kernel,
        out_shape=jax.ShapeDtypeStruct((B, C, N), jnp.float32),
        grid_spec=pltpu.PrefetchScalarGridSpec(
            num_scalar_prefetch=0,
            grid=(B, n_q),                                           # heads handled in-kernel
            in_specs=[
                pl.BlockSpec((1, C, N), lambda b, qi: (b, 0, 0)),    # x (K/V source + query slice)
                pl.BlockSpec((hid, C), lambda b, qi: (0, 0)),        # wq (scaled)
                pl.BlockSpec((2 * hid, C), lambda b, qi: (0, 0)),    # wkv
                pl.BlockSpec((hid, C), lambda b, qi: (0, 0)),        # wo
                pl.BlockSpec((C, 1), lambda b, qi: (0, 0)),          # bias
            ],
            out_specs=pl.BlockSpec((1, C, tq), lambda b, qi: (b, 0, qi)),
        ),
        compiler_params=pltpu.CompilerParams(
            dimension_semantics=("parallel", "parallel"),
            vmem_limit_bytes=64 * 1024 * 1024),
        cost_estimate=cost,
    )(x_bcn, wq, wkv, wo, b2d)

    return out_bcn.reshape(B, C, H, W).astype(x_nchw.dtype)


def conv_attention_ref(x_nchw, w_qkv, w_out, b_out, *, heads, dim_head):
    """Pure-JAX f32 reference mirroring the PyTorch forward."""
    B, C, H, W = x_nchw.shape
    N = H * W
    hid = heads * dim_head
    scale = float(dim_head) ** (-0.5)
    x = x_nchw.reshape(B, C, N)                                      # [B, C, N]
    qkv = jnp.einsum('oc,bcn->bon', w_qkv, x)                        # [B, 3*hid, N]
    q, k, v = jnp.split(qkv, 3, axis=1)
    def to_heads(t):
        return t.reshape(B, heads, dim_head, N)                      # b (h c) n -> b h c n
    q, k, v = map(to_heads, (q, k, v))
    sim = jnp.einsum('bhdi,bhdj->bhij', q, k) * scale
    attn = jax.nn.softmax(sim, axis=-1)
    out = jnp.einsum('bhij,bhdj->bhid', attn, v)                     # [B, h, N, dh]
    out = jnp.transpose(out, (0, 1, 3, 2)).reshape(B, hid, N)        # b (h d) n
    out = jnp.einsum('oc,bcn->bon', w_out, out) + b_out[None, :, None]
    return out.reshape(B, C, H, W)


if __name__ == "__main__":
    B, C, H, W = 2, 4, 16, 16
    heads, dim_head = 8, 32
    hid = heads * dim_head

    key = jax.random.PRNGKey(0)
    kx, kq, ko, kb = jax.random.split(key, 4)
    x = jax.random.normal(kx, (B, C, H, W), dtype=jnp.float32)
    # Deterministic synthetic parameters (1x1 conv weights squeezed to 2D).
    w_qkv = jax.random.normal(kq, (3 * hid, C), dtype=jnp.float32) * 0.1
    w_out = jax.random.normal(ko, (C, hid), dtype=jnp.float32) * 0.1
    b_out = jax.random.normal(kb, (C,), dtype=jnp.float32) * 0.1

    out = conv_attention(x, w_qkv, w_out, b_out, heads=heads, dim_head=dim_head)
    out = jax.block_until_ready(out)

    ref = conv_attention_ref(x, w_qkv, w_out, b_out, heads=heads, dim_head=dim_head)
    assert out.shape == (B, C, H, W)
    # bf16 MXU operands + approx reciprocal -> looser tolerance than pure-f32 reference.
    max_diff = float(jnp.max(jnp.abs(out - ref)))
    assert jnp.allclose(out, ref, atol=2.5e-2, rtol=2.5e-2), \
        f"mismatch vs reference (max abs diff {max_diff})"
    print("KERNEL_OK")
</pallas_src>

<mosaic_0001>
module attributes {stable_mosaic.version = 11 : i64} {
  func.func @conv_attention_kernel(%arg0: i32, %arg1: i32, %arg2: memref<1x4x256xbf16, #tpu.memory_space<vmem>>, %arg3: memref<256x4xbf16, #tpu.memory_space<vmem>>, %arg4: memref<512x4xbf16, #tpu.memory_space<vmem>>, %arg5: memref<256x4xbf16, #tpu.memory_space<vmem>>, %arg6: memref<4x1xf32, #tpu.memory_space<vmem>>, %arg7: memref<1x4x128xf32, #tpu.memory_space<vmem>>) attributes {dimension_semantics = [#tpu.dimension_semantics<parallel>, #tpu.dimension_semantics<parallel>], iteration_bounds = array<i64: 2, 2>, scalar_prefetch = 0 : i64, scratch_operands = 0 : i64, tpu.core_type = #tpu.core_type<tc>, window_params = [{transform_indices = @transform_0, window_bounds = array<i64: 1, 4, 256>}, {pipeline_mode = #tpu.pipeline_mode<synchronous>, transform_indices = @transform_1, window_bounds = array<i64: 256, 4>}, {pipeline_mode = #tpu.pipeline_mode<synchronous>, transform_indices = @transform_2, window_bounds = array<i64: 512, 4>}, {pipeline_mode = #tpu.pipeline_mode<synchronous>, transform_indices = @transform_3, window_bounds = array<i64: 256, 4>}, {pipeline_mode = #tpu.pipeline_mode<synchronous>, transform_indices = @transform_4, window_bounds = array<i64: 4, 1>}, {transform_indices = @transform_5, window_bounds = array<i64: 1, 4, 128>}]} {
    %c0 = arith.constant 0 : index
    %c0_0 = arith.constant 0 : index
    %c0_1 = arith.constant 0 : index
    %0 = vector.load %arg2[%c0, %c0_0, %c0_1] : memref<1x4x256xbf16, #tpu.memory_space<vmem>>, vector<1x4x256xbf16>
    %1 = vector.shape_cast %0 : vector<1x4x256xbf16> to vector<4x256xbf16>
    %c128_i32 = arith.constant 128 : i32
    %2 = arith.muli %arg1, %c128_i32 : i32
    %3 = tpu.assume_multiple %2, 128 : i32
    %c0_2 = arith.constant 0 : index
    %c0_3 = arith.constant 0 : index
    %4 = arith.index_cast %3 : i32 to index
    %5 = vector.load %arg2[%c0_2, %c0_3, %4] : memref<1x4x256xbf16, #tpu.memory_space<vmem>>, vector<1x4x128xbf16>
    %6 = vector.shape_cast %5 : vector<1x4x128xbf16> to vector<4x128xbf16>
    %c0_4 = arith.constant 0 : index
    %c0_5 = arith.constant 0 : index
    %7 = vector.load %arg4[%c0_4, %c0_5] : memref<512x4xbf16, #tpu.memory_space<vmem>>, vector<512x4xbf16>
    %cst = arith.constant dense<0.000000e+00> : vector<512x256xf32>
    %8 = tpu.matmul %7, %1, %cst {dimension_numbers = #tpu.dot_dimension_numbers<[1], [0], [0], [1], [0, 0, 1, 1], [], []>} : vector<512x4xbf16>, vector<4x256xbf16>, vector<512x256xf32> -> vector<512x256xf32>
    %c0_6 = arith.constant 0 : index
    %c0_7 = arith.constant 0 : index
    %9 = vector.load %arg3[%c0_6, %c0_7] : memref<256x4xbf16, #tpu.memory_space<vmem>>, vector<256x4xbf16>
    %cst_8 = arith.constant dense<0.000000e+00> : vector<256x128xf32>
    %10 = tpu.matmul %9, %6, %cst_8 {dimension_numbers = #tpu.dot_dimension_numbers<[1], [0], [0], [1], [0, 0, 1, 1], [], []>} : vector<256x4xbf16>, vector<4x128xbf16>, vector<256x128xf32> -> vector<256x128xf32>
    %11 = vector.extract_strided_slice %8 {offsets = [0, 0], sizes = [256, 256], strides = [1, 1]} : vector<512x256xf32> to vector<256x256xf32>
    %12 = arith.truncf %11 : vector<256x256xf32> to vector<256x256xbf16>
    %13 = vector.extract_strided_slice %8 {offsets = [256, 0], sizes = [256, 256], strides = [1, 1]} : vector<512x256xf32> to vector<256x256xf32>
    %14 = arith.truncf %13 : vector<256x256xf32> to vector<256x256xbf16>
    %15 = arith.truncf %10 : vector<256x128xf32> to vector<256x128xbf16>
    %16 = vector.extract_strided_slice %15 {offsets = [0, 0], sizes = [32, 128], strides = [1, 1]} : vector<256x128xbf16> to vector<32x128xbf16>
    %17 = vector.extract_strided_slice %12 {offsets = [0, 0], sizes = [32, 256], strides = [1, 1]} : vector<256x256xbf16> to vector<32x256xbf16>
    %18 = vector.extract_strided_slice %14 {offsets = [0, 0], sizes = [32, 256], strides = [1, 1]} : vector<256x256xbf16> to vector<32x256xbf16>
    %cst_9 = arith.constant dense<0.000000e+00> : vector<128x256xf32>
    %19 = tpu.matmul %16, %17, %cst_9 {dimension_numbers = #tpu.dot_dimension_numbers<[0], [0], [1], [1], [0, 1, 1, 1], [], []>} : vector<32x128xbf16>, vector<32x256xbf16>, vector<128x256xf32> -> vector<128x256xf32>
    %cst_10 = arith.constant dense<0xFF800000> : vector<128xf32>
    %20 = vector.multi_reduction <maximumf>, %19, %cst_10 [1] : vector<128x256xf32> to vector<128xf32>
    %21 = vector.shape_cast %20 : vector<128xf32> to vector<128x1xf32>
    %22 = vector.broadcast %21 : vector<128x1xf32> to vector<128x256xf32>
    %23 = arith.subf %19, %22 : vector<128x256xf32>
    %24 = math.exp %23 : vector<128x256xf32>
    %cst_11 = arith.constant dense<0.000000e+00> : vector<128xf32>
    %25 = vector.multi_reduction <add>, %24, %cst_11 [1] : vector<128x256xf32> to vector<128xf32>
    %26 = vector.shape_cast %25 : vector<128xf32> to vector<128x1xf32>
    %27 = tpu.reciprocal %26 {approx = true} : vector<128x1xf32> -> vector<128x1xf32>
    %28 = vector.broadcast %27 : vector<128x1xf32> to vector<128x256xf32>
    %29 = arith.mulf %24, %28 : vector<128x256xf32>
    %30 = arith.truncf %29 : vector<128x256xf32> to vector<128x256xbf16>
    %cst_12 = arith.constant dense<0.000000e+00> : vector<32x128xf32>
    %31 = tpu.matmul %18, %30, %cst_12 {dimension_numbers = #tpu.dot_dimension_numbers<[1], [1], [0], [0], [0, 0, 1, 0], [], []>} : vector<32x256xbf16>, vector<128x256xbf16>, vector<32x128xf32> -> vector<32x128xf32>
    %32 = arith.truncf %31 : vector<32x128xf32> to vector<32x128xbf16>
    %33 = vector.extract_strided_slice %15 {offsets = [32, 0], sizes = [32, 128], strides = [1, 1]} : vector<256x128xbf16> to vector<32x128xbf16>
    %34 = vector.extract_strided_slice %12 {offsets = [32, 0], sizes = [32, 256], strides = [1, 1]} : vector<256x256xbf16> to vector<32x256xbf16>
    %35 = vector.extract_strided_slice %14 {offsets = [32, 0], sizes = [32, 256], strides = [1, 1]} : vector<256x256xbf16> to vector<32x256xbf16>
    %cst_13 = arith.constant dense<0.000000e+00> : vector<128x256xf32>
    %36 = tpu.matmul %33, %34, %cst_13 {dimension_numbers = #tpu.dot_dimension_numbers<[0], [0], [1], [1], [0, 1, 1, 1], [], []>} : vector<32x128xbf16>, vector<32x256xbf16>, vector<128x256xf32> -> vector<128x256xf32>
    %cst_14 = arith.constant dense<0xFF800000> : vector<128xf32>
    %37 = vector.multi_reduction <maximumf>, %36, %cst_14 [1] : vector<128x256xf32> to vector<128xf32>
    %38 = vector.shape_cast %37 : vector<128xf32> to vector<128x1xf32>
    %39 = vector.broadcast %38 : vector<128x1xf32> to vector<128x256xf32>
    %40 = arith.subf %36, %39 : vector<128x256xf32>
    %41 = math.exp %40 : vector<128x256xf32>
    %cst_15 = arith.constant dense<0.000000e+00> : vector<128xf32>
    %42 = vector.multi_reduction <add>, %41, %cst_15 [1] : vector<128x256xf32> to vector<128xf32>
    %43 = vector.shape_cast %42 : vector<128xf32> to vector<128x1xf32>
    %44 = tpu.reciprocal %43 {approx = true} : vector<128x1xf32> -> vector<128x1xf32>
    %45 = vector.broadcast %44 : vector<128x1xf32> to vector<128x256xf32>
    %46 = arith.mulf %41, %45 : vector<128x256xf32>
    %47 = arith.truncf %46 : vector<128x256xf32> to vector<128x256xbf16>
    %cst_16 = arith.constant dense<0.000000e+00> : vector<32x128xf32>
    %48 = tpu.matmul %35, %47, %cst_16 {dimension_numbers = #tpu.dot_dimension_numbers<[1], [1], [0], [0], [0, 0, 1, 0], [], []>} : vector<32x256xbf16>, vector<128x256xbf16>, vector<32x128xf32> -> vector<32x128xf32>
    %49 = arith.truncf %48 : vector<32x128xf32> to vector<32x128xbf16>
    %50 = vector.extract_strided_slice %15 {offsets = [64, 0], sizes = [32, 128], strides = [1, 1]} : vector<256x128xbf16> to vector<32x128xbf16>
    %51 = vector.extract_strided_slice %12 {offsets = [64, 0], sizes = [32, 256], strides = [1, 1]} : vector<256x256xbf16> to vector<32x256xbf16>
    %52 = vector.extract_strided_slice %14 {offsets = [64, 0], sizes = [32, 256], strides = [1, 1]} : vector<256x256xbf16> to vector<32x256xbf16>
    %cst_17 = arith.constant dense<0.000000e+00> : vector<128x256xf32>
    %53 = tpu.matmul %50, %51, %cst_17 {dimension_numbers = #tpu.dot_dimension_numbers<[0], [0], [1], [1], [0, 1, 1, 1], [], []>} : vector<32x128xbf16>, vector<32x256xbf16>, vector<128x256xf32> -> vector<128x256xf32>
    %cst_18 = arith.constant dense<0xFF800000> : vector<128xf32>
    %54 = vector.multi_reduction <maximumf>, %53, %cst_18 [1] : vector<128x256xf32> to vector<128xf32>
    %55 = vector.shape_cast %54 : vector<128xf32> to vector<128x1xf32>
    %56 = vector.broadcast %55 : vector<128x1xf32> to vector<128x256xf32>
    %57 = arith.subf %53, %56 : vector<128x256xf32>
    %58 = math.exp %57 : vector<128x256xf32>
    %cst_19 = arith.constant dense<0.000000e+00> : vector<128xf32>
    %59 = vector.multi_reduction <add>, %58, %cst_19 [1] : vector<128x256xf32> to vector<128xf32>
    %60 = vector.shape_cast %59 : vector<128xf32> to vector<128x1xf32>
    %61 = tpu.reciprocal %60 {approx = true} : vector<128x1xf32> -> vector<128x1xf32>
    %62 = vector.broadcast %61 : vector<128x1xf32> to vector<128x256xf32>
    %63 = arith.mulf %58, %62 : vector<128x256xf32>
    %64 = arith.truncf %63 : vector<128x256xf32> to vector<128x256xbf16>
    %cst_20 = arith.constant dense<0.000000e+00> : vector<32x128xf32>
    %65 = tpu.matmul %52, %64, %cst_20 {dimension_numbers = #tpu.dot_dimension_numbers<[1], [1], [0], [0], [0, 0, 1, 0], [], []>} : vector<32x256xbf16>, vector<128x256xbf16>, vector<32x128xf32> -> vector<32x128xf32>
    %66 = arith.truncf %65 : vector<32x128xf32> to vector<32x128xbf16>
    %67 = vector.extract_strided_slice %15 {offsets = [96, 0], sizes = [32, 128], strides = [1, 1]} : vector<256x128xbf16> to vector<32x128xbf16>
    %68 = vector.extract_strided_slice %12 {offsets = [96, 0], sizes = [32, 256], strides = [1, 1]} : vector<256x256xbf16> to vector<32x256xbf16>
    %69 = vector.extract_strided_slice %14 {offsets = [96, 0], sizes = [32, 256], strides = [1, 1]} : vector<256x256xbf16> to vector<32x256xbf16>
    %cst_21 = arith.constant dense<0.000000e+00> : vector<128x256xf32>
    %70 = tpu.matmul %67, %68, %cst_21 {dimension_numbers = #tpu.dot_dimension_numbers<[0], [0], [1], [1], [0, 1, 1, 1], [], []>} : vector<32x128xbf16>, vector<32x256xbf16>, vector<128x256xf32> -> vector<128x256xf32>
    %cst_22 = arith.constant dense<0xFF800000> : vector<128xf32>
    %71 = vector.multi_reduction <maximumf>, %70, %cst_22 [1] : vector<128x256xf32> to vector<128xf32>
    %72 = vector.shape_cast %71 : vector<128xf32> to vector<128x1xf32>
    %73 = vector.broadcast %72 : vector<128x1xf32> to vector<128x256xf32>
    %74 = arith.subf %70, %73 : vector<128x256xf32>
    %75 = math.exp %74 : vector<128x256xf32>
    %cst_23 = arith.constant dense<0.000000e+00> : vector<128xf32>
    %76 = vector.multi_reduction <add>, %75, %cst_23 [1] : vector<128x256xf32> to vector<128xf32>
    %77 = vector.shape_cast %76 : vector<128xf32> to vector<128x1xf32>
    %78 = tpu.reciprocal %77 {approx = true} : vector<128x1xf32> -> vector<128x1xf32>
    %79 = vector.broadcast %78 : vector<128x1xf32> to vector<128x256xf32>
    %80 = arith.mulf %75, %79 : vector<128x256xf32>
    %81 = arith.truncf %80 : vector<128x256xf32> to vector<128x256xbf16>
    %cst_24 = arith.constant dense<0.000000e+00> : vector<32x128xf32>
    %82 = tpu.matmul %69, %81, %cst_24 {dimension_numbers = #tpu.dot_dimension_numbers<[1], [1], [0], [0], [0, 0, 1, 0], [], []>} : vector<32x256xbf16>, vector<128x256xbf16>, vector<32x128xf32> -> vector<32x128xf32>
    %83 = arith.truncf %82 : vector<32x128xf32> to vector<32x128xbf16>
    %84 = vector.extract_strided_slice %15 {offsets = [128, 0], sizes = [32, 128], strides = [1, 1]} : vector<256x128xbf16> to vector<32x128xbf16>
    %85 = vector.extract_strided_slice %12 {offsets = [128, 0], sizes = [32, 256], strides = [1, 1]} : vector<256x256xbf16> to vector<32x256xbf16>
    %86 = vector.extract_strided_slice %14 {offsets = [128, 0], sizes = [32, 256], strides = [1, 1]} : vector<256x256xbf16> to vector<32x256xbf16>
    %cst_25 = arith.constant dense<0.000000e+00> : vector<128x256xf32>
    %87 = tpu.matmul %84, %85, %cst_25 {dimension_numbers = #tpu.dot_dimension_numbers<[0], [0], [1], [1], [0, 1, 1, 1], [], []>} : vector<32x128xbf16>, vector<32x256xbf16>, vector<128x256xf32> -> vector<128x256xf32>
    %cst_26 = arith.constant dense<0xFF800000> : vector<128xf32>
    %88 = vector.multi_reduction <maximumf>, %87, %cst_26 [1] : vector<128x256xf32> to vector<128xf32>
    %89 = vector.shape_cast %88 : vector<128xf32> to vector<128x1xf32>
    %90 = vector.broadcast %89 : vector<128x1xf32> to vector<128x256xf32>
    %91 = arith.subf %87, %90 : vector<128x256xf32>
    %92 = math.exp %91 : vector<128x256xf32>
    %cst_27 = arith.constant dense<0.000000e+00> : vector<128xf32>
    %93 = vector.multi_reduction <add>, %92, %cst_27 [1] : vector<128x256xf32> to vector<128xf32>
    %94 = vector.shape_cast %93 : vector<128xf32> to vector<128x1xf32>
    %95 = tpu.reciprocal %94 {approx = true} : vector<128x1xf32> -> vector<128x1xf32>
    %96 = vector.broadcast %95 : vector<128x1xf32> to vector<128x256xf32>
    %97 = arith.mulf %92, %96 : vector<128x256xf32>
    %98 = arith.truncf %97 : vector<128x256xf32> to vector<128x256xbf16>
    %cst_28 = arith.constant dense<0.000000e+00> : vector<32x128xf32>
    %99 = tpu.matmul %86, %98, %cst_28 {dimension_numbers = #tpu.dot_dimension_numbers<[1], [1], [0], [0], [0, 0, 1, 0], [], []>} : vector<32x256xbf16>, vector<128x256xbf16>, vector<32x128xf32> -> vector<32x128xf32>
    %100 = arith.truncf %99 : vector<32x128xf32> to vector<32x128xbf16>
    %101 = vector.extract_strided_slice %15 {offsets = [160, 0], sizes = [32, 128], strides = [1, 1]} : vector<256x128xbf16> to vector<32x128xbf16>
    %102 = vector.extract_strided_slice %12 {offsets = [160, 0], sizes = [32, 256], strides = [1, 1]} : vector<256x256xbf16> to vector<32x256xbf16>
    %103 = vector.extract_strided_slice %14 {offsets = [160, 0], sizes = [32, 256], strides = [1, 1]} : vector<256x256xbf16> to vector<32x256xbf16>
    %cst_29 = arith.constant dense<0.000000e+00> : vector<128x256xf32>
    %104 = tpu.matmul %101, %102, %cst_29 {dimension_numbers = #tpu.dot_dimension_numbers<[0], [0], [1], [1], [0, 1, 1, 1], [], []>} : vector<32x128xbf16>, vector<32x256xbf16>, vector<128x256xf32> -> vector<128x256xf32>
    %cst_30 = arith.constant dense<0xFF800000> : vector<128xf32>
    %105 = vector.multi_reduction <maximumf>, %104, %cst_30 [1] : vector<128x256xf32> to vector<128xf32>
    %106 = vector.shape_cast %105 : vector<128xf32> to vector<128x1xf32>
    %107 = vector.broadcast %106 : vector<128x1xf32> to vector<128x256xf32>
    %108 = arith.subf %104, %107 : vector<128x256xf32>
    %109 = math.exp %108 : vector<128x256xf32>
    %cst_31 = arith.constant dense<0.000000e+00> : vector<128xf32>
    %110 = vector.multi_reduction <add>, %109, %cst_31 [1] : vector<128x256xf32> to vector<128xf32>
    %111 = vector.shape_cast %110 : vector<128xf32> to vector<128x1xf32>
    %112 = tpu.reciprocal %111 {approx = true} : vector<128x1xf32> -> vector<128x1xf32>
    %113 = vector.broadcast %112 : vector<128x1xf32> to vector<128x256xf32>
    %114 = arith.mulf %109, %113 : vector<128x256xf32>
    %115 = arith.truncf %114 : vector<128x256xf32> to vector<128x256xbf16>
    %cst_32 = arith.constant dense<0.000000e+00> : vector<32x128xf32>
    %116 = tpu.matmul %103, %115, %cst_32 {dimension_numbers = #tpu.dot_dimension_numbers<[1], [1], [0], [0], [0, 0, 1, 0], [], []>} : vector<32x256xbf16>, vector<128x256xbf16>, vector<32x128xf32> -> vector<32x128xf32>
    %117 = arith.truncf %116 : vector<32x128xf32> to vector<32x128xbf16>
    %118 = vector.extract_strided_slice %15 {offsets = [192, 0], sizes = [32, 128], strides = [1, 1]} : vector<256x128xbf16> to vector<32x128xbf16>
    %119 = vector.extract_strided_slice %12 {offsets = [192, 0], sizes = [32, 256], strides = [1, 1]} : vector<256x256xbf16> to vector<32x256xbf16>
    %120 = vector.extract_strided_slice %14 {offsets = [192, 0], sizes = [32, 256], strides = [1, 1]} : vector<256x256xbf16> to vector<32x256xbf16>
    %cst_33 = arith.constant dense<0.000000e+00> : vector<128x256xf32>
    %121 = tpu.matmul %118, %119, %cst_33 {dimension_numbers = #tpu.dot_dimension_numbers<[0], [0], [1], [1], [0, 1, 1, 1], [], []>} : vector<32x128xbf16>, vector<32x256xbf16>, vector<128x256xf32> -> vector<128x256xf32>
    %cst_34 = arith.constant dense<0xFF800000> : vector<128xf32>
    %122 = vector.multi_reduction <maximumf>, %121, %cst_34 [1] : vector<128x256xf32> to vector<128xf32>
    %123 = vector.shape_cast %122 : vector<128xf32> to vector<128x1xf32>
    %124 = vector.broadcast %123 : vector<128x1xf32> to vector<128x256xf32>
    %125 = arith.subf %121, %124 : vector<128x256xf32>
    %126 = math.exp %125 : vector<128x256xf32>
    %cst_35 = arith.constant dense<0.000000e+00> : vector<128xf32>
    %127 = vector.multi_reduction <add>, %126, %cst_35 [1] : vector<128x256xf32> to vector<128xf32>
    %128 = vector.shape_cast %127 : vector<128xf32> to vector<128x1xf32>
    %129 = tpu.reciprocal %128 {approx = true} : vector<128x1xf32> -> vector<128x1xf32>
    %130 = vector.broadcast %129 : vector<128x1xf32> to vector<128x256xf32>
    %131 = arith.mulf %126, %130 : vector<128x256xf32>
    %132 = arith.truncf %131 : vector<128x256xf32> to vector<128x256xbf16>
    %cst_36 = arith.constant dense<0.000000e+00> : vector<32x128xf32>
    %133 = tpu.matmul %120, %132, %cst_36 {dimension_numbers = #tpu.dot_dimension_numbers<[1], [1], [0], [0], [0, 0, 1, 0], [], []>} : vector<32x256xbf16>, vector<128x256xbf16>, vector<32x128xf32> -> vector<32x128xf32>
    %134 = arith.truncf %133 : vector<32x128xf32> to vector<32x128xbf16>
    %135 = vector.extract_strided_slice %15 {offsets = [224, 0], sizes = [32, 128], strides = [1, 1]} : vector<256x128xbf16> to vector<32x128xbf16>
    %136 = vector.extract_strided_slice %12 {offsets = [224, 0], sizes = [32, 256], strides = [1, 1]} : vector<256x256xbf16> to vector<32x256xbf16>
    %137 = vector.extract_strided_slice %14 {offsets = [224, 0], sizes = [32, 256], strides = [1, 1]} : vector<256x256xbf16> to vector<32x256xbf16>
    %cst_37 = arith.constant dense<0.000000e+00> : vector<128x256xf32>
    %138 = tpu.matmul %135, %136, %cst_37 {dimension_numbers = #tpu.dot_dimension_numbers<[0], [0], [1], [1], [0, 1, 1, 1], [], []>} : vector<32x128xbf16>, vector<32x256xbf16>, vector<128x256xf32> -> vector<128x256xf32>
    %cst_38 = arith.constant dense<0xFF800000> : vector<128xf32>
    %139 = vector.multi_reduction <maximumf>, %138, %cst_38 [1] : vector<128x256xf32> to vector<128xf32>
    %140 = vector.shape_cast %139 : vector<128xf32> to vector<128x1xf32>
    %141 = vector.broadcast %140 : vector<128x1xf32> to vector<128x256xf32>
    %142 = arith.subf %138, %141 : vector<128x256xf32>
    %143 = math.exp %142 : vector<128x256xf32>
    %cst_39 = arith.constant dense<0.000000e+00> : vector<128xf32>
    %144 = vector.multi_reduction <add>, %143, %cst_39 [1] : vector<128x256xf32> to vector<128xf32>
    %145 = vector.shape_cast %144 : vector<128xf32> to vector<128x1xf32>
    %146 = tpu.reciprocal %145 {approx = true} : vector<128x1xf32> -> vector<128x1xf32>
    %147 = vector.broadcast %146 : vector<128x1xf32> to vector<128x256xf32>
    %148 = arith.mulf %143, %147 : vector<128x256xf32>
    %149 = arith.truncf %148 : vector<128x256xf32> to vector<128x256xbf16>
    %cst_40 = arith.constant dense<0.000000e+00> : vector<32x128xf32>
    %150 = tpu.matmul %137, %149, %cst_40 {dimension_numbers = #tpu.dot_dimension_numbers<[1], [1], [0], [0], [0, 0, 1, 0], [], []>} : vector<32x256xbf16>, vector<128x256xbf16>, vector<32x128xf32> -> vector<32x128xf32>
    %151 = arith.truncf %150 : vector<32x128xf32> to vector<32x128xbf16>
    %152 = tpu.concatenate %32, %49, %66, %83, %100, %117, %134, %151 in 0 : vector<32x128xbf16>, vector<32x128xbf16>, vector<32x128xbf16>, vector<32x128xbf16>, vector<32x128xbf16>, vector<32x128xbf16>, vector<32x128xbf16>, vector<32x128xbf16> -> vector<256x128xbf16>
    %c0_41 = arith.constant 0 : index
    %c0_42 = arith.constant 0 : index
    %153 = vector.load %arg5[%c0_41, %c0_42] : memref<256x4xbf16, #tpu.memory_space<vmem>>, vector<256x4xbf16>
    %cst_43 = arith.constant dense<0.000000e+00> : vector<4x128xf32>
    %154 = tpu.matmul %153, %152, %cst_43 {dimension_numbers = #tpu.dot_dimension_numbers<[0], [0], [1], [1], [0, 1, 1, 1], [], []>} : vector<256x4xbf16>, vector<256x128xbf16>, vector<4x128xf32> -> vector<4x128xf32>
    %c0_44 = arith.constant 0 : index
    %c0_45 = arith.constant 0 : index
    %155 = vector.load %arg6[%c0_44, %c0_45] : memref<4x1xf32, #tpu.memory_space<vmem>>, vector<4x1xf32>
    %156 = vector.broadcast %155 : vector<4x1xf32> to vector<4x128xf32>
    %157 = arith.addf %154, %156 : vector<4x128xf32>
    %c0_46 = arith.constant 0 : index
    %c0_47 = arith.constant 0 : index
    %c0_48 = arith.constant 0 : index
    %158 = vector.load %arg7[%c0_46, %c0_47, %c0_48] : memref<1x4x128xf32, #tpu.memory_space<vmem>>, vector<1x4x128xf32>
    %159 = vector.shape_cast %158 : vector<1x4x128xf32> to vector<4x128xf32>
    %160 = vector.shape_cast %157 : vector<4x128xf32> to vector<1x4x128xf32>
    tpu.vector_store %arg7[%c0_46, %c0_47, %c0_48], %160 {strides = array<i32>} : memref<1x4x128xf32, #tpu.memory_space<vmem>>, vector<1x4x128xf32>,
    return
  }
  func.func @transform_0(%arg0: i32, %arg1: i32) -> (i32, i32, i32) {
    %c0_i32 = arith.constant 0 : i32
    %c0_i32_0 = arith.constant 0 : i32
    %c0_i32_1 = arith.constant 0 : i32
    return %arg0, %c0_i32, %c0_i32_0 : i32, i32, i32
  }
  func.func @transform_1(%arg0: i32, %arg1: i32) -> (i32, i32) {
    %c0_i32 = arith.constant 0 : i32
    %c0_i32_0 = arith.constant 0 : i32
    %c0_i32_1 = arith.constant 0 : i32
    return %c0_i32, %c0_i32_0 : i32, i32
  }
  func.func @transform_2(%arg0: i32, %arg1: i32) -> (i32, i32) {
    %c0_i32 = arith.constant 0 : i32
    %c0_i32_0 = arith.constant 0 : i32
    %c0_i32_1 = arith.constant 0 : i32
    return %c0_i32, %c0_i32_0 : i32, i32
  }
  func.func @transform_3(%arg0: i32, %arg1: i32) -> (i32, i32) {
    %c0_i32 = arith.constant 0 : i32
    %c0_i32_0 = arith.constant 0 : i32
    %c0_i32_1 = arith.constant 0 : i32
    return %c0_i32, %c0_i32_0 : i32, i32
  }
  func.func @transform_4(%arg0: i32, %arg1: i32) -> (i32, i32) {
    %c0_i32 = arith.constant 0 : i32
    %c0_i32_0 = arith.constant 0 : i32
    %c0_i32_1 = arith.constant 0 : i32
    return %c0_i32, %c0_i32_0 : i32, i32
  }
  func.func @transform_5(%arg0: i32, %arg1: i32) -> (i32, i32, i32) {
    %c0_i32 = arith.constant 0 : i32
    %c0_i32_0 = arith.constant 0 : i32
    return %arg0, %c0_i32, %arg1 : i32, i32, i32
  }
}

</mosaic_0001>

<bundles_post_ra>
// kernel: tpu_custom_call.1
= control target key start
LH: loop header
LB: loop body
LE: loop exit
PB: predicated region body
PF: predicated region fallthrough
CT: control target
= control target key end

     0   :  { %s10377_s0 = inlined_call_operand.hbm [shape: bf16[2,4,256], index: 0, kind: input, shape index: {}]   ;;  %s10378_s1 = inlined_call_operand.hbm [shape: bf16[256,4], index: 1, kind: input, shape index: {}]   ;;  %s10379_s2 = inlined_call_operand.hbm [shape: bf16[512,4], index: 2, kind: input, shape index: {}]   ;;  %s10380_s3 = inlined_call_operand.hbm [shape: bf16[256,4], index: 3, kind: input, shape index: {}]   ;;  %s10381_s4 = inlined_call_operand.hbm [shape: f32[4,1], index: 4, kind: input, shape index: {}]   ;;  %s10382_s5 = inlined_call_operand.hbm [shape: f32[2,4,256], index: 5, kind: output, shape index: {}]  }
   0x1   :  { %10493 = sst [smem:[#allocation98_spill]] %s10377_s0 }
   0x2   :  { %10494 = sst [smem:[#allocation99_spill]] %s10378_s1 }
   0x3   :  { %10495 = sst [smem:[#allocation100_spill]] %s10379_s2 }
   0x4   :  { %10496 = sst [smem:[#allocation101_spill]] %s10382_s5 }
   0x5   :  { %10 = vsyncpa [#allocation3], 0 }
   0x6   :  { %12 = vsyncpa [#allocation3 + $0x1], 0 }
   0x7   :  { %13 = vsyncpa [#allocation6], 0 }
   0x8   :  { %14 = vsyncpa [#allocation9], 0 }
   0x9   :  { %15 = vsyncpa [#allocation4], 0 }
   0xa   :  { %17 = vsyncpa [#allocation4 + $0x1], 0  ;;  %s7010_s18 = smov 0   ;;  %s7012_s19 = smov 0  }
   0xb   :  { %s7014_s20 = smov 0   ;;  %s7016_s21 = smov 0  }
   0xc   :  { %s7018_s22 = smov 0   ;;  %s7020_s23 = smov 0  }
   0xd   :  { %s7022_s24 = smov 0   ;;  %s7024_s25 = smov 0  }
   0xe   :  { %s7026_s26 = smov 0   ;;  %s7028_s27 = smov 0  }
   0xf   :  { %s7030_s28 = smov 0  }
  0x10 LB: > { %10497 = sst [smem:[#allocation16_spill]] %s6953_s24  ;;  %s5440_s29 = sadd.s32 4294967295, %s6969_s28   ;;  %s6969_s28 = sphi %s7030_s28, %s23_s28   ;;  %s6965_s27 = sphi %s7028_s27, %s10809_s27   ;;  %s6961_s26 = sphi %s7026_s26, %s10808_s26   ;;  %s6957_s25 = sphi %s7024_s25, %s10807_s25   ;;  %s6953_s24 = sphi %s7022_s24, %s10806_s24   ;;  %s6949_s23 = sphi %s7020_s23, %s10805_s23   ;;  %s6945_s22 = sphi %s7018_s22, %s10804_s22   ;;  %s6941_s21 = sphi %s7016_s21, %s10803_s21   ;;  %s6937_s20 = sphi %s7014_s20, %s10802_s20   ;;  %s6933_s19 = sphi %s7012_s19, %s10801_s19   ;;  %s6929_s18 = sphi %s7010_s18, %s10800_s18  }
  0x11   : > { %10498 = sst [smem:[#allocation17_spill]] %s6957_s25  ;;  %p5442_p0 = scmp.ge.s32.totalorder %s6969_s28, 1 }
  0x12   : > { %p7067_p1 = scmp.eq.s32.totalorder %s5440_s29, 0  ;;  %p7071_p2 = scmp.eq.s32.totalorder %s5440_s29, 3 }
  0x13   : > { %p178_p3 = scmp.lt.s32.totalorder %s6969_s28, 5  ;;  %s6971_s8 = smov [#allocation5]  }
  0x14   : > { %s10499_s30 = scalar_select %p7067_p1, 1, 0 }
  0x15   : > { %s10500_s6 = scalar_select %p7071_p2, 1, 0 }
  0x16   : > { %p7076_p4 = pnand %p5442_p0, %p178_p3  ;;  %s190_s9 = sshll.u32 %s6971_s8, 4  ;;  %s7080_s9 = int_to_ptr.vmem [resolvable:$true] %s190_s9 }
  0x17   : > { %s6972_s11 = smov [#allocation8]   ;;  %s6973_s13 = smov [#allocation7]  }
  0x18   : > { %s10501_s7 = scalar_select %p7076_p4, 1, 0 }
  0x19   : > { %p5738_p5 = pneg %p7076_p4  ;;  %s216_s12 = sshll.u32 %s6972_s11, 4  ;;  %s7090_s12 = int_to_ptr.vmem [resolvable:$true] %s216_s12 }
  0x1a   : > { %10502 = sst [smem:[#allocation18_spill]] %s10501_s7  ;;  %s203_s14 = sshll.u32 %s6973_s13, 4  ;;  %s7092_s14 = int_to_ptr.vmem [resolvable:$true] %s203_s14 }
  0x1b   : > { %p7086_p6 = pnand %p5738_p5, %p7067_p1  ;;  %s10504_s1 = sld [smem:[#allocation99_spill]] }
  0x1d   : > { %p7102_p8 = pneg %p7086_p6 }
  0x21   : > { %s6697_s17 = scalar_lea.hbm %s10504_s1, 2048 }
  0x22   : > { %p6698_p7 = scmp.ne.s32.totalorder %s10504_s1, %s6697_s17  ;;  %p6704_p11 = scmp.lt.u32.totalorder %s6697_s17, %s10504_s1 }
  0x24   : > { %p6700_p9 = pnand %p7102_p8, %p6698_p7 }
  0x26   : > { %p6701_p10 = pneg %p6700_p9 }
  0x28   : > { %p6706_p12 = pnand %p6704_p11, %p6701_p10 }
  0x2a   : > { %6709 = shalt.err (!%p6706_p12)
}
  0x2b   : > { %s6710_s15 = scalar_lea.vmem %s7080_s9, 2048  ;;  %p6718_p5 = scmp.lt.s32.totalorder %s7080_s9, %s7080_s9 }
  0x2c   : > { %p6711_p13 = scmp.ne.s32.totalorder %s7080_s9, %s6710_s15  ;;  %p6719_p4 = scmp.lt.s32.totalorder %s6710_s15, %s6710_s15 }
  0x2e   : > { %p6713_p0 = pnand %p6711_p13, %p7102_p8  ;;  %p6720_p7 = por %p6719_p4, %p6718_p5 }
  0x30   : > { %p6714_p3 = pneg %p6713_p0 }
  0x32   : > { %p6721_p9 = pnand %p6720_p7, %p6714_p3 }
  0x34   : > { %6724 = shalt.err (!%p6721_p9)
}
  0x35   : > { %s6974_s16 = smov 64   ;;  %s6975_s17 = smov 4  }
  0x36   : > { %5741 = dma.hbm_to_vmem [thread:$0]  (!%p7086_p6), %s10504_s1, 2048, %s7080_s9, [#allocation6], %s6974_s16, %s6974_s16, %s6975_s17  }
  0x37   : > { %s6725_s15 = scalar_lea.hbm %s10380_s3, 2048 }
  0x38   : > { %p6726_p4 = scmp.ne.s32.totalorder %s10380_s3, %s6725_s15  ;;  %p6732_p12 = scmp.lt.u32.totalorder %s6725_s15, %s10380_s3 }
  0x3a   : > { %p6728_p10 = pnand %p6726_p4, %p7102_p8 }
  0x3c   : > { %p6729_p11 = pneg %p6728_p10 }
  0x3e   : > { %p6734_p13 = pnand %p6732_p12, %p6729_p11 }
  0x40   : > { %6737 = shalt.err (!%p6734_p13)
}
  0x41   : > { %s6738_s9 = scalar_lea.vmem %s7090_s12, 2048  ;;  %p6746_p7 = scmp.lt.s32.totalorder %s7090_s12, %s7090_s12 }
  0x42   : > { %p6739_p0 = scmp.ne.s32.totalorder %s7090_s12, %s6738_s9  ;;  %p6747_p9 = scmp.lt.s32.totalorder %s6738_s9, %s6738_s9 }
  0x44   : > { %p6741_p3 = pnand %p6739_p0, %p7102_p8  ;;  %p6748_p4 = por %p6747_p9, %p6746_p7 }
  0x46   : > { %p6742_p5 = pneg %p6741_p3 }
  0x48   : > { %p6749_p10 = pnand %p6748_p4, %p6742_p5 }
  0x4a   : > { %6752 = shalt.err (!%p6749_p10)
}
  0x4b   : > { %5747 = dma.hbm_to_vmem [thread:$0]  (!%p7086_p6), %s10380_s3, 2048, %s7090_s12, [#allocation9], %s6974_s16, %s6974_s16, %s6975_s17  }
  0x4c   : > { %s10506_s2 = sld [smem:[#allocation100_spill]] }
  0x52   : > { %s6753_s29 = scalar_lea.hbm %s10506_s2, 4096 }
  0x53   : > { %p6754_p11 = scmp.ne.s32.totalorder %s10506_s2, %s6753_s29  ;;  %p6760_p0 = scmp.lt.u32.totalorder %s6753_s29, %s10506_s2 }
  0x55   : > { %p6756_p12 = pnand %p6754_p11, %p7102_p8 }
  0x57   : > { %p6757_p13 = pneg %p6756_p12 }
  0x59   : > { %p6762_p3 = pnand %p6760_p0, %p6757_p13 }
  0x5b   : > { %6765 = shalt.err (!%p6762_p3)
}
  0x5c   : > { %s6766_s12 = scalar_lea.vmem %s7092_s14, 4096  ;;  %p6774_p4 = scmp.lt.s32.totalorder %s7092_s14, %s7092_s14 }
  0x5d   : > { %p6767_p5 = scmp.ne.s32.totalorder %s7092_s14, %s6766_s12  ;;  %p6775_p10 = scmp.lt.s32.totalorder %s6766_s12, %s6766_s12 }
  0x5f   : > { %p6769_p7 = pnand %p6767_p5, %p7102_p8  ;;  %p6776_p11 = por %p6775_p10, %p6774_p4 }
  0x61   : > { %p6770_p9 = pneg %p6769_p7 }
  0x63   : > { %p6777_p12 = pnand %p6776_p11, %p6770_p9 }
  0x65   : > { %6780 = shalt.err (!%p6777_p12)
}
  0x66   : > { %5744 = dma.hbm_to_vmem [thread:$0]  (!%p7086_p6), %s10506_s2, 4096, %s7092_s14, [#allocation6], %s6974_s16, %s6974_s16, %s6975_s17  }
  0x67   : > { %s6976_s24 = smov [#allocation10]   ;;  %s6781_s8 = scalar_lea.hbm %s10381_s4, 64 }
  0x68   : > { %s230_s25 = sshll.u32 %s6976_s24, 4  ;;  %p6782_p13 = scmp.ne.s32.totalorder %s10381_s4, %s6781_s8  ;;  %s231_s25 = int_to_ptr.vmem [resolvable:$true] %s230_s25 }
  0x69   : > { %p6788_p5 = scmp.lt.u32.totalorder %s6781_s8, %s10381_s4 }
  0x6a   : > { %p6784_p0 = pnand %p6782_p13, %p7102_p8 }
  0x6c   : > { %p6785_p3 = pneg %p6784_p0 }
  0x6e   : > { %p6790_p7 = pnand %p6788_p5, %p6785_p3 }
  0x70   : > { %6793 = shalt.err (!%p6790_p7)
}
  0x71   : > { %s6794_s14 = scalar_lea.vmem %s231_s25, 64  ;;  %p6802_p11 = scmp.lt.s32.totalorder %s231_s25, %s231_s25 }
  0x72   : > { %p6795_p9 = scmp.ne.s32.totalorder %s231_s25, %s6794_s14  ;;  %p6803_p12 = scmp.lt.s32.totalorder %s6794_s14, %s6794_s14 }
  0x74   : > { %p6797_p4 = pnand %p6795_p9, %p7102_p8  ;;  %p6804_p2 = por %p6803_p12, %p6802_p11 }
  0x76   : > { %p6798_p10 = pneg %p6797_p4 }
  0x78   : > { %p6805_p1 = pnand %p6804_p2, %p6798_p10 }
  0x7a   : > { %6808 = shalt.err (!%p6805_p1)
}
  0x7b   : > { %5750 = dma.hbm_to_vmem [thread:$0]  (!%p7086_p6), %s10381_s4, 64, %s231_s25, [#allocation9]  }
  0x7c   : > { %s5441_s5 = sadd.s32 4294967294, %s6969_s28   ;;  %s32_s10 = sadd.s32 1, %s6961_s26 }
  0x7d   : > { %s35_s9 = sadd.s32 1, %s6965_s27  ;;  %p33_p1 = scmp.ge.s32.totalorder %s32_s10, 2 }
  0x7e   : > { %s42_s0 = sadd.s32 1, %s6949_s23  ;;  %p49_p2 = scmp.ne.s32.totalorder %s6949_s23, %s6945_s22 }
  0x7f   : > { %p50_p8 = scmp.eq.s32.totalorder %s6969_s28, 0  ;;  %s10811_s10 = smov (%p33_p1, %s32_s10), 0 }
  0x80   : > { %s10813_s9 = smov (!%p33_p1, %s35_s9), %s6965_s27  ;;  %p55_p6 = scmp.ne.s32.totalorder %s6945_s22, %s6941_s21 }
  0x81   : > { %p7206_p13 = por %p50_p8, %p49_p2  ;;  %p37_p0 = scmp.ge.s32.totalorder %s10813_s9, 2 }
  0x82   : > { %s150_s25 = ssub.s32 %s6961_s26, %s10811_s10  ;;  %p10508_p3 = scmp.ne.s32.totalorder %s10499_s30, 0 }
  0x83   : > { %s154_s29 = sadd.s32 1, %s6937_s20  ;;  %s10815_s9 = smov (%p37_p0, %s10813_s9), 0 }
  0x84   : > { %p7216_p5 = por %p10508_p3, %p55_p6  ;;  %p164_p7 = scmp.ne.s32.totalorder %s6937_s20, %s6933_s19 }
  0x85   : > { %p170_p9 = scmp.ne.s32.totalorder %s6933_s19, %s6929_s18  ;;  %s39_s8 = ssub.s32 %s6965_s27, %s10815_s9 }
  0x86   : > { %p171_p4 = scmp.eq.s32.totalorder %s5441_s5, 3  ;;  %p40_p10 = scmp.eq.s32.totalorder %s39_s8, 0 }
  0x87   : > { %s151_s21 = sor.u32 %s150_s25, %s39_s8  ;;  %p10510_p12 = scmp.ne.s32.totalorder %s10500_s6, 0 }
  0x88   : > { %p152_p11 = scmp.eq.s32.totalorder %s151_s21, 0  ;;  %p7241_p2 = por %p171_p4, %p170_p9 }
  0x89   : > { %p7231_p1 = por %p10510_p12, %p164_p7  ;;  %p5763_p8 = scmp.lt.s32.totalorder %s6969_s28, 4 }
  0x8a   : > { %s7236_s13 = scalar_select %p40_p10, %s6949_s23, %s42_s0  }
  0x8b   : > { %s10511_s11 = scalar_select %p7231_p1, 1, 0 }
  0x8c   : > { %s7239_s15 = scalar_select %p152_p11, %s6937_s20, %s154_s29  }
  0x8d   : > { %s10512_s12 = scalar_select %p7241_p2, 1, 0 }
  0x8e   : > { %s241_s14 = sand.u32 1, %s6949_s23   ;;  %s5643_s16 = sshll.u32 %s6965_s27, 6 }
  0x8f   : > { %s5448_s17 = sshll.u32 %s241_s14, 2  ;;  %s10513_s8 = sld [smem:[#allocation98_spill]] }
  0x90   : > { %s245_s0 = scalar_lea.vmem [#allocation2], %s5448_s17  ;;  %p7255_p6 = pnand %p5763_p8, %p7206_p13 }
  0x91   : > { %s253_s29 = sshll.u32 %s245_s0, 4  ;;  %s242_s1 = scalar_lea.sflag [#allocation3], %s241_s14  ;;  %s7259_s29 = int_to_ptr.vmem [resolvable:$true] %s253_s29 }
  0x92   : > { %p6811_p3 = pneg %p7255_p6 }
  0x95   : > { %s7251_s6 = scalar_lea.hbm %s10513_s8, %s5643_s16  ;;  %s6814_s24 = scalar_lea.hbm %s10513_s8, 128 }
  0x96   : > { %s6809_s2 = scalar_lea.hbm %s7251_s6, 64  ;;  %p6815_p13 = scmp.lt.u32.totalorder %s7251_s6, %s10513_s8 }
  0x97   : > { %p6810_p0 = scmp.ne.s32.totalorder %s7251_s6, %s6809_s2  ;;  %p6816_p4 = scmp.lt.u32.totalorder %s6814_s24, %s6809_s2 }
  0x98   : > { %p6818_p11 = scmp.lt.u32.totalorder %s6809_s2, %s7251_s6 }
  0x99   : > { %p6812_p7 = pnand %p6811_p3, %p6810_p0  ;;  %p6817_p10 = por %p6816_p4, %p6815_p13 }
  0x9b   : > { %p6813_p9 = pneg %p6812_p7  ;;  %p6819_p12 = por %p6818_p11, %p6817_p10 }
  0x9d   : > { %p6820_p8 = pnand %p6819_p12, %p6813_p9 }
  0x9f   : > { %6823 = shalt.err (!%p6820_p8)
}
  0xa0   : > { %s6824_s14 = scalar_lea.vmem %s7259_s29, 64  ;;  %s6977_s0 = smov [#allocation2]  }
  0xa1   : > { %p6825_p0 = scmp.ne.s32.totalorder %s7259_s29, %s6824_s14  ;;  %s6829_s16 = sshll.u32 %s6977_s0, 4  ;;  %s6830_s16 = int_to_ptr.vmem [resolvable:$false] %s6829_s16 }
  0xa2   : > { %s6831_s17 = scalar_lea.vmem %s6830_s16, 128  ;;  %p6832_p1 = scmp.lt.s32.totalorder %s7259_s29, %s6830_s16 }
  0xa3   : > { %p6827_p7 = pnand %p6825_p0, %p6811_p3  ;;  %p6833_p13 = scmp.lt.s32.totalorder %s6831_s17, %s6824_s14 }
  0xa5   : > { %p6828_p2 = pneg %p6827_p7  ;;  %p6834_p4 = por %p6833_p13, %p6832_p1 }
  0xa7   : > { %p6835_p10 = pnand %p6834_p4, %p6828_p2 }
  0xa9   : > { %6838 = shalt.err (!%p6835_p10)
}
  0xaa   : > { %5754 = dma.hbm_to_vmem [thread:$0]  (!%p7255_p6), %s7251_s6, 64, %s7259_s29, %s242_s1  }
  0xab   : > { %s10515_s2 = sld [smem:[#allocation18_spill]] }
  0xb1   : > { %p10516_p9 = scmp.ne.s32.totalorder %s10515_s2, 0 }
  0xb3   : > { %262 = sbr.rel (%p10516_p9) target bundleno = 5901 (0x170d), region = 40 }
  0xba   : > { %s264_s24 = sand.u32 1, %s6945_s22  }
  0xbb   : > { %s5452_s5 = sshll.u32 %s264_s24, 2  ;;  %s265_s25 = scalar_lea.sflag [#allocation3], %s264_s24 }
  0xbc   : > { %s268_s0 = scalar_lea.vmem [#allocation2], %s5452_s5 }
  0xbd   : > { %6912 = dma.done.wait (%p7216_p5), %s265_s25, 64  }
  0xbe   : > { %6914 = vsyncadd (%p7216_p5), %s265_s25, 4294967232  ;;  %p10517_p1 = scmp.ne.s32.totalorder %s10499_s30, 0 }
  0xc0   : > { %6916 = dma.done.wait (%p10517_p1), [#allocation6], 6144  }
  0xc1   : > { %6918 = vsyncadd (%p10517_p1), [#allocation6], 4294961152 }
  0xc2   : > { %6920 = dma.done.wait (%p10517_p1), [#allocation9], 2112  }
  0xc3   : > { %6922 = vsyncadd (%p10517_p1), [#allocation9], 4294965184  ;;  %s10518_s1 = sld [smem:[#allocation16_spill]]  ;;  %v10391_v0 = vmov 0   ;;  %vm649_vm0 = vcmask 1041408   ;;  %vm552_vm1 = vcmask 31744  }
  0xc4   : > { %688 = vmatprep.mubr.bf16.mxu0 %v10391_v0  ;;  %v5865_v3 = vld [vmem:[#allocation5] sm:$0xff]   ;;  %v5866_v4 = vld [vmem:[#allocation5 + $0x8] sm:$0xff]   ;;  %v5492_v5 = vld.sshfl [vmem:[%s268_s0] sm:$0x33 pattern:$0x76325410] }
  0xc5   : > { %5685 = vmatprep.mubr.msk.bf16.mxu1 %vm552_vm1, %v5865_v3  ;;  %v551_v6 = vcombine.high %v5492_v5, %v5492_v5  ;;  %v651_v7 = vsel %vm649_vm0, %v5492_v5, 0  ;;  %v5867_v8 = vld [vmem:[#allocation7] sm:$0xff]   ;;  %v5868_v9 = vld [vmem:[#allocation7 + $0x8] sm:$0xff]   ;;  %v5869_v10 = vld [vmem:[#allocation5 + $0x10] sm:$0xff]   ;;  %vm1429_vm2 = vcmask 261120   ;;  %s10794_s30 = sld [smem:[#allocation17_spill]] }
  0xc6   : > { %v5870_v11 = vld [vmem:[#allocation5 + $0x18] sm:$0xff]   ;;  %v5871_v12 = vld [vmem:[#allocation5 + $0x20] sm:$0xff]   ;;  %v5872_v13 = vld [vmem:[#allocation5 + $0x28] sm:$0xff]   ;;  %s308_s14 = sand.u32 1, %s6933_s19   ;;  %p10798_p2 = scmp.ne.s32.totalorder %s10511_s11, 0 }
  0xc7   : > { %5493 = vmatprep.subr.msk.bf16.mxu0 %vm649_vm0, %v551_v6  ;;  %v5873_v14 = vld [vmem:[#allocation5 + $0x30] sm:$0xff]   ;;  %v5874_v15 = vld [vmem:[#allocation5 + $0x38] sm:$0xff]   ;;  %v5875_v16 = vld [vmem:[#allocation5 + $0x40] sm:$0xff]   ;;  %s5457_s16 = sshll.u32 %s308_s14, 2 }
  0xc8   : > { %657 = vmatpush1.bf16.msra.mxu0 %v651_v7  ;;  %v5876_v17 = vld [vmem:[#allocation5 + $0x48] sm:$0xff]   ;;  %v5877_v18 = vld [vmem:[#allocation5 + $0x50] sm:$0xff]   ;;  %v5878_v19 = vld [vmem:[#allocation5 + $0x58] sm:$0xff]   ;;  %s310_s5 = scalar_lea.vmem [#allocation11], %s5457_s16 }
  0xc9   : > { %s5458_s6 = sshll.u32 %s10518_s1, 7  ;;  %v5879_v20 = vld [vmem:[#allocation5 + $0x60] sm:$0xff]   ;;  %v5880_v21 = vld [vmem:[#allocation5 + $0x68] sm:$0xff]   ;;  %v5881_v22 = vld [vmem:[#allocation5 + $0x70] sm:$0xff]   ;;  %s5317_s25 = sshll.u32 %s310_s5, 4  ;;  %s10317_s25 = int_to_ptr.vmem [resolvable:$true] %s5317_s25 }
  0xca   : > { %s314_s29 = sshra.s32 %s5458_s6, 7  ;;  %v5882_v23 = vld [vmem:[#allocation5 + $0x78] sm:$0xff]  }
  0xcb   : > { %s5459_s7 = sshll.u32 %s314_s29, 1  ;;  %5494 = vmatmul.mubr.msk.bf16.vlgmr.msra.gmra.mrb[0].mxu0 %vm552_vm1, %v5867_v8  ;;  %s5639_s17 = sshll.u32 %s10794_s30, 1 }
  0xcc   : > { %s317_s21 = scalar_lea.vmem %s268_s0, %s5459_s7 [#allocation2]  ;;  %698 = vmatprep.mubr.bf16.mxu0 %v10391_v0  ;;  %s5313_s2 = sadd.s32 %s10518_s1, %s5639_s17 }
  0xcd   : > { %v318_v1 = vld [vmem:[%s317_s21] sm:$0x3]  ;;  %s5640_s24 = sshll.u32 %s5313_s2, 6  ;;  %s10797_s29 = sld [smem:[#allocation101_spill]] }
  0xce   : > { %5717 = vmatprep.subr.msk.bf16.mxu1 %vm649_vm0, %v318_v1  ;;  %v1170_v2 = vsel %vm649_vm0, %v318_v1, 0  ;;  %s5302_s1 = scalar_lea.sflag [#allocation4], %s308_s14  ;;  %s6839_s21 = scalar_lea.vmem %s10317_s25, 64 }
  0xcf   : > { %5684 = vmatpush3.bf16.msra.mxu1 %v1170_v2  ;;  %p6840_p5 = scmp.ne.s32.totalorder %s10317_s25, %s6839_s21  ;;  %s6979_s30 = smov [#allocation11]  }
  0xd0   : > { %s6843_s16 = sshll.u32 %s6979_s30, 4  ;;  %s6844_s16 = int_to_ptr.vmem [resolvable:$false] %s6843_s16 }
  0xd1   : > { %p6841_p6 = pnand %p6840_p5, %p10798_p2  ;;  %s6845_s17 = scalar_lea.vmem %s6844_s16, 128 }
  0xd2   : > { %5686 = vmatmul.mubr.msk.bf16.vlgmr.msra.gmra.mrb[0].mxu1 %vm552_vm1, %v5866_v4  ;;  %p6846_p11 = scmp.lt.s32.totalorder %s10317_s25, %s6844_s16  ;;  %p6847_p12 = scmp.lt.s32.totalorder %s6845_s17, %s6839_s21 }
  0xd3   : > { %5495 = vmatmul.mubr.msk.bf16.gmra.mrb[4].mxu0 %vm552_vm1, %v5868_v9  ;;  %5689 = vmatprep.mubr.msk.bf16.mxu1 %vm552_vm1, %v5869_v10  ;;  %s10315_s7 = scalar_lea.hbm %s10797_s29, %s5640_s24  ;;  %p6842_p3 = pneg %p6841_p6 }
  0xd4   : > { %708 = vmatprep.mubr.bf16.mxu0 %v10391_v0  ;;  %p6848_p8 = por %p6847_p12, %p6846_p11 }
  0xd6   : > { %p6849_p0 = pnand %p6848_p8, %p6842_p3 }
  0xda   : > { %5690 = vmatmul.mubr.msk.bf16.gmra.mrb[4].mxu1 %vm552_vm1, %v5870_v11 }
  0xdb   : > { %5693 = vmatprep.mubr.msk.bf16.mxu1 %vm552_vm1, %v5871_v12 }
  0xe2   : > { %5694 = vmatmul.mubr.msk.bf16.gmra.mrb[8].mxu1 %vm552_vm1, %v5872_v13 }
  0xe3   : > { %5697 = vmatprep.mubr.msk.bf16.mxu1 %vm552_vm1, %v5873_v14 }
  0xea   : > { %5698 = vmatmul.mubr.msk.bf16.gmra.mrb[12].mxu1 %vm552_vm1, %v5874_v15 }
  0xeb   : > { %5701 = vmatprep.mubr.msk.bf16.mxu1 %vm552_vm1, %v5875_v16 }
  0xf2   : > { %5702 = vmatmul.mubr.msk.bf16.gmra.mrb[16].mxu1 %vm552_vm1, %v5876_v17 }
  0xf3   : > { %5705 = vmatprep.mubr.msk.bf16.mxu1 %vm552_vm1, %v5877_v18 }
  0xfa   : > { %5706 = vmatmul.mubr.msk.bf16.gmra.mrb[20].mxu1 %vm552_vm1, %v5878_v19 }
  0xfb   : > { %5709 = vmatprep.mubr.msk.bf16.mxu1 %vm552_vm1, %v5879_v20 }
 0x102   : > { %5710 = vmatmul.mubr.msk.bf16.gmra.mrb[24].mxu1 %vm552_vm1, %v5880_v21 }
 0x103   : > { %5713 = vmatprep.mubr.msk.bf16.mxu1 %vm552_vm1, %v5881_v22 }
 0x10a   : > { %5714 = vmatmul.mubr.msk.bf16.gmra.mrb[28].mxu1 %vm552_vm1, %v5882_v23 }
 0x10b   : > { %1486 = vmatprep.mubr.bf16.mxu1 %v10391_v0 }
 0x19e   : > { %v690_v30 = vpop.f32.mrb[0].mxu0 }
 0x19f   : > { %v692_v31 = vpop.f32.mrb[1].mxu0 }
 0x1a0   : > { %v694_v32 = vpop.f32.mrb[2].mxu0 }
 0x1a1   : > { %v1333_v33 = vpack.c.bf16 %v694_v32, %v690_v30  ;;  %v696_v34 = vpop.f32.mrb[3].mxu0  ;;  %v5884_v30 = vld [vmem:[#allocation7 + $0x18] sm:$0xff]   ;;  %v5886_v32 = vld [vmem:[#allocation7 + $0x28] sm:$0xff]  }
 0x1a2   : > { %v1334_v35 = vpack.c.bf16 %v696_v34, %v692_v31  ;;  %v5885_v31 = vld [vmem:[#allocation7 + $0x20] sm:$0xff]   ;;  %v5888_v34 = vld [vmem:[#allocation7 + $0x38] sm:$0xff]  }
 0x1a4   : > { %1454 = vmatprep.subr.bf16.mxu1 %v1334_v35  ;;  %v5889_v35 = vld [vmem:[#allocation7 + $0x40] sm:$0xff]  }
 0x1a5   : > { %v5687_v24 = vpop.f32.mrb[0].mxu1  ;;  %1455 = vmatpush1.bf16.msra.mxu1 %v1333_v33  ;;  %v5887_v33 = vld [vmem:[#allocation7 + $0x30] sm:$0xff]  }
 0x1a6   : > { %v1206_v25 = vpop.f32.mrb[1].mxu1  ;;  %v700_v36 = vpop.f32.mrb[4].mxu0 }
 0x1a7   : > { %v5688_v26 = vpop.f32.mrb[2].mxu1  ;;  %v702_v37 = vpop.f32.mrb[5].mxu0 }
 0x1a8   : > { %v1398_v27 = vpack.c.bf16 %v5688_v26, %v5687_v24  ;;  %v1209_v28 = vpop.f32.mrb[3].mxu1  ;;  %v704_v38 = vpop.f32.mrb[6].mxu0 }
 0x1a9   : > { %v1397_v29 = vpack.c.bf16 %v1209_v28, %v1206_v25  ;;  %v1335_v39 = vpack.c.bf16 %v704_v38, %v700_v36  ;;  %v706_v40 = vpop.f32.mrb[7].mxu0  ;;  %v5890_v36 = vld [vmem:[#allocation7 + $0x48] sm:$0xff]   ;;  %v5892_v38 = vld [vmem:[#allocation7 + $0x58] sm:$0xff]  }
 0x1aa   : > { %v1336_v41 = vpack.c.bf16 %v706_v40, %v702_v37  ;;  %v5891_v37 = vld [vmem:[#allocation7 + $0x50] sm:$0xff]  }
 0x1ab   : > { %1413 = vxpose.xlu0.c.b16.start [1/2] (short) %v1397_v29, 128  ;;  %v5883_v29 = vld [vmem:[#allocation7 + $0x10] sm:$0xff]  }
 0x1ac   : > { %1456 = vmatprep.subr.bf16.mxu1 %v1336_v41  ;;  %5496 = vmatmul.mubr.msk.bf16.gmra.mrb[8].mxu0 %vm552_vm1, %v5883_v29 }
 0x1ad   : > { %1457 = vmatpush1.bf16.msra.mxu1 %v1335_v39  ;;  %v7324_v42 = vpop.f32.mrb[4].mxu1  ;;  %718 = vmatprep.mubr.bf16.mxu0 %v10391_v0 }
 0x1ae   : > { %v7326_v43 = vpop.f32.mrb[5].mxu1 }
 0x1af   : > { %1414 = vxpose.xlu0.c.b16.end [2/2] (short) %v1398_v27, 128  ;;  %v7328_v44 = vpop.f32.mrb[6].mxu1 }
 0x1b0   : > { %v7332_v46 = vpop.f32.mrb[7].mxu1 }
 0x1b4   : > { %5497 = vmatmul.mubr.msk.bf16.gmra.mrb[12].mxu0 %vm552_vm1, %v5884_v30  ;;  %v5894_v30 = vld [vmem:[#allocation7 + $0x68] sm:$0xff]  }
 0x1b5   : > { %v7336_v48 = vpop.f32.mrb[8].mxu1  ;;  %728 = vmatprep.mubr.bf16.mxu0 %v10391_v0 }
 0x1b6   : > { %10519 = vst [vmem:[#allocation19_spill] sm:$0xff] %v7336_v48  ;;  %v7338_v49 = vpop.f32.mrb[9].mxu1 }
 0x1b7   : > { %v7340_v50 = vpop.f32.mrb[10].mxu1 }
 0x1b8   : > { %v7344_v52 = vpop.f32.mrb[11].mxu1 }
 0x1bc   : > { %5498 = vmatmul.mubr.msk.bf16.gmra.mrb[16].mxu0 %vm552_vm1, %v5885_v31 }
 0x1bd   : > { %v7350_v55 = vpop.f32.mrb[12].mxu1  ;;  %738 = vmatprep.mubr.bf16.mxu0 %v10391_v0 }
 0x1be   : > { %10520 = vst [vmem:[#allocation20_spill] sm:$0xff] %v7350_v55  ;;  %v7352_v56 = vpop.f32.mrb[13].mxu1 }
 0x1bf   : > { %10521 = vst [vmem:[#allocation21_spill] sm:$0xff] %v7352_v56  ;;  %v7354_v58 = vpop.f32.mrb[14].mxu1 }
 0x1c0   : > { %10522 = vst [vmem:[#allocation22_spill] sm:$0xff] %v7354_v58  ;;  %v7358_v60 = vpop.f32.mrb[15].mxu1 }
 0x1c1   : > { %10523 = vst [vmem:[#allocation23_spill] sm:$0xff] %v7358_v60 }
 0x1c4   : > { %5499 = vmatmul.mubr.msk.bf16.gmra.mrb[20].mxu0 %vm552_vm1, %v5886_v32 }
 0x1c5   : > { %v7364_v62 = vpop.f32.mrb[16].mxu1  ;;  %748 = vmatprep.mubr.bf16.mxu0 %v10391_v0 }
 0x1c6   : > { %10524 = vst [vmem:[#allocation24_spill] sm:$0xff] %v7364_v62  ;;  %v7366_v63 = vpop.f32.mrb[17].mxu1 }
 0x1c7   : > { %10525 = vst [vmem:[#allocation25_spill] sm:$0xff] %v7366_v63  ;;  %v7368_v2 = vpop.f32.mrb[18].mxu1 }
 0x1c8   : > { %10526 = vst [vmem:[#allocation26_spill] sm:$0xff] %v7368_v2  ;;  %v7372_v4 = vpop.f32.mrb[19].mxu1 }
 0x1c9   : > { %10527 = vst [vmem:[#allocation27_spill] sm:$0xff] %v7372_v4 }
 0x1cc   : > { %5500 = vmatmul.mubr.msk.bf16.gmra.mrb[24].mxu0 %vm552_vm1, %v5887_v33 }
 0x1cd   : > { %v7378_v6 = vpop.f32.mrb[20].mxu1  ;;  %758 = vmatprep.mubr.bf16.mxu0 %v10391_v0 }
 0x1ce   : > { %10528 = vst [vmem:[#allocation28_spill] sm:$0xff] %v7378_v6  ;;  %v7380_v7 = vpop.f32.mrb[21].mxu1 }
 0x1cf   : > { %10529 = vst [vmem:[#allocation29_spill] sm:$0xff] %v7380_v7  ;;  %v7382_v9 = vpop.f32.mrb[22].mxu1 }
 0x1d0   : > { %10530 = vst [vmem:[#allocation30_spill] sm:$0xff] %v7382_v9  ;;  %v7386_v11 = vpop.f32.mrb[23].mxu1 }
 0x1d1   : > { %10531 = vst [vmem:[#allocation31_spill] sm:$0xff] %v7386_v11 }
 0x1d4   : > { %5501 = vmatmul.mubr.msk.bf16.gmra.mrb[28].mxu0 %vm552_vm1, %v5888_v34 }
 0x1d5   : > { %v7392_v13 = vpop.f32.mrb[24].mxu1  ;;  %768 = vmatprep.mubr.bf16.mxu0 %v10391_v0 }
 0x1d6   : > { %10532 = vst [vmem:[#allocation32_spill] sm:$0xff] %v7392_v13  ;;  %v7394_v14 = vpop.f32.mrb[25].mxu1 }
 0x1d7   : > { %10533 = vst [vmem:[#allocation33_spill] sm:$0xff] %v7394_v14  ;;  %v7396_v16 = vpop.f32.mrb[26].mxu1 }
 0x1d8   : > { %10534 = vst [vmem:[#allocation34_spill] sm:$0xff] %v7396_v16  ;;  %v7400_v18 = vpop.f32.mrb[27].mxu1 }
 0x1d9   : > { %10535 = vst [vmem:[#allocation35_spill] sm:$0xff] %v7400_v18 }
 0x1dc   : > { %5502 = vmatmul.mubr.msk.bf16.gmra.mrb[32].mxu0 %vm552_vm1, %v5889_v35 }
 0x1dd   : > { %v7406_v20 = vpop.f32.mrb[28].mxu1  ;;  %778 = vmatprep.mubr.bf16.mxu0 %v10391_v0 }
 0x1de   : > { %10536 = vst [vmem:[#allocation36_spill] sm:$0xff] %v7406_v20  ;;  %v7408_v21 = vpop.f32.mrb[29].mxu1 }
 0x1df   : > { %10537 = vst [vmem:[#allocation37_spill] sm:$0xff] %v7408_v21  ;;  %v7410_v23 = vpop.f32.mrb[30].mxu1 }
 0x1e0   : > { %10538 = vst [vmem:[#allocation38_spill] sm:$0xff] %v7410_v23  ;;  %v7414_v25 = vpop.f32.mrb[31].mxu1 }
 0x1e1   : > { %10539 = vst [vmem:[#allocation39_spill] sm:$0xff] %v7414_v25 }
 0x1e4   : > { %5503 = vmatmul.mubr.msk.bf16.gmra.mrb[36].mxu0 %vm552_vm1, %v5890_v36 }
 0x1e5   : > { %788 = vmatprep.mubr.bf16.mxu0 %v10391_v0 }
 0x1ec   : > { %5504 = vmatmul.mubr.msk.bf16.gmra.mrb[40].mxu0 %vm552_vm1, %v5891_v37 }
 0x1ed   : > { %798 = vmatprep.mubr.bf16.mxu0 %v10391_v0 }
 0x1f4   : > { %5505 = vmatmul.mubr.msk.bf16.gmra.mrb[44].mxu0 %vm552_vm1, %v5892_v38  ;;  %v5895_v38 = vld [vmem:[#allocation7 + $0x70] sm:$0xff]  }
 0x1f5   : > { %808 = vmatprep.mubr.bf16.mxu0 %v10391_v0 }
 0x211   : > { %v1421_v53 = vpop.trf.xlu0 }
 0x212   : > { %5558 = vmatmul.mubr.msk.bf16.vlgmr.msra.gmra.mrb[32].mxu1 %vm1429_vm2, %v1421_v53 }
 0x213   : > { %1496 = vmatprep.mubr.bf16.mxu1 %v10391_v0 }
 0x215   : > { %v1422_v57 = vpop.trf.xlu0 }
 0x219   : > { %v1423_v1 = vpop.trf.xlu0 }
 0x21a   : > { %5559 = vmatmul.mubr.msk.bf16.gmra.mrb[36].mxu1 %vm1429_vm2, %v1422_v57 }
 0x21b   : > { %1506 = vmatprep.mubr.bf16.mxu1 %v10391_v0 }
 0x21d   : > { %v1424_v8 = vpop.trf.xlu0 }
 0x221   : > { %v1425_v15 = vpop.trf.xlu0 }
 0x222   : > { %5560 = vmatmul.mubr.msk.bf16.gmra.mrb[40].mxu1 %vm1429_vm2, %v1423_v1  ;;  %v5893_v1 = vld [vmem:[#allocation7 + $0x60] sm:$0xff]  }
 0x223   : > { %1516 = vmatprep.mubr.bf16.mxu1 %v10391_v0  ;;  %5506 = vmatmul.mubr.msk.bf16.gmra.mrb[48].mxu0 %vm552_vm1, %v5893_v1 }
 0x224   : > { %818 = vmatprep.mubr.bf16.mxu0 %v10391_v0 }
 0x225   : > { %v1426_v22 = vpop.trf.xlu0 }
 0x229   : > { %v1427_v27 = vpop.trf.xlu0 }
 0x22a   : > { %5561 = vmatmul.mubr.msk.bf16.gmra.mrb[44].mxu1 %vm1429_vm2, %v1424_v8 }
 0x22b   : > { %1526 = vmatprep.mubr.bf16.mxu1 %v10391_v0  ;;  %5507 = vmatmul.mubr.msk.bf16.gmra.mrb[52].mxu0 %vm552_vm1, %v5894_v30 }
 0x22c   : > { %828 = vmatprep.mubr.bf16.mxu0 %v10391_v0 }
 0x22d   : > { %v1428_v28 = vpop.trf.xlu0 }
 0x232   : > { %5562 = vmatmul.mubr.msk.bf16.gmra.mrb[48].mxu1 %vm1429_vm2, %v1425_v15 }
 0x233   : > { %1536 = vmatprep.mubr.bf16.mxu1 %v10391_v0  ;;  %5508 = vmatmul.mubr.msk.bf16.gmra.mrb[56].mxu0 %vm552_vm1, %v5895_v38 }
 0x234   : > { %838 = vmatprep.mubr.bf16.mxu0 %v10391_v0 }
 0x23a   : > { %5563 = vmatmul.mubr.msk.bf16.gmra.mrb[52].mxu1 %vm1429_vm2, %v1426_v22 }
 0x23b   : > { %1546 = vmatprep.mubr.bf16.mxu1 %v10391_v0 }
 0x242   : > { %5564 = vmatmul.mubr.msk.bf16.gmra.mrb[56].mxu1 %vm1429_vm2, %v1427_v27 }
 0x243   : > { %1556 = vmatprep.mubr.bf16.mxu1 %v10391_v0 }
 0x24a   : > { %5565 = vmatmul.mubr.msk.bf16.gmra.mrb[60].mxu1 %vm1429_vm2, %v1428_v28 }
 0x2e5   : > { %v7442_v39 = vpop.f32.mrb[32].mxu1 }
 0x2e6   : > { %v7445_v40 = vpop.f32.mrb[33].mxu1 }
 0x2e7   : > { %v7447_v41 = vpop.f32.mrb[34].mxu1  ;;  %v1567_v53 = vmax.f32 %v7442_v39, %v7445_v40 }
 0x2e8   : > { %v7451_v57 = vpop.f32.mrb[35].mxu1 }
 0x2e9   : > { %1568 = vmax.xlane.f32.xlu1 %v1567_v53  ;;  %v1570_v8 = vmax.f32 %v7447_v41, %v7451_v57 }
 0x2ed   : > { %1571 = vmax.xlane.f32.xlu1 %v1570_v8  ;;  %v7456_v15 = vpop.f32.mrb[36].mxu1 }
 0x2ee   : > { %v7459_v22 = vpop.f32.mrb[37].mxu1 }
 0x2ef   : > { %v7461_v27 = vpop.f32.mrb[38].mxu1  ;;  %v1573_v28 = vmax.f32 %v7456_v15, %v7459_v22 }
 0x2f0   : > { %v7465_v29 = vpop.f32.mrb[39].mxu1 }
 0x2f1   : > { %1574 = vmax.xlane.f32.xlu0 %v1573_v28  ;;  %v1576_v31 = vmax.f32 %v7461_v27, %v7465_v29 }
 0x2f3   : > { %1577 = vmax.xlane.f32.xlu1 %v1576_v31 }
 0x2f5   : > { %v7470_v32 = vpop.f32.mrb[40].mxu1 }
 0x2f6   : > { %v7473_v33 = vpop.f32.mrb[41].mxu1 }
 0x2f7   : > { %v7475_v34 = vpop.f32.mrb[42].mxu1  ;;  %v1579_v35 = vmax.f32 %v7470_v32, %v7473_v33 }
 0x2f8   : > { %v7479_v36 = vpop.f32.mrb[43].mxu1 }
 0x2f9   : > { %1580 = vmax.xlane.f32.xlu1 %v1579_v35  ;;  %v1582_v37 = vmax.f32 %v7475_v34, %v7479_v36  ;;  %v5896_v35 = vld [vmem:[#allocation7 + $0x78] sm:$0xff]  }
 0x2fa   : > { %5509 = vmatmul.mubr.msk.bf16.gmra.mrb[60].mxu0 %vm552_vm1, %v5896_v35 }
 0x2fb   : > { %848 = vmatprep.mubr.bf16.mxu0 %v10391_v0 }
 0x2fd   : > { %1583 = vmax.xlane.f32.xlu1 %v1582_v37  ;;  %v7483_v53 = vpop.f32.mrb[44].mxu1 }
 0x2fe   : > { %v7486_v1 = vpop.f32.mrb[45].mxu1 }
 0x2ff   : > { %v7489_v8 = vpop.f32.mrb[46].mxu1  ;;  %v1585_v28 = vmax.f32 %v7483_v53, %v7486_v1 }
 0x300   : > { %v7493_v30 = vpop.f32.mrb[47].mxu1 }
 0x301   : > { %1586 = vmax.xlane.f32.xlu1 %v1585_v28  ;;  %v1588_v31 = vmax.f32 %v7489_v8, %v7493_v30 }
 0x305   : > { %1589 = vmax.xlane.f32.xlu1 %v1588_v31  ;;  %v7497_v37 = vpop.f32.mrb[48].mxu1  ;;  %v5897_v31 = vld [vmem:[#allocation7 + $0x80] sm:$0xff]  }
 0x306   : > { %v7500_v38 = vpop.f32.mrb[49].mxu1  ;;  %5510 = vmatmul.mubr.msk.bf16.gmra.mrb[64].mxu0 %vm552_vm1, %v5897_v31 }
 0x307   : > { %v7503_v24 = vpop.f32.mrb[50].mxu1  ;;  %v1591_v26 = vmax.f32 %v7497_v37, %v7500_v38  ;;  %858 = vmatprep.mubr.bf16.mxu0 %v10391_v0 }
 0x308   : > { %v7507_v17 = vpop.f32.mrb[51].mxu1 }
 0x309   : > { %1592 = vmax.xlane.f32.xlu1 %v1591_v26  ;;  %v1594_v28 = vmax.f32 %v7503_v24, %v7507_v17 }
 0x30d   : > { %1595 = vmax.xlane.f32.xlu1 %v1594_v28  ;;  %v7511_v19 = vpop.f32.mrb[52].mxu1  ;;  %v5898_v28 = vld [vmem:[#allocation7 + $0x88] sm:$0xff]  }
 0x30e   : > { %v7514_v35 = vpop.f32.mrb[53].mxu1  ;;  %5511 = vmatmul.mubr.msk.bf16.gmra.mrb[68].mxu0 %vm552_vm1, %v5898_v28 }
 0x30f   : > { %v7517_v10 = vpop.f32.mrb[54].mxu1  ;;  %v1597_v12 = vmax.f32 %v7511_v19, %v7514_v35  ;;  %868 = vmatprep.mubr.bf16.mxu0 %v10391_v0 }
 0x310   : > { %v7521_v3 = vpop.f32.mrb[55].mxu1 }
 0x311   : > { %1598 = vmax.xlane.f32.xlu1 %v1597_v12  ;;  %v1600_v26 = vmax.f32 %v7517_v10, %v7521_v3 }
 0x315   : > { %1601 = vmax.xlane.f32.xlu1 %v1600_v26  ;;  %v7525_v5 = vpop.f32.mrb[56].mxu1 }
 0x316   : > { %v7528_v31 = vpop.f32.mrb[57].mxu1 }
 0x317   : > { %v7531_v59 = vpop.f32.mrb[58].mxu1  ;;  %v1603_v61 = vmax.f32 %v7525_v5, %v7528_v31 }
 0x318   : > { %v7535_v51 = vpop.f32.mrb[59].mxu1 }
 0x319   : > { %1604 = vmax.xlane.f32.xlu1 %v1603_v61  ;;  %v1606_v12 = vmax.f32 %v7531_v59, %v7535_v51  ;;  %v7551_v61 = vpop.f32.mrb[8].mxu0 }
 0x31a   : > { %v7553_v20 = vpop.f32.mrb[9].mxu0 }
 0x31b   : > { %1607 = vmax.xlane.f32.xlu0 %v1606_v12  ;;  %v7555_v12 = vpop.f32.mrb[10].mxu0 }
 0x31c   : > { %v7559_v21 = vpop.f32.mrb[11].mxu0 }
 0x31d   : > { %v7539_v26 = vpop.f32.mrb[60].mxu1 }
 0x31e   : > { %v7541_v54 = vpop.f32.mrb[61].mxu1 }
 0x31f   : > { %v7543_v28 = vpop.f32.mrb[62].mxu1  ;;  %v1609_v0 = vmax.f32 %v7539_v26, %v7541_v54 }
 0x320   : > { %v7547_v45 = vpop.f32.mrb[63].mxu1 }
 0x321   : > { %1610 = vmax.xlane.f32.xlu1 %v1609_v0  ;;  %v1612_v47 = vmax.f32 %v7543_v28, %v7547_v45 }
 0x323   : > { %1613 = vmax.xlane.f32.xlu0 %v1612_v47  ;;  %v7565_v47 = vpop.f32.mrb[12].mxu0 }
 0x324   : > { %v7567_v14 = vpop.f32.mrb[13].mxu0 }
 0x325   : > { %v7569_v9 = vpop.f32.mrb[14].mxu0 }
 0x326   : > { %v7573_v11 = vpop.f32.mrb[15].mxu0 }
 0x327   : > { %v7581_v23 = vpop.f32.mrb[16].mxu0 }
 0x328   : > { %10540 = vst [vmem:[#allocation40_spill] sm:$0xff] %v7581_v23  ;;  %v7583_v63 = vpop.f32.mrb[17].mxu0 }
 0x329   : > { %10541 = vst [vmem:[#allocation41_spill] sm:$0xff] %v7583_v63 }
 0x376   : > { %v1569_v13 = vpop.xlane.xlu1 %1568 }
 0x377   : > { %v1615_v0 = vsub.f32 %v7442_v39, %v1569_v13  ;;  %v1616_v16 = vsub.f32 %v7445_v40, %v1569_v13 }
 0x379   : > { %v1647_v18 = vmul.f32 1.442695, %v1615_v0  ;;  %v1649_v6 = vmul.f32 1.442695, %v1616_v16 }
 0x37a   : > { %v1572_v7 = vpop.xlane.xlu1 %1571 }
 0x37b   : > { %5929 = vpow2.f32 %v1647_v18  ;;  %v1617_v25 = vsub.f32 %v7447_v41, %v1572_v7  ;;  %v1618_v39 = vsub.f32 %v7451_v57, %v1572_v7 }
 0x37c   : > { %5931 = vpow2.f32 %v1649_v6 }
 0x37d   : > { %v1651_v40 = vmul.f32 1.442695, %v1617_v25  ;;  %v1653_v0 = vmul.f32 1.442695, %v1618_v39  ;;  %v7587_v25 = vpop.f32.mrb[18].mxu0 }
 0x37e   : > { %v1575_v16 = vpop.xlane.xlu0 %1574  ;;  %10542 = vst [vmem:[#allocation42_spill] sm:$0xff] %v7587_v25 }
 0x37f   : > { %5933 = vpow2.f32 %v1651_v40  ;;  %v1619_v62 = vsub.f32 %v7456_v15, %v1575_v16  ;;  %v1620_v2 = vsub.f32 %v7459_v22, %v1575_v16  ;;  %v7591_v15 = vpop.f32.mrb[19].mxu0 }
 0x380   : > { %5935 = vpow2.f32 %v1653_v0  ;;  %v1578_v18 = vpop.xlane.xlu1 %1577  ;;  %10543 = vst [vmem:[#allocation43_spill] sm:$0xff] %v7591_v15 }
 0x381   : > { %v1655_v41 = vmul.f32 1.442695, %v1619_v62  ;;  %v1657_v7 = vmul.f32 1.442695, %v1620_v2  ;;  %v1621_v57 = vsub.f32 %v7461_v27, %v1578_v18  ;;  %v1622_v6 = vsub.f32 %v7465_v29, %v1578_v18 }
 0x383   : > { %5937 = vpow2.f32 %v1655_v41  ;;  %v1659_v22 = vmul.f32 1.442695, %v1621_v57  ;;  %v1661_v40 = vmul.f32 1.442695, %v1622_v6  ;;  %v7603_v41 = vpop.f32.mrb[20].mxu0 }
 0x384   : > { %5939 = vpow2.f32 %v1657_v7  ;;  %10544 = vst [vmem:[#allocation44_spill] sm:$0xff] %v7603_v41  ;;  %v7605_v57 = vpop.f32.mrb[21].mxu0 }
 0x385   : > { %v7595_v62 = vpop.eup %5929  ;;  %5941 = vpow2.f32 %v1659_v22  ;;  %10545 = vst [vmem:[#allocation45_spill] sm:$0xff] %v7605_v57  ;;  %v7609_v22 = vpop.f32.mrb[22].mxu0 }
 0x386   : > { %v7597_v2 = vpop.eup %5931  ;;  %5943 = vpow2.f32 %v1661_v40  ;;  %v1581_v27 = vpop.xlane.xlu1 %1580  ;;  %10546 = vst [vmem:[#allocation46_spill] sm:$0xff] %v7609_v22 }
 0x387   : > { %v1623_v29 = vsub.f32 %v7470_v32, %v1581_v27  ;;  %v1624_v16 = vsub.f32 %v7473_v33, %v1581_v27  ;;  %v1711_v18 = vadd.f32 %v7597_v2, %v7595_v62  ;;  %v7615_v33 = vpop.f32.mrb[23].mxu0 }
 0x388   : > { %10547 = vst [vmem:[#allocation47_spill] sm:$0xff] %v7615_v33 }
 0x389   : > { %v7607_v6 = vpop.eup %5933  ;;  %v1663_v7 = vmul.f32 1.442695, %v1623_v29  ;;  %v1665_v39 = vmul.f32 1.442695, %v1624_v16  ;;  %1712 = vadd.xlane.f32.xlu1 %v1711_v18 }
 0x38a   : > { %v7611_v40 = vpop.eup %5935  ;;  %v1584_v0 = vpop.xlane.xlu1 %1583 }
 0x38b   : > { %5945 = vpow2.f32 %v1663_v7  ;;  %v1625_v27 = vsub.f32 %v7475_v34, %v1584_v0  ;;  %v1626_v13 = vsub.f32 %v7479_v36, %v1584_v0  ;;  %v1714_v29 = vadd.f32 %v7611_v40, %v7607_v6  ;;  %v7633_v0 = vpop.f32.mrb[24].mxu0 }
 0x38c   : > { %5947 = vpow2.f32 %v1665_v39  ;;  %10548 = vst [vmem:[#allocation48_spill] sm:$0xff] %v7633_v0 }
 0x38d   : > { %v7623_v18 = vpop.eup %5937  ;;  %v1667_v4 = vmul.f32 1.442695, %v1625_v27  ;;  %v1669_v55 = vmul.f32 1.442695, %v1626_v13  ;;  %1715 = vadd.xlane.f32.xlu0 %v1714_v29  ;;  %v7637_v13 = vpop.f32.mrb[25].mxu0 }
 0x38e   : > { %v7625_v32 = vpop.eup %5939  ;;  %v1587_v58 = vpop.xlane.xlu1 %1586  ;;  %10549 = vst [vmem:[#allocation49_spill] sm:$0xff] %v7637_v13 }
 0x38f   : > { %v7627_v7 = vpop.eup %5941  ;;  %5949 = vpow2.f32 %v1667_v4  ;;  %v1627_v34 = vsub.f32 %v7483_v53, %v1587_v58  ;;  %v1628_v36 = vsub.f32 %v7486_v1, %v1587_v58  ;;  %v1717_v39 = vadd.f32 %v7625_v32, %v7623_v18  ;;  %v7641_v56 = vpop.f32.mrb[26].mxu0 }
 0x390   : > { %v7635_v16 = vpop.eup %5943  ;;  %5951 = vpow2.f32 %v1669_v55  ;;  %10550 = vst [vmem:[#allocation50_spill] sm:$0xff] %v7641_v56  ;;  %v7645_v1 = vpop.f32.mrb[27].mxu0 }
 0x391   : > { %v1671_v27 = vmul.f32 1.442695, %v1627_v34  ;;  %v1673_v29 = vmul.f32 1.442695, %v1628_v36  ;;  %1718 = vadd.xlane.f32.xlu1 %v1717_v39  ;;  %v1720_v4 = vadd.f32 %v7635_v16, %v7627_v7  ;;  %10551 = vst [vmem:[#allocation51_spill] sm:$0xff] %v7645_v1 }
 0x392   : > { %v1590_v53 = vpop.xlane.xlu1 %1589 }
 0x393   : > { %5953 = vpow2.f32 %v1671_v27  ;;  %v1629_v60 = vsub.f32 %v7489_v8, %v1590_v53  ;;  %v1630_v55 = vsub.f32 %v7493_v30, %v1590_v53  ;;  %1721 = vadd.xlane.f32.xlu0 %v1720_v4  ;;  %v7659_v30 = vpop.f32.mrb[28].mxu0 }
 0x394   : > { %5955 = vpow2.f32 %v1673_v29  ;;  %10552 = vst [vmem:[#allocation52_spill] sm:$0xff] %v7659_v30  ;;  %v7661_v4 = vpop.f32.mrb[29].mxu0 }
 0x395   : > { %v7651_v36 = vpop.eup %5945  ;;  %v1675_v39 = vmul.f32 1.442695, %v1629_v60  ;;  %v1677_v41 = vmul.f32 1.442695, %v1630_v55  ;;  %10553 = vst [vmem:[#allocation53_spill] sm:$0xff] %v7661_v4  ;;  %v7667_v34 = vpop.f32.mrb[30].mxu0 }
 0x396   : > { %v7653_v22 = vpop.eup %5947  ;;  %v1593_v57 = vpop.xlane.xlu1 %1592  ;;  %10554 = vst [vmem:[#allocation54_spill] sm:$0xff] %v7667_v34 }
 0x397   : > { %5957 = vpow2.f32 %v1675_v39  ;;  %v1631_v58 = vsub.f32 %v7497_v37, %v1593_v57  ;;  %v1632_v27 = vsub.f32 %v7500_v38, %v1593_v57  ;;  %v1723_v8 = vadd.f32 %v7653_v22, %v7651_v36  ;;  %v7673_v57 = vpop.f32.mrb[31].mxu0 }
 0x398   : > { %5959 = vpow2.f32 %v1677_v41  ;;  %10555 = vst [vmem:[#allocation55_spill] sm:$0xff] %v7673_v57 }
 0x399   : > { %v7663_v29 = vpop.eup %5949  ;;  %v1679_v60 = vmul.f32 1.442695, %v1631_v58  ;;  %v1681_v53 = vmul.f32 1.442695, %v1632_v27  ;;  %1724 = vadd.xlane.f32.xlu1 %v1723_v8  ;;  %v7687_v58 = vpop.f32.mrb[32].mxu0 }
 0x39a   : > { %v7665_v55 = vpop.eup %5951  ;;  %v1596_v39 = vpop.xlane.xlu1 %1595  ;;  %10556 = vst [vmem:[#allocation56_spill] sm:$0xff] %v7687_v58 }
 0x39b   : > { %5961 = vpow2.f32 %v1679_v60  ;;  %v1633_v37 = vsub.f32 %v7503_v24, %v1596_v39  ;;  %v1634_v38 = vsub.f32 %v7507_v17, %v1596_v39  ;;  %v1726_v41 = vadd.f32 %v7665_v55, %v7663_v29 }
 0x39c   : > { %5963 = vpow2.f32 %v1681_v53 }
 0x39d   : > { %v7679_v8 = vpop.eup %5953  ;;  %v1683_v0 = vmul.f32 1.442695, %v1633_v37  ;;  %v1685_v60 = vmul.f32 1.442695, %v1634_v38  ;;  %1727 = vadd.xlane.f32.xlu0 %v1726_v41  ;;  %v7691_v38 = vpop.f32.mrb[33].mxu0 }
 0x39e   : > { %v7681_v24 = vpop.eup %5955  ;;  %v1599_v17 = vpop.xlane.xlu1 %1598  ;;  %10557 = vst [vmem:[#allocation57_spill] sm:$0xff] %v7691_v38 }
 0x39f   : > { %5965 = vpow2.f32 %v1683_v0  ;;  %v1635_v39 = vsub.f32 %v7511_v19, %v1599_v17  ;;  %v1636_v56 = vsub.f32 %v7514_v35, %v1599_v17  ;;  %v1729_v53 = vadd.f32 %v7681_v24, %v7679_v8  ;;  %v7695_v34 = vpop.f32.mrb[34].mxu0 }
 0x3a0   : > { %5967 = vpow2.f32 %v1685_v60  ;;  %10558 = vst [vmem:[#allocation58_spill] sm:$0xff] %v7695_v34  ;;  %v7701_v17 = vpop.f32.mrb[35].mxu0 }
 0x3a1   : > { %v7689_v27 = vpop.eup %5957  ;;  %v1687_v30 = vmul.f32 1.442695, %v1635_v39  ;;  %v1689_v37 = vmul.f32 1.442695, %v1636_v56  ;;  %1730 = vadd.xlane.f32.xlu1 %v1729_v53  ;;  %10559 = vst [vmem:[#allocation59_spill] sm:$0xff] %v7701_v17  ;;  %v7715_v56 = vpop.f32.mrb[36].mxu0 }
 0x3a2   : > { %v7693_v41 = vpop.eup %5959  ;;  %v1602_v0 = vpop.xlane.xlu1 %1601  ;;  %10560 = vst [vmem:[#allocation60_spill] sm:$0xff] %v7715_v56 }
 0x3a3   : > { %5969 = vpow2.f32 %v1687_v30  ;;  %v1637_v19 = vsub.f32 %v7517_v10, %v1602_v0  ;;  %v1638_v35 = vsub.f32 %v7521_v3, %v1602_v0  ;;  %v1732_v60 = vadd.f32 %v7693_v41, %v7689_v27  ;;  %v7717_v58 = vpop.f32.mrb[37].mxu0 }
 0x3a4   : > { %5971 = vpow2.f32 %v1689_v37  ;;  %10561 = vst [vmem:[#allocation61_spill] sm:$0xff] %v7717_v58 }
 0x3a5   : > { %v7707_v53 = vpop.eup %5961  ;;  %v1691_v4 = vmul.f32 1.442695, %v1637_v19  ;;  %v1693_v30 = vmul.f32 1.442695, %v1638_v35  ;;  %1733 = vadd.xlane.f32.xlu0 %v1732_v60 }
 0x3a6   : > { %v7709_v10 = vpop.eup %5963  ;;  %v1605_v3 = vpop.xlane.xlu1 %1604 }
 0x3a7   : > { %5973 = vpow2.f32 %v1691_v4  ;;  %v1639_v0 = vsub.f32 %v7525_v5, %v1605_v3  ;;  %v1640_v57 = vsub.f32 %v7528_v31, %v1605_v3  ;;  %v1735_v37 = vadd.f32 %v7709_v10, %v7707_v53  ;;  %v7725_v31 = vpop.f32.mrb[38].mxu0 }
 0x3a8   : > { %5975 = vpow2.f32 %v1693_v30  ;;  %v1608_v39 = vpop.xlane.xlu0 %1607  ;;  %10562 = vst [vmem:[#allocation62_spill] sm:$0xff] %v7725_v31  ;;  %v7729_v17 = vpop.f32.mrb[39].mxu0 }
 0x3a9   : > { %v7719_v19 = vpop.eup %5965  ;;  %v1695_v35 = vmul.f32 1.442695, %v1639_v0  ;;  %v1697_v60 = vmul.f32 1.442695, %v1640_v57  ;;  %v1641_v34 = vsub.f32 %v7531_v59, %v1608_v39  ;;  %v1642_v4 = vsub.f32 %v7535_v51, %v1608_v39  ;;  %1736 = vadd.xlane.f32.xlu1 %v1735_v37  ;;  %10563 = vst [vmem:[#allocation63_spill] sm:$0xff] %v7729_v17 }
 0x3aa   : > { %v7723_v5 = vpop.eup %5967 }
 0x3ab   : > { %5977 = vpow2.f32 %v1695_v35  ;;  %v1699_v3 = vmul.f32 1.442695, %v1641_v34  ;;  %v1701_v38 = vmul.f32 1.442695, %v1642_v4  ;;  %v1738_v30 = vadd.f32 %v7723_v5, %v7719_v19 }
 0x3ac   : > { %5979 = vpow2.f32 %v1697_v60  ;;  %v7743_v60 = vpop.f32.mrb[40].mxu0 }
 0x3ad   : > { %v7735_v59 = vpop.eup %5969  ;;  %5981 = vpow2.f32 %v1699_v3  ;;  %1739 = vadd.xlane.f32.xlu0 %v1738_v30  ;;  %10564 = vst [vmem:[#allocation64_spill] sm:$0xff] %v7743_v60  ;;  %v7745_v57 = vpop.f32.mrb[41].mxu0 }
 0x3ae   : > { %v7737_v39 = vpop.eup %5971  ;;  %5983 = vpow2.f32 %v1701_v38  ;;  %v1611_v34 = vpop.xlane.xlu1 %1610  ;;  %10565 = vst [vmem:[#allocation65_spill] sm:$0xff] %v7745_v57 }
 0x3af   : > { %v1643_v0 = vsub.f32 %v7539_v26, %v1611_v34  ;;  %v1644_v37 = vsub.f32 %v7541_v54, %v1611_v34  ;;  %v1741_v35 = vadd.f32 %v7737_v39, %v7735_v59  ;;  %v7753_v54 = vpop.f32.mrb[42].mxu0 }
 0x3b0   : > { %v1614_v4 = vpop.xlane.xlu0 %1613  ;;  %10566 = vst [vmem:[#allocation66_spill] sm:$0xff] %v7753_v54  ;;  %v7757_v17 = vpop.f32.mrb[43].mxu0 }
 0x3b1   : > { %v7747_v51 = vpop.eup %5973  ;;  %v1703_v3 = vmul.f32 1.442695, %v1643_v0  ;;  %v1705_v30 = vmul.f32 1.442695, %v1644_v37  ;;  %1742 = vadd.xlane.f32.xlu1 %v1741_v35  ;;  %v1645_v38 = vsub.f32 %v7543_v28, %v1614_v4  ;;  %v1646_v56 = vsub.f32 %v7547_v45, %v1614_v4  ;;  %10567 = vst [vmem:[#allocation67_spill] sm:$0xff] %v7757_v17  ;;  %v7771_v4 = vpop.f32.mrb[44].mxu0 }
 0x3b2   : > { %v7751_v26 = vpop.eup %5975  ;;  %10568 = vst [vmem:[#allocation68_spill] sm:$0xff] %v7771_v4 }
 0x3b3   : > { %5985 = vpow2.f32 %v1703_v3  ;;  %v1707_v34 = vmul.f32 1.442695, %v1645_v38  ;;  %v1709_v31 = vmul.f32 1.442695, %v1646_v56  ;;  %v1744_v58 = vadd.f32 %v7751_v26, %v7747_v51 }
 0x3b4   : > { %5987 = vpow2.f32 %v1705_v30  ;;  %v7775_v30 = vpop.f32.mrb[45].mxu0 }
 0x3b5   : > { %v7763_v45 = vpop.eup %5977  ;;  %5989 = vpow2.f32 %v1707_v34  ;;  %1745 = vadd.xlane.f32.xlu0 %v1744_v58  ;;  %10569 = vst [vmem:[#allocation69_spill] sm:$0xff] %v7775_v30  ;;  %v7779_v34 = vpop.f32.mrb[46].mxu0 }
 0x3b6   : > { %v7765_v37 = vpop.eup %5979  ;;  %5991 = vpow2.f32 %v1709_v31  ;;  %10570 = vst [vmem:[#allocation70_spill] sm:$0xff] %v7779_v34  ;;  %v7783_v31 = vpop.f32.mrb[47].mxu0 }
 0x3b7   : > { %v7767_v56 = vpop.eup %5981  ;;  %v1747_v35 = vadd.f32 %v7765_v37, %v7763_v45  ;;  %10571 = vst [vmem:[#allocation71_spill] sm:$0xff] %v7783_v31  ;;  %v7795_v57 = vpop.f32.mrb[48].mxu0 }
 0x3b8   : > { %v7773_v3 = vpop.eup %5983  ;;  %10572 = vst [vmem:[#allocation72_spill] sm:$0xff] %v7795_v57  ;;  %v7799_v17 = vpop.f32.mrb[49].mxu0 }
 0x3b9   : > { %1748 = vadd.xlane.f32.xlu1 %v1747_v35  ;;  %v1750_v38 = vadd.f32 %v7773_v3, %v7767_v56  ;;  %10573 = vst [vmem:[#allocation73_spill] sm:$0xff] %v7799_v17  ;;  %v7803_v0 = vpop.f32.mrb[50].mxu0 }
 0x3ba   : > { %10574 = vst [vmem:[#allocation74_spill] sm:$0xff] %v7803_v0  ;;  %v7807_v34 = vpop.f32.mrb[51].mxu0 }
 0x3bb   : > { %1751 = vadd.xlane.f32.xlu0 %v1750_v38  ;;  %10575 = vst [vmem:[#allocation75_spill] sm:$0xff] %v7807_v34  ;;  %v7811_v31 = vpop.f32.mrb[52].mxu0  ;;  %v10588_v34 = vpack.c.bf16 %v7332_v46, %v7326_v43 }
 0x3bc   : > { %10576 = vst [vmem:[#allocation76_spill] sm:$0xff] %v7811_v31  ;;  %v7813_v13 = vpop.f32.mrb[53].mxu0 }
 0x3bd   : > { %v7787_v28 = vpop.eup %5985  ;;  %10577 = vst [vmem:[#allocation77_spill] sm:$0xff] %v7813_v13  ;;  %v7815_v1 = vpop.f32.mrb[54].mxu0 }
 0x3be   : > { %v7789_v60 = vpop.eup %5987  ;;  %10578 = vst [vmem:[#allocation78_spill] sm:$0xff] %v7815_v1  ;;  %v7819_v33 = vpop.f32.mrb[55].mxu0 }
 0x3bf   : > { %v7791_v54 = vpop.eup %5989  ;;  %v1753_v35 = vadd.f32 %v7789_v60, %v7787_v28  ;;  %10579 = vst [vmem:[#allocation79_spill] sm:$0xff] %v7819_v33  ;;  %v7823_v4 = vpop.f32.mrb[56].mxu0 }
 0x3c0   : > { %v7797_v38 = vpop.eup %5991  ;;  %10580 = vst [vmem:[#allocation80_spill] sm:$0xff] %v7823_v4  ;;  %v7825_v57 = vpop.f32.mrb[57].mxu0 }
 0x3c1   : > { %1754 = vadd.xlane.f32.xlu1 %v1753_v35  ;;  %v1756_v58 = vadd.f32 %v7797_v38, %v7791_v54  ;;  %10581 = vst [vmem:[#allocation81_spill] sm:$0xff] %v7825_v57  ;;  %v7827_v0 = vpop.f32.mrb[58].mxu0 }
 0x3c2   : > { %10582 = vst [vmem:[#allocation82_spill] sm:$0xff] %v7827_v0  ;;  %v7831_v17 = vpop.f32.mrb[59].mxu0 }
 0x3c3   : > { %1757 = vadd.xlane.f32.xlu0 %v1756_v58  ;;  %10583 = vst [vmem:[#allocation83_spill] sm:$0xff] %v7831_v17 }
 0x3cd   : > { %v7835_v35 = vpop.f32.mrb[60].mxu0 }
 0x3ce   : > { %10584 = vst [vmem:[#allocation84_spill] sm:$0xff] %v7835_v35  ;;  %v7837_v31 = vpop.f32.mrb[61].mxu0 }
 0x3cf   : > { %10585 = vst [vmem:[#allocation85_spill] sm:$0xff] %v7837_v31  ;;  %v7839_v1 = vpop.f32.mrb[62].mxu0 }
 0x3d0   : > { %10586 = vst [vmem:[#allocation86_spill] sm:$0xff] %v7839_v1  ;;  %v7843_v13 = vpop.f32.mrb[63].mxu0 }
 0x3d1   : > { %10587 = vst [vmem:[#allocation87_spill] sm:$0xff] %v7843_v13 }
 0x3d9   : > { %v7847_v30 = vpop.f32.mrb[64].mxu0 }
 0x3da   : > { %v852_v4 = vpop.f32.mrb[65].mxu0 }
 0x3db   : > { %v7849_v0 = vpop.f32.mrb[66].mxu0 }
 0x3dc   : > { %v856_v57 = vpop.f32.mrb[67].mxu0 }
 0x3dd   : > { %v1366_v17 = vpack.c.bf16 %v856_v57, %v852_v4 }
 0x3df   : > { %1855 = vmatprep.mubr.bf16.mxu1 %v1366_v17  ;;  %v10589_v17 = vpack.c.bf16 %v7328_v44, %v7324_v42 }
 0x3e1   : > { %v7853_v23 = vpop.f32.mrb[68].mxu0 }
 0x3e2   : > { %v7855_v25 = vpop.f32.mrb[69].mxu0 }
 0x3e3   : > { %v7857_v58 = vpop.f32.mrb[70].mxu0 }
 0x3e4   : > { %v7861_v35 = vpop.f32.mrb[71].mxu0 }
 0x3ee   : > { %1874 = vxpose.xlu1.c.b16.start [1/2] (short) %v10588_v34, 128 }
 0x3f2   : > { %1875 = vxpose.xlu1.c.b16.end [2/2] (short) %v10589_v17, 128 }
 0x416   : > { %v1713_v57 = vpop.xlane.xlu1 %1712 }
 0x417   : > { %5993 = vrcp.f32 %v1713_v57 }
 0x41a   : > { %v1716_v4 = vpop.xlane.xlu0 %1715 }
 0x41b   : > { %5995 = vrcp.f32 %v1716_v4 }
 0x41e   : > { %v1719_v31 = vpop.xlane.xlu1 %1718 }
 0x41f   : > { %5997 = vrcp.f32 %v1719_v31 }
 0x420   : > { %v1722_v33 = vpop.xlane.xlu0 %1721 }
 0x421   : > { %5999 = vrcp.f32 %v1722_v33  ;;  %v5994_v13 = vpop.eup %5993 }
 0x422   : > { %v1776_v1 = vmul.f32 %v5994_v13, %v7597_v2  ;;  %v1775_v46 = vmul.f32 %v5994_v13, %v7595_v62 }
 0x425   : > { %v5996_v63 = vpop.eup %5995 }
 0x426   : > { %v1725_v15 = vpop.xlane.xlu1 %1724  ;;  %v1778_v43 = vmul.f32 %v5996_v63, %v7611_v40  ;;  %v1777_v42 = vmul.f32 %v5996_v63, %v7607_v6 }
 0x427   : > { %6001 = vrcp.f32 %v1725_v15 }
 0x428   : > { %v1808_v44 = vpack.c.bf16 %v1778_v43, %v1776_v1  ;;  %v1807_v34 = vpack.c.bf16 %v1777_v42, %v1775_v46 }
 0x429   : > { %v5998_v17 = vpop.eup %5997 }
 0x42a   : > { %1823 = vmatprep.subr.bf16.mxu1 %v1808_v44  ;;  %v1728_v57 = vpop.xlane.xlu0 %1727  ;;  %v1780_v33 = vmul.f32 %v5998_v17, %v7625_v32  ;;  %v1779_v62 = vmul.f32 %v5998_v17, %v7623_v18 }
 0x42b   : > { %v6000_v31 = vpop.eup %5999  ;;  %6003 = vrcp.f32 %v1728_v57  ;;  %1824 = vmatpush1.bf16.xpose.msra.mxu1 %v1807_v34 }
 0x42c   : > { %v1782_v4 = vmul.f32 %v6000_v31, %v7635_v16  ;;  %v1781_v2 = vmul.f32 %v6000_v31, %v7627_v7 }
 0x42e   : > { %v1731_v40 = vpop.xlane.xlu1 %1730  ;;  %v1810_v48 = vpack.c.bf16 %v1782_v4, %v1780_v33  ;;  %v1809_v63 = vpack.c.bf16 %v1781_v2, %v1779_v62 }
 0x42f   : > { %6005 = vrcp.f32 %v1731_v40 }
 0x430   : > { %1825 = vmatprep.subr.bf16.mxu1 %v1810_v48 }
 0x431   : > { %v6002_v15 = vpop.eup %6001 }
 0x432   : > { %v1734_v6 = vpop.xlane.xlu0 %1733  ;;  %v1784_v43 = vmul.f32 %v6002_v15, %v7653_v22  ;;  %v1783_v16 = vmul.f32 %v6002_v15, %v7651_v36 }
 0x433   : > { %6007 = vrcp.f32 %v1734_v6  ;;  %1826 = vmatpush1.bf16.xpose.msra.mxu1 %v1809_v63 }
 0x435   : > { %v6004_v13 = vpop.eup %6003 }
 0x436   : > { %v1737_v1 = vpop.xlane.xlu1 %1736  ;;  %v1786_v32 = vmul.f32 %v6004_v13, %v7665_v55  ;;  %v1785_v7 = vmul.f32 %v6004_v13, %v7663_v29 }
 0x437   : > { %6009 = vrcp.f32 %v1737_v1 }
 0x438   : > { %v1812_v46 = vpack.c.bf16 %v1786_v32, %v1784_v43  ;;  %v1811_v42 = vpack.c.bf16 %v1785_v7, %v1783_v16 }
 0x439   : > { %v6006_v18 = vpop.eup %6005 }
 0x43a   : > { %1827 = vmatprep.subr.bf16.mxu1 %v1812_v46  ;;  %v1740_v48 = vpop.xlane.xlu0 %1739  ;;  %v1788_v17 = vmul.f32 %v6006_v18, %v7681_v24  ;;  %v1787_v55 = vmul.f32 %v6006_v18, %v7679_v8 }
 0x43b   : > { %6011 = vrcp.f32 %v1740_v48  ;;  %1828 = vmatpush1.bf16.xpose.msra.mxu1 %v1811_v42 }
 0x43d   : > { %v6008_v44 = vpop.eup %6007 }
 0x43e   : > { %v1743_v34 = vpop.xlane.xlu1 %1742  ;;  %v1790_v22 = vmul.f32 %v6008_v44, %v7693_v41  ;;  %v1789_v36 = vmul.f32 %v6008_v44, %v7689_v27 }
 0x43f   : > { %6013 = vrcp.f32 %v1743_v34 }
 0x440   : > { %v1814_v57 = vpack.c.bf16 %v1790_v22, %v1788_v17  ;;  %v1813_v29 = vpack.c.bf16 %v1789_v36, %v1787_v55 }
 0x441   : > { %v6010_v33 = vpop.eup %6009 }
 0x442   : > { %1829 = vmatprep.subr.bf16.mxu1 %v1814_v57  ;;  %v1746_v31 = vpop.xlane.xlu0 %1745  ;;  %v1792_v40 = vmul.f32 %v6010_v33, %v7709_v10  ;;  %v1791_v41 = vmul.f32 %v6010_v33, %v7707_v53 }
 0x443   : > { %6015 = vrcp.f32 %v1746_v31  ;;  %1830 = vmatpush1.bf16.xpose.msra.mxu1 %v1813_v29 }
 0x445   : > { %v6012_v4 = vpop.eup %6011 }
 0x446   : > { %v1749_v2 = vpop.xlane.xlu1 %1748  ;;  %v1794_v24 = vmul.f32 %v6012_v4, %v7723_v5  ;;  %v1793_v8 = vmul.f32 %v6012_v4, %v7719_v19 }
 0x447   : > { %6017 = vrcp.f32 %v1749_v2 }
 0x448   : > { %v1752_v27 = vpop.xlane.xlu0 %1751  ;;  %v1816_v62 = vpack.c.bf16 %v1794_v24, %v1792_v40  ;;  %v1815_v63 = vpack.c.bf16 %v1793_v8, %v1791_v41 }
 0x449   : > { %6019 = vrcp.f32 %v1752_v27  ;;  %v6014_v6 = vpop.eup %6013 }
 0x44a   : > { %1831 = vmatprep.subr.bf16.mxu1 %v1816_v62  ;;  %v1796_v1 = vmul.f32 %v6014_v6, %v7737_v39  ;;  %v1795_v5 = vmul.f32 %v6014_v6, %v7735_v59 }
 0x44b   : > { %1832 = vmatpush1.bf16.xpose.msra.mxu1 %v1815_v63 }
 0x44d   : > { %v6016_v15 = vpop.eup %6015 }
 0x44e   : > { %v1755_v13 = vpop.xlane.xlu1 %1754  ;;  %v1798_v10 = vmul.f32 %v6016_v15, %v7751_v26  ;;  %v1797_v53 = vmul.f32 %v6016_v15, %v7747_v51 }
 0x44f   : > { %6021 = vrcp.f32 %v1755_v13 }
 0x450   : > { %v1758_v19 = vpop.xlane.xlu0 %1757  ;;  %v1818_v43 = vpack.c.bf16 %v1798_v10, %v1796_v1  ;;  %v1817_v32 = vpack.c.bf16 %v1797_v53, %v1795_v5 }
 0x451   : > { %v6018_v16 = vpop.eup %6017  ;;  %6023 = vrcp.f32 %v1758_v19 }
 0x452   : > { %1833 = vmatprep.subr.bf16.mxu1 %v1818_v43  ;;  %v1800_v46 = vmul.f32 %v6018_v16, %v7765_v37  ;;  %v1799_v59 = vmul.f32 %v6018_v16, %v7763_v45  ;;  %v10590_v45 = vpack.c.bf16 %v7559_v21, %v7553_v20  ;;  %v10595_v20 = vpack.c.bf16 %v7569_v9, %v7565_v47 }
 0x453   : > { %v6020_v7 = vpop.eup %6019  ;;  %1834 = vmatpush1.bf16.xpose.msra.mxu1 %v1817_v32  ;;  %v10596_v21 = vpack.c.bf16 %v7857_v58, %v7853_v23 }
 0x454   : > { %v1802_v42 = vmul.f32 %v6020_v7, %v7773_v3  ;;  %v1801_v39 = vmul.f32 %v6020_v7, %v7767_v56  ;;  %v10591_v56 = vpack.c.bf16 %v7849_v0, %v7847_v30  ;;  %v10597_v0 = vmov 0  }
 0x456   : > { %v1820_v26 = vpack.c.bf16 %v1802_v42, %v1800_v46  ;;  %v1819_v48 = vpack.c.bf16 %v1801_v39, %v1799_v59 }
 0x458   : > { %1835 = vmatprep.subr.bf16.mxu1 %v1820_v26 }
 0x459   : > { %v6022_v51 = vpop.eup %6021 }
 0x45a   : > { %v1804_v44 = vmul.f32 %v6022_v51, %v7789_v60  ;;  %v1803_v37 = vmul.f32 %v6022_v51, %v7787_v28  ;;  %v10592_v60 = vpack.c.bf16 %v7555_v12, %v7551_v61  ;;  %v10594_v28 = vpack.c.bf16 %v7573_v11, %v7567_v14  ;;  %v1882_v61 = vpop.trf.xlu1 }
 0x45b   : > { %v6024_v18 = vpop.eup %6023  ;;  %1836 = vmatpush1.bf16.xpose.msra.mxu1 %v1819_v48 }
 0x45c   : > { %v1806_v34 = vmul.f32 %v6024_v18, %v7797_v38  ;;  %v1805_v17 = vmul.f32 %v6024_v18, %v7791_v54  ;;  %v10593_v54 = vpack.c.bf16 %v7861_v35, %v7855_v25 }
 0x45e   : > { %v1822_v22 = vpack.c.bf16 %v1806_v34, %v1804_v44  ;;  %v1821_v3 = vpack.c.bf16 %v1805_v17, %v1803_v37  ;;  %v1883_v12 = vpop.trf.xlu1  ;;  %v5899_v34 = vld [vmem:[#allocation7 + $0x90] sm:$0xff]  }
 0x45f   : > { %5512 = vmatmul.mubr.msk.bf16.gmra.mrb[72].mxu0 %vm552_vm1, %v5899_v34 }
 0x460   : > { %1837 = vmatprep.subr.bf16.mxu1 %v1822_v22  ;;  %878 = vmatprep.mubr.bf16.mxu0 %v10597_v0 }
 0x462   : > { %v1884_v11 = vpop.trf.xlu1 }
 0x463   : > { %1838 = vmatpush1.bf16.xpose.msra.mxu1 %v1821_v3 }
 0x464   : > { %1914 = vmatprep.subr.bf16.mxu1 %v10590_v45 }
 0x466   : > { %v1885_v9 = vpop.trf.xlu1 }
 0x46a   : > { %1856 = vmatmul.mubr.bf16.vlgmr.msra.gmra.mrb[64].mxu1 %v10591_v56  ;;  %v1886_v14 = vpop.trf.xlu1 }
 0x46b   : > { %1915 = vmatpush1.bf16.msra.mxu1 %v10592_v60  ;;  %1863 = vmatprep.mubr.bf16.mxu1 %v10593_v54  ;;  %v5900_v60 = vld [vmem:[#allocation7 + $0x98] sm:$0xff]  }
 0x46c   : > { %1916 = vmatprep.subr.bf16.mxu1 %v10594_v28  ;;  %5513 = vmatmul.mubr.msk.bf16.gmra.mrb[76].mxu0 %vm552_vm1, %v5900_v60 }
 0x46d   : > { %888 = vmatprep.mubr.bf16.mxu0 %v10597_v0 }
 0x46e   : > { %v1887_v23 = vpop.trf.xlu1 }
 0x46f   : > { %1917 = vmatpush1.bf16.msra.mxu1 %v10595_v20 }
 0x472   : > { %1864 = vmatmul.mubr.bf16.gmra.mrb[68].mxu1 %v10596_v21  ;;  %v1888_v47 = vpop.trf.xlu1 }
 0x473   : > { %1946 = vmatprep.mubr.bf16.mxu1 %v10597_v0 }
 0x476   : > { %v1889_v25 = vpop.trf.xlu1 }
 0x47a   : > { %5566 = vmatmul.mubr.msk.bf16.vlgmr.msra.gmra.mrb[72].mxu1 %vm1429_vm2, %v1882_v61 }
 0x47b   : > { %1956 = vmatprep.mubr.bf16.mxu1 %v10597_v0 }
 0x482   : > { %5567 = vmatmul.mubr.msk.bf16.gmra.mrb[76].mxu1 %vm1429_vm2, %v1883_v12 }
 0x483   : > { %1966 = vmatprep.mubr.bf16.mxu1 %v10597_v0 }
 0x48a   : > { %5568 = vmatmul.mubr.msk.bf16.gmra.mrb[80].mxu1 %vm1429_vm2, %v1884_v11 }
 0x48b   : > { %1976 = vmatprep.mubr.bf16.mxu1 %v10597_v0 }
 0x492   : > { %5569 = vmatmul.mubr.msk.bf16.gmra.mrb[84].mxu1 %vm1429_vm2, %v1885_v9 }
 0x493   : > { %1986 = vmatprep.mubr.bf16.mxu1 %v10597_v0 }
 0x49a   : > { %5570 = vmatmul.mubr.msk.bf16.gmra.mrb[88].mxu1 %vm1429_vm2, %v1886_v14 }
 0x49b   : > { %1996 = vmatprep.mubr.bf16.mxu1 %v10597_v0 }
 0x4a2   : > { %5571 = vmatmul.mubr.msk.bf16.gmra.mrb[92].mxu1 %vm1429_vm2, %v1887_v23 }
 0x4a3   : > { %2006 = vmatprep.mubr.bf16.mxu1 %v10597_v0 }
 0x4aa   : > { %5572 = vmatmul.mubr.msk.bf16.gmra.mrb[96].mxu1 %vm1429_vm2, %v1888_v47 }
 0x4ab   : > { %2016 = vmatprep.mubr.bf16.mxu1 %v10597_v0 }
 0x4b2   : > { %5573 = vmatmul.mubr.msk.bf16.gmra.mrb[100].mxu1 %vm1429_vm2, %v1889_v25 }
 0x53d   : > { %v7940_v30 = vpop.f32.mrb[64].mxu1 }
 0x53e   : > { %10598 = vst [vmem:[#allocation88_spill] sm:$0xff] %v7940_v30  ;;  %v1859_v38 = vpop.f32.mrb[65].mxu1 }
 0x53f   : > { %v7942_v35 = vpop.f32.mrb[66].mxu1 }
 0x540   : > { %10599 = vst [vmem:[#allocation89_spill] sm:$0xff] %v7942_v35  ;;  %v1862_v55 = vpop.f32.mrb[67].mxu1 }
 0x545   : > { %v7946_v36 = vpop.f32.mrb[68].mxu1 }
 0x546   : > { %10600 = vst [vmem:[#allocation90_spill] sm:$0xff] %v7946_v36  ;;  %v1867_v57 = vpop.f32.mrb[69].mxu1 }
 0x547   : > { %v7948_v29 = vpop.f32.mrb[70].mxu1 }
 0x548   : > { %10601 = vst [vmem:[#allocation91_spill] sm:$0xff] %v7948_v29  ;;  %v1870_v33 = vpop.f32.mrb[71].mxu1 }
 0x54d   : > { %v7952_v4 = vpop.f32.mrb[72].mxu1 }
 0x54e   : > { %v7954_v2 = vpop.f32.mrb[73].mxu1 }
 0x54f   : > { %v7956_v40 = vpop.f32.mrb[74].mxu1  ;;  %v2027_v24 = vmax.f32 %v7952_v4, %v7954_v2 }
 0x550   : > { %v7960_v41 = vpop.f32.mrb[75].mxu1 }
 0x551   : > { %2028 = vmax.xlane.f32.xlu0 %v2027_v24  ;;  %v2030_v8 = vmax.f32 %v7956_v40, %v7960_v41 }
 0x555   : > { %2031 = vmax.xlane.f32.xlu0 %v2030_v8  ;;  %v7964_v27 = vpop.f32.mrb[76].mxu1 }
 0x556   : > { %v7966_v62 = vpop.f32.mrb[77].mxu1 }
 0x557   : > { %v7968_v63 = vpop.f32.mrb[78].mxu1  ;;  %v2033_v6 = vmax.f32 %v7964_v27, %v7966_v62 }
 0x558   : > { %v7972_v15 = vpop.f32.mrb[79].mxu1 }
 0x559   : > { %2034 = vmax.xlane.f32.xlu0 %v2033_v6  ;;  %v2036_v13 = vmax.f32 %v7968_v63, %v7972_v15 }
 0x55d   : > { %2037 = vmax.xlane.f32.xlu0 %v2036_v13  ;;  %v7976_v1 = vpop.f32.mrb[80].mxu1 }
 0x55e   : > { %v7978_v10 = vpop.f32.mrb[81].mxu1 }
 0x55f   : > { %v7980_v5 = vpop.f32.mrb[82].mxu1  ;;  %v2039_v53 = vmax.f32 %v7976_v1, %v7978_v10 }
 0x560   : > { %v7984_v19 = vpop.f32.mrb[83].mxu1 }
 0x561   : > { %2040 = vmax.xlane.f32.xlu0 %v2039_v53  ;;  %v2042_v43 = vmax.f32 %v7980_v5, %v7984_v19 }
 0x565   : > { %2043 = vmax.xlane.f32.xlu0 %v2042_v43  ;;  %v7988_v32 = vpop.f32.mrb[84].mxu1 }
 0x566   : > { %v7990_v16 = vpop.f32.mrb[85].mxu1 }
 0x567   : > { %v7992_v7 = vpop.f32.mrb[86].mxu1  ;;  %v2045_v46 = vmax.f32 %v7988_v32, %v7990_v16 }
 0x568   : > { %v7996_v42 = vpop.f32.mrb[87].mxu1 }
 0x569   : > { %2046 = vmax.xlane.f32.xlu0 %v2045_v46  ;;  %v2048_v39 = vmax.f32 %v7992_v7, %v7996_v42 }
 0x56d   : > { %2049 = vmax.xlane.f32.xlu0 %v2048_v39  ;;  %v8000_v26 = vpop.f32.mrb[88].mxu1 }
 0x56e   : > { %v8002_v59 = vpop.f32.mrb[89].mxu1 }
 0x56f   : > { %v8004_v51 = vpop.f32.mrb[90].mxu1  ;;  %v2051_v48 = vmax.f32 %v8000_v26, %v8002_v59 }
 0x570   : > { %v8008_v18 = vpop.f32.mrb[91].mxu1 }
 0x571   : > { %2052 = vmax.xlane.f32.xlu0 %v2051_v48  ;;  %v2054_v44 = vmax.f32 %v8004_v51, %v8008_v18 }
 0x575   : > { %2055 = vmax.xlane.f32.xlu0 %v2054_v44  ;;  %v8012_v17 = vpop.f32.mrb[92].mxu1 }
 0x576   : > { %v8015_v22 = vpop.f32.mrb[93].mxu1 }
 0x577   : > { %v8018_v37 = vpop.f32.mrb[94].mxu1  ;;  %v2057_v3 = vmax.f32 %v8012_v17, %v8015_v22 }
 0x578   : > { %v8022_v45 = vpop.f32.mrb[95].mxu1 }
 0x579   : > { %2058 = vmax.xlane.f32.xlu0 %v2057_v3  ;;  %v2060_v56 = vmax.f32 %v8018_v37, %v8022_v45 }
 0x57d   : > { %2061 = vmax.xlane.f32.xlu0 %v2060_v56  ;;  %v8026_v54 = vpop.f32.mrb[96].mxu1 }
 0x57e   : > { %v8029_v28 = vpop.f32.mrb[97].mxu1 }
 0x57f   : > { %v8032_v20 = vpop.f32.mrb[98].mxu1  ;;  %v2063_v21 = vmax.f32 %v8026_v54, %v8029_v28 }
 0x580   : > { %v8036_v61 = vpop.f32.mrb[99].mxu1 }
 0x581   : > { %2064 = vmax.xlane.f32.xlu0 %v2063_v21  ;;  %v2066_v12 = vmax.f32 %v8032_v20, %v8036_v61 }
 0x583   : > { %2067 = vmax.xlane.f32.xlu1 %v2066_v12 }
 0x585   : > { %v8040_v11 = vpop.f32.mrb[100].mxu1 }
 0x586   : > { %v8042_v9 = vpop.f32.mrb[101].mxu1 }
 0x587   : > { %v8044_v14 = vpop.f32.mrb[102].mxu1  ;;  %v2069_v23 = vmax.f32 %v8040_v11, %v8042_v9 }
 0x588   : > { %v8048_v47 = vpop.f32.mrb[103].mxu1 }
 0x589   : > { %2070 = vmax.xlane.f32.xlu0 %v2069_v23  ;;  %v2072_v25 = vmax.f32 %v8044_v14, %v8048_v47 }
 0x58d   : > { %2073 = vmax.xlane.f32.xlu0 %v2072_v25 }
 0x5de   : > { %v2029_v38 = vpop.xlane.xlu0 %2028 }
 0x5df   : > { %v2075_v55 = vsub.f32 %v7952_v4, %v2029_v38  ;;  %v2076_v57 = vsub.f32 %v7954_v2, %v2029_v38 }
 0x5e1   : > { %v2107_v33 = vmul.f32 1.442695, %v2075_v55  ;;  %v2109_v24 = vmul.f32 1.442695, %v2076_v57 }
 0x5e2   : > { %v2032_v8 = vpop.xlane.xlu0 %2031 }
 0x5e3   : > { %6025 = vpow2.f32 %v2107_v33  ;;  %v2077_v6 = vsub.f32 %v7956_v40, %v2032_v8  ;;  %v2078_v13 = vsub.f32 %v7960_v41, %v2032_v8 }
 0x5e4   : > { %6027 = vpow2.f32 %v2109_v24 }
 0x5e5   : > { %v2111_v53 = vmul.f32 1.442695, %v2077_v6  ;;  %v2113_v43 = vmul.f32 1.442695, %v2078_v13 }
 0x5e6   : > { %v2035_v46 = vpop.xlane.xlu0 %2034 }
 0x5e7   : > { %6029 = vpow2.f32 %v2111_v53  ;;  %v2079_v39 = vsub.f32 %v7964_v27, %v2035_v46  ;;  %v2080_v48 = vsub.f32 %v7966_v62, %v2035_v46 }
 0x5e8   : > { %6031 = vpow2.f32 %v2113_v43 }
 0x5e9   : > { %v2115_v4 = vmul.f32 1.442695, %v2079_v39  ;;  %v2117_v2 = vmul.f32 1.442695, %v2080_v48 }
 0x5ea   : > { %v2038_v44 = vpop.xlane.xlu0 %2037 }
 0x5eb   : > { %6033 = vpow2.f32 %v2115_v4  ;;  %v2081_v34 = vsub.f32 %v7968_v63, %v2038_v44  ;;  %v2082_v40 = vsub.f32 %v7972_v15, %v2038_v44 }
 0x5ec   : > { %6035 = vpow2.f32 %v2117_v2 }
 0x5ed   : > { %v8060_v41 = vpop.eup %6025  ;;  %v2119_v3 = vmul.f32 1.442695, %v2081_v34  ;;  %v2121_v56 = vmul.f32 1.442695, %v2082_v40 }
 0x5ee   : > { %v8062_v60 = vpop.eup %6027  ;;  %v2041_v21 = vpop.xlane.xlu0 %2040 }
 0x5ef   : > { %6037 = vpow2.f32 %v2119_v3  ;;  %v2083_v27 = vsub.f32 %v7976_v1, %v2041_v21  ;;  %v2084_v62 = vsub.f32 %v7978_v10, %v2041_v21  ;;  %v2171_v12 = vadd.f32 %v8062_v60, %v8060_v41 }
 0x5f0   : > { %6039 = vpow2.f32 %v2121_v56 }
 0x5f1   : > { %v8068_v63 = vpop.eup %6029  ;;  %v2123_v15 = vmul.f32 1.442695, %v2083_v27  ;;  %v2125_v23 = vmul.f32 1.442695, %v2084_v62  ;;  %2172 = vadd.xlane.f32.xlu0 %v2171_v12 }
 0x5f2   : > { %v8070_v25 = vpop.eup %6031  ;;  %v2044_v38 = vpop.xlane.xlu0 %2043 }
 0x5f3   : > { %6041 = vpow2.f32 %v2123_v15  ;;  %v2085_v55 = vsub.f32 %v7980_v5, %v2044_v38  ;;  %v2086_v57 = vsub.f32 %v7984_v19, %v2044_v38  ;;  %v2174_v1 = vadd.f32 %v8070_v25, %v8068_v63 }
 0x5f4   : > { %6043 = vpow2.f32 %v2125_v23 }
 0x5f5   : > { %v8076_v10 = vpop.eup %6033  ;;  %v2127_v33 = vmul.f32 1.442695, %v2085_v55  ;;  %v2129_v24 = vmul.f32 1.442695, %v2086_v57  ;;  %2175 = vadd.xlane.f32.xlu0 %v2174_v1 }
 0x5f6   : > { %v8078_v8 = vpop.eup %6035  ;;  %v2047_v6 = vpop.xlane.xlu0 %2046 }
 0x5f7   : > { %6045 = vpow2.f32 %v2127_v33  ;;  %v2087_v13 = vsub.f32 %v7988_v32, %v2047_v6  ;;  %v2088_v53 = vsub.f32 %v7990_v16, %v2047_v6  ;;  %v2177_v5 = vadd.f32 %v8078_v8, %v8076_v10 }
 0x5f8   : > { %6047 = vpow2.f32 %v2129_v24 }
 0x5f9   : > { %v8084_v19 = vpop.eup %6037  ;;  %v2131_v43 = vmul.f32 1.442695, %v2087_v13  ;;  %v2133_v46 = vmul.f32 1.442695, %v2088_v53  ;;  %2178 = vadd.xlane.f32.xlu0 %v2177_v5 }
 0x5fa   : > { %v8086_v39 = vpop.eup %6039  ;;  %v2050_v48 = vpop.xlane.xlu0 %2049 }
 0x5fb   : > { %6049 = vpow2.f32 %v2131_v43  ;;  %v2089_v4 = vsub.f32 %v7992_v7, %v2050_v48  ;;  %v2090_v2 = vsub.f32 %v7996_v42, %v2050_v48  ;;  %v2180_v32 = vadd.f32 %v8086_v39, %v8084_v19 }
 0x5fc   : > { %6051 = vpow2.f32 %v2133_v46 }
 0x5fd   : > { %v8092_v16 = vpop.eup %6041  ;;  %v2135_v44 = vmul.f32 1.442695, %v2089_v4  ;;  %v2137_v34 = vmul.f32 1.442695, %v2090_v2  ;;  %2181 = vadd.xlane.f32.xlu0 %v2180_v32 }
 0x5fe   : > { %v8094_v40 = vpop.eup %6043  ;;  %v2053_v3 = vpop.xlane.xlu0 %2052 }
 0x5ff   : > { %6053 = vpow2.f32 %v2135_v44  ;;  %v2091_v56 = vsub.f32 %v8000_v26, %v2053_v3  ;;  %v2092_v21 = vsub.f32 %v8002_v59, %v2053_v3  ;;  %v2183_v7 = vadd.f32 %v8094_v40, %v8092_v16 }
 0x600   : > { %6055 = vpow2.f32 %v2137_v34 }
 0x601   : > { %v8100_v42 = vpop.eup %6045  ;;  %v2139_v27 = vmul.f32 1.442695, %v2091_v56  ;;  %v2141_v62 = vmul.f32 1.442695, %v2092_v21  ;;  %2184 = vadd.xlane.f32.xlu0 %v2183_v7 }
 0x602   : > { %v8102_v12 = vpop.eup %6047  ;;  %v2056_v15 = vpop.xlane.xlu0 %2055 }
 0x603   : > { %6057 = vpow2.f32 %v2139_v27  ;;  %v2093_v23 = vsub.f32 %v8004_v51, %v2056_v15  ;;  %v2094_v38 = vsub.f32 %v8008_v18, %v2056_v15  ;;  %v2186_v26 = vadd.f32 %v8102_v12, %v8100_v42 }
 0x604   : > { %6059 = vpow2.f32 %v2141_v62 }
 0x605   : > { %v8108_v59 = vpop.eup %6049  ;;  %v2143_v55 = vmul.f32 1.442695, %v2093_v23  ;;  %v2145_v57 = vmul.f32 1.442695, %v2094_v38  ;;  %2187 = vadd.xlane.f32.xlu0 %v2186_v26 }
 0x606   : > { %v8110_v1 = vpop.eup %6051  ;;  %v2059_v33 = vpop.xlane.xlu0 %2058 }
 0x607   : > { %6061 = vpow2.f32 %v2143_v55  ;;  %v2095_v24 = vsub.f32 %v8012_v17, %v2059_v33  ;;  %v2096_v6 = vsub.f32 %v8015_v22, %v2059_v33  ;;  %v2189_v51 = vadd.f32 %v8110_v1, %v8108_v59 }
 0x608   : > { %6063 = vpow2.f32 %v2145_v57 }
 0x609   : > { %v8116_v18 = vpop.eup %6053  ;;  %v2147_v13 = vmul.f32 1.442695, %v2095_v24  ;;  %v2149_v53 = vmul.f32 1.442695, %v2096_v6  ;;  %2190 = vadd.xlane.f32.xlu0 %v2189_v51 }
 0x60a   : > { %v8118_v5 = vpop.eup %6055  ;;  %v2062_v43 = vpop.xlane.xlu0 %2061 }
 0x60b   : > { %6065 = vpow2.f32 %v2147_v13  ;;  %v2097_v46 = vsub.f32 %v8018_v37, %v2062_v43  ;;  %v2098_v48 = vsub.f32 %v8022_v45, %v2062_v43  ;;  %v2192_v17 = vadd.f32 %v8118_v5, %v8116_v18 }
 0x60c   : > { %6067 = vpow2.f32 %v2149_v53 }
 0x60d   : > { %v8124_v22 = vpop.eup %6057  ;;  %v2151_v4 = vmul.f32 1.442695, %v2097_v46  ;;  %v2153_v2 = vmul.f32 1.442695, %v2098_v48  ;;  %2193 = vadd.xlane.f32.xlu1 %v2192_v17 }
 0x60e   : > { %v8126_v32 = vpop.eup %6059  ;;  %v2065_v44 = vpop.xlane.xlu0 %2064 }
 0x60f   : > { %6069 = vpow2.f32 %v2151_v4  ;;  %v2099_v34 = vsub.f32 %v8026_v54, %v2065_v44  ;;  %v2100_v3 = vsub.f32 %v8029_v28, %v2065_v44  ;;  %v2195_v37 = vadd.f32 %v8126_v32, %v8124_v22 }
 0x610   : > { %6071 = vpow2.f32 %v2153_v2  ;;  %v2068_v45 = vpop.xlane.xlu1 %2067 }
 0x611   : > { %v8132_v56 = vpop.eup %6061  ;;  %v2155_v21 = vmul.f32 1.442695, %v2099_v34  ;;  %v2157_v7 = vmul.f32 1.442695, %v2100_v3  ;;  %v2101_v27 = vsub.f32 %v8032_v20, %v2068_v45  ;;  %v2102_v62 = vsub.f32 %v8036_v61, %v2068_v45  ;;  %2196 = vadd.xlane.f32.xlu0 %v2195_v37 }
 0x612   : > { %v8136_v15 = vpop.eup %6063 }
 0x613   : > { %6073 = vpow2.f32 %v2155_v21  ;;  %v2159_v54 = vmul.f32 1.442695, %v2101_v27  ;;  %v2161_v23 = vmul.f32 1.442695, %v2102_v62  ;;  %v2198_v28 = vadd.f32 %v8136_v15, %v8132_v56 }
 0x614   : > { %6075 = vpow2.f32 %v2157_v7  ;;  %v8180_v7 = vpop.f32.mrb[72].mxu0 }
 0x615   : > { %v8140_v38 = vpop.eup %6065  ;;  %6077 = vpow2.f32 %v2159_v54  ;;  %2199 = vadd.xlane.f32.xlu1 %v2198_v28  ;;  %v872_v27 = vpop.f32.mrb[73].mxu0 }
 0x616   : > { %v8142_v26 = vpop.eup %6067  ;;  %6079 = vpow2.f32 %v2161_v23  ;;  %v2071_v20 = vpop.xlane.xlu0 %2070 }
 0x617   : > { %v2103_v61 = vsub.f32 %v8040_v11, %v2071_v20  ;;  %v2104_v55 = vsub.f32 %v8042_v9, %v2071_v20  ;;  %v2201_v57 = vadd.f32 %v8142_v26, %v8140_v38  ;;  %v8182_v62 = vpop.f32.mrb[74].mxu0 }
 0x618   : > { %v1369_v54 = vpack.c.bf16 %v8182_v62, %v8180_v7  ;;  %v876_v23 = vpop.f32.mrb[75].mxu0 }
 0x619   : > { %v8148_v33 = vpop.eup %6069  ;;  %v2163_v24 = vmul.f32 1.442695, %v2103_v61  ;;  %v2165_v6 = vmul.f32 1.442695, %v2104_v55  ;;  %2202 = vadd.xlane.f32.xlu0 %v2201_v57  ;;  %v1370_v28 = vpack.c.bf16 %v876_v23, %v872_v27  ;;  %v8186_v20 = vpop.f32.mrb[76].mxu0 }
 0x61a   : > { %v8150_v51 = vpop.eup %6071  ;;  %v2074_v13 = vpop.xlane.xlu0 %2073 }
 0x61b   : > { %6081 = vpow2.f32 %v2163_v24  ;;  %v2105_v53 = vsub.f32 %v8044_v14, %v2074_v13  ;;  %v2106_v43 = vsub.f32 %v8048_v47, %v2074_v13  ;;  %v2204_v11 = vadd.f32 %v8150_v51, %v8148_v33  ;;  %2315 = vmatprep.mubr.bf16.mxu1 %v1370_v28  ;;  %v8188_v61 = vpop.f32.mrb[77].mxu0 }
 0x61c   : > { %6083 = vpow2.f32 %v2165_v6  ;;  %v8190_v55 = vpop.f32.mrb[78].mxu0  ;;  %v10602_v13 = vpack.c.bf16 %v7344_v52, %v7338_v49 }
 0x61d   : > { %v8156_v9 = vpop.eup %6073  ;;  %v2167_v46 = vmul.f32 1.442695, %v2105_v53  ;;  %v2169_v48 = vmul.f32 1.442695, %v2106_v43  ;;  %2205 = vadd.xlane.f32.xlu1 %v2204_v11  ;;  %v1371_v57 = vpack.c.bf16 %v8190_v55, %v8186_v20  ;;  %v8194_v24 = vpop.f32.mrb[79].mxu0  ;;  %v10603_v53 = vld [vmem:[#allocation19_spill] sm:$0xff] }
 0x61e   : > { %v8158_v17 = vpop.eup %6075  ;;  %v1372_v6 = vpack.c.bf16 %v8194_v24, %v8188_v61  ;;  %v10604_v43 = vpack.c.bf16 %v7340_v50, %v10603_v53 }
 0x61f   : > { %v8160_v4 = vpop.eup %6077  ;;  %6085 = vpow2.f32 %v2167_v46  ;;  %v2207_v2 = vadd.f32 %v8158_v17, %v8156_v9 }
 0x620   : > { %v8164_v14 = vpop.eup %6079  ;;  %6087 = vpow2.f32 %v2169_v48 }
 0x621   : > { %2208 = vadd.xlane.f32.xlu0 %v2207_v2  ;;  %v2210_v47 = vadd.f32 %v8164_v14, %v8160_v4 }
 0x623   : > { %2211 = vadd.xlane.f32.xlu1 %v2210_v47 }
 0x625   : > { %v8168_v44 = vpop.eup %6081 }
 0x626   : > { %v8170_v34 = vpop.eup %6083 }
 0x627   : > { %v2213_v3 = vadd.f32 %v8170_v34, %v8168_v44 }
 0x629   : > { %v8174_v37 = vpop.eup %6085  ;;  %2214 = vadd.xlane.f32.xlu0 %v2213_v3 }
 0x62a   : > { %v8176_v45 = vpop.eup %6087 }
 0x62b   : > { %v2216_v21 = vadd.f32 %v8176_v45, %v8174_v37 }
 0x62d   : > { %2217 = vadd.xlane.f32.xlu1 %v2216_v21 }
 0x656   : > { %2334 = vxpose.xlu0.c.b16.start [1/2] (short) %v10602_v13, 128 }
 0x65a   : > { %2335 = vxpose.xlu0.c.b16.end [2/2] (short) %v10604_v43, 128 }
 0x67e   : > { %v2173_v11 = vpop.xlane.xlu0 %2172 }
 0x67f   : > { %6089 = vrcp.f32 %v2173_v11 }
 0x682   : > { %v2176_v46 = vpop.xlane.xlu0 %2175 }
 0x683   : > { %6091 = vrcp.f32 %v2176_v46 }
 0x686   : > { %v2179_v48 = vpop.xlane.xlu0 %2178 }
 0x687   : > { %6093 = vrcp.f32 %v2179_v48 }
 0x689   : > { %v6090_v47 = vpop.eup %6089 }
 0x68a   : > { %v2182_v2 = vpop.xlane.xlu0 %2181  ;;  %v2236_v27 = vmul.f32 %v6090_v47, %v8062_v60  ;;  %v2235_v52 = vmul.f32 %v6090_v47, %v8060_v41 }
 0x68b   : > { %6095 = vrcp.f32 %v2182_v2 }
 0x68d   : > { %v6092_v3 = vpop.eup %6091 }
 0x68e   : > { %v2185_v21 = vpop.xlane.xlu0 %2184  ;;  %v2238_v49 = vmul.f32 %v6092_v3, %v8070_v25  ;;  %v2237_v50 = vmul.f32 %v6092_v3, %v8068_v63 }
 0x68f   : > { %6097 = vrcp.f32 %v2185_v21 }
 0x690   : > { %v2268_v23 = vpack.c.bf16 %v2238_v49, %v2236_v27  ;;  %v2267_v28 = vpack.c.bf16 %v2237_v50, %v2235_v52 }
 0x691   : > { %v6094_v53 = vpop.eup %6093 }
 0x692   : > { %2283 = vmatprep.subr.bf16.mxu1 %v2268_v23  ;;  %v2188_v13 = vpop.xlane.xlu0 %2187  ;;  %v2240_v46 = vmul.f32 %v6094_v53, %v8078_v8  ;;  %v2239_v25 = vmul.f32 %v6094_v53, %v8076_v10 }
 0x693   : > { %6099 = vrcp.f32 %v2188_v13  ;;  %2284 = vmatpush1.bf16.xpose.msra.mxu1 %v2267_v28 }
 0x695   : > { %v6096_v43 = vpop.eup %6095 }
 0x696   : > { %v2191_v11 = vpop.xlane.xlu0 %2190  ;;  %v2242_v60 = vmul.f32 %v6096_v43, %v8086_v39  ;;  %v2241_v41 = vmul.f32 %v6096_v43, %v8084_v19 }
 0x697   : > { %6101 = vrcp.f32 %v2191_v11 }
 0x698   : > { %v2270_v48 = vpack.c.bf16 %v2242_v60, %v2240_v46  ;;  %v2269_v63 = vpack.c.bf16 %v2241_v41, %v2239_v25 }
 0x699   : > { %v6098_v47 = vpop.eup %6097 }
 0x69a   : > { %v2194_v2 = vpop.xlane.xlu1 %2193  ;;  %2285 = vmatprep.subr.bf16.mxu1 %v2270_v48  ;;  %v2244_v27 = vmul.f32 %v6098_v47, %v8094_v40  ;;  %v2243_v39 = vmul.f32 %v6098_v47, %v8092_v16 }
 0x69b   : > { %6103 = vrcp.f32 %v2194_v2  ;;  %2286 = vmatpush1.bf16.xpose.msra.mxu1 %v2269_v63 }
 0x69d   : > { %v6100_v3 = vpop.eup %6099 }
 0x69e   : > { %v2197_v21 = vpop.xlane.xlu0 %2196  ;;  %v2246_v8 = vmul.f32 %v6100_v3, %v8102_v12  ;;  %v2245_v10 = vmul.f32 %v6100_v3, %v8100_v42 }
 0x69f   : > { %6105 = vrcp.f32 %v2197_v21 }
 0x6a0   : > { %v2272_v49 = vpack.c.bf16 %v2246_v8, %v2244_v27  ;;  %v2271_v19 = vpack.c.bf16 %v2245_v10, %v2243_v39 }
 0x6a1   : > { %v6102_v50 = vpop.eup %6101 }
 0x6a2   : > { %v2200_v52 = vpop.xlane.xlu1 %2199  ;;  %2287 = vmatprep.subr.bf16.mxu1 %v2272_v49  ;;  %v2248_v13 = vmul.f32 %v6102_v50, %v8110_v1  ;;  %v2247_v12 = vmul.f32 %v6102_v50, %v8108_v59 }
 0x6a3   : > { %6107 = vrcp.f32 %v2200_v52  ;;  %2288 = vmatpush1.bf16.xpose.msra.mxu1 %v2271_v19 }
 0x6a5   : > { %v6104_v23 = vpop.eup %6103 }
 0x6a6   : > { %v2203_v28 = vpop.xlane.xlu0 %2202  ;;  %v2250_v40 = vmul.f32 %v6104_v23, %v8118_v5  ;;  %v2249_v16 = vmul.f32 %v6104_v23, %v8116_v18 }
 0x6a7   : > { %6109 = vrcp.f32 %v2203_v28 }
 0x6a8   : > { %v2274_v53 = vpack.c.bf16 %v2250_v40, %v2248_v13  ;;  %v2273_v42 = vpack.c.bf16 %v2249_v16, %v2247_v12  ;;  %v10606_v40 = vld [vmem:[#allocation41_spill] sm:$0xff]  ;;  %v10608_v12 = vld [vmem:[#allocation42_spill] sm:$0xff] }
 0x6a9   : > { %v6106_v11 = vpop.eup %6105 }
 0x6aa   : > { %v2206_v43 = vpop.xlane.xlu1 %2205  ;;  %2289 = vmatprep.subr.bf16.mxu1 %v2274_v53  ;;  %v2252_v25 = vmul.f32 %v6106_v11, %v8126_v32  ;;  %v2251_v5 = vmul.f32 %v6106_v11, %v8124_v22  ;;  %v10614_v53 = vld [vmem:[#allocation46_spill] sm:$0xff] }
 0x6ab   : > { %6111 = vrcp.f32 %v2206_v43  ;;  %2290 = vmatpush1.bf16.xpose.msra.mxu1 %v2273_v42  ;;  %v10615_v42 = vld [vmem:[#allocation44_spill] sm:$0xff] }
 0x6ac   : > { %v10616_v43 = vpack.c.bf16 %v10614_v53, %v10615_v42  ;;  %v5902_v42 = vld [vmem:[#allocation7 + $0xa8] sm:$0xff]  }
 0x6ad   : > { %v6108_v46 = vpop.eup %6107 }
 0x6ae   : > { %v2209_v60 = vpop.xlane.xlu0 %2208  ;;  %v2254_v1 = vmul.f32 %v6108_v46, %v8136_v15  ;;  %v2253_v59 = vmul.f32 %v6108_v46, %v8132_v56 }
 0x6af   : > { %6113 = vrcp.f32 %v2209_v60 }
 0x6b0   : > { %v2212_v18 = vpop.xlane.xlu1 %2211  ;;  %v2276_v41 = vpack.c.bf16 %v2254_v1, %v2252_v25  ;;  %v2275_v48 = vpack.c.bf16 %v2253_v59, %v2251_v5 }
 0x6b1   : > { %6115 = vrcp.f32 %v2212_v18  ;;  %v6110_v63 = vpop.eup %6109 }
 0x6b2   : > { %2291 = vmatprep.subr.bf16.mxu1 %v2276_v41  ;;  %v2256_v3 = vmul.f32 %v6110_v63, %v8142_v26  ;;  %v2255_v15 = vmul.f32 %v6110_v63, %v8140_v38 }
 0x6b3   : > { %2292 = vmatpush1.bf16.xpose.msra.mxu1 %v2275_v48 }
 0x6b5   : > { %v6112_v2 = vpop.eup %6111 }
 0x6b6   : > { %v2215_v47 = vpop.xlane.xlu0 %2214  ;;  %v2258_v32 = vmul.f32 %v6112_v2, %v8150_v51  ;;  %v2257_v22 = vmul.f32 %v6112_v2, %v8148_v33 }
 0x6b7   : > { %6117 = vrcp.f32 %v2215_v47 }
 0x6b8   : > { %v2278_v21 = vpack.c.bf16 %v2258_v32, %v2256_v3  ;;  %v2277_v56 = vpack.c.bf16 %v2257_v22, %v2255_v15 }
 0x6b9   : > { %v6114_v27 = vpop.eup %6113 }
 0x6ba   : > { %v2218_v8 = vpop.xlane.xlu1 %2217  ;;  %2293 = vmatprep.subr.bf16.mxu1 %v2278_v21  ;;  %v2260_v10 = vmul.f32 %v6114_v27, %v8158_v17  ;;  %v2259_v38 = vmul.f32 %v6114_v27, %v8156_v9 }
 0x6bb   : > { %v6116_v39 = vpop.eup %6115  ;;  %6119 = vrcp.f32 %v2218_v8  ;;  %2294 = vmatpush1.bf16.xpose.msra.mxu1 %v2277_v56 }
 0x6bc   : > { %v2262_v49 = vmul.f32 %v6116_v39, %v8164_v14  ;;  %v2261_v26 = vmul.f32 %v6116_v39, %v8160_v4  ;;  %v10605_v4 = vld [vmem:[#allocation43_spill] sm:$0xff]  ;;  %v2342_v7 = vpop.trf.xlu0 }
 0x6bd   : > { %v10607_v9 = vpack.c.bf16 %v10605_v4, %v10606_v40 }
 0x6be   : > { %v2280_v51 = vpack.c.bf16 %v2262_v49, %v2260_v10  ;;  %v2279_v33 = vpack.c.bf16 %v2261_v26, %v2259_v38 }
 0x6c0   : > { %2295 = vmatprep.subr.bf16.mxu1 %v2280_v51  ;;  %v2343_v62 = vpop.trf.xlu0 }
 0x6c1   : > { %v6118_v19 = vpop.eup %6117 }
 0x6c2   : > { %v2264_v50 = vmul.f32 %v6118_v19, %v8170_v34  ;;  %v2263_v28 = vmul.f32 %v6118_v19, %v8168_v44  ;;  %v10609_v34 = vld [vmem:[#allocation40_spill] sm:$0xff]  ;;  %v10611_v44 = vld [vmem:[#allocation47_spill] sm:$0xff] }
 0x6c3   : > { %2296 = vmatpush1.bf16.xpose.msra.mxu1 %v2279_v33  ;;  %v10610_v16 = vpack.c.bf16 %v10608_v12, %v10609_v34  ;;  %v5901_v12 = vld [vmem:[#allocation7 + $0xa0] sm:$0xff]  }
 0x6c4   : > { %5514 = vmatmul.mubr.msk.bf16.gmra.mrb[80].mxu0 %vm552_vm1, %v5901_v12 }
 0x6c5   : > { %v6120_v52 = vpop.eup %6119  ;;  %898 = vmatprep.mubr.bf16.mxu0 %v10597_v0 }
 0x6c6   : > { %v2266_v23 = vmul.f32 %v6120_v52, %v8176_v45  ;;  %v2265_v17 = vmul.f32 %v6120_v52, %v8174_v37  ;;  %v10612_v37 = vld [vmem:[#allocation45_spill] sm:$0xff] }
 0x6c7   : > { %v10613_v45 = vpack.c.bf16 %v10611_v44, %v10612_v37 }
 0x6c8   : > { %v2282_v13 = vpack.c.bf16 %v2266_v23, %v2264_v50  ;;  %v2281_v14 = vpack.c.bf16 %v2265_v17, %v2263_v28 }
 0x6ca   : > { %2297 = vmatprep.subr.bf16.mxu1 %v2282_v13 }
 0x6cb   : > { %2298 = vmatpush1.bf16.xpose.msra.mxu1 %v2281_v14 }
 0x6cc   : > { %2374 = vmatprep.subr.bf16.mxu1 %v10607_v9  ;;  %5515 = vmatmul.mubr.msk.bf16.gmra.mrb[84].mxu0 %vm552_vm1, %v5902_v42 }
 0x6cd   : > { %908 = vmatprep.mubr.bf16.mxu0 %v10597_v0 }
 0x6d2   : > { %2316 = vmatmul.mubr.bf16.vlgmr.msra.gmra.mrb[104].mxu1 %v1369_v54  ;;  %v2344_v54 = vpop.trf.xlu0 }
 0x6d3   : > { %2375 = vmatpush1.bf16.msra.mxu1 %v10610_v16  ;;  %2323 = vmatprep.mubr.bf16.mxu1 %v1372_v6 }
 0x6d4   : > { %2376 = vmatprep.subr.bf16.mxu1 %v10613_v45 }
 0x6d6   : > { %v2345_v61 = vpop.trf.xlu0 }
 0x6d7   : > { %2377 = vmatpush1.bf16.msra.mxu1 %v10616_v43 }
 0x6da   : > { %2324 = vmatmul.mubr.bf16.gmra.mrb[108].mxu1 %v1371_v57  ;;  %v2346_v20 = vpop.trf.xlu0 }
 0x6db   : > { %2406 = vmatprep.mubr.bf16.mxu1 %v10597_v0 }
 0x6de   : > { %v2347_v55 = vpop.trf.xlu0 }
 0x6e2   : > { %5574 = vmatmul.mubr.msk.bf16.vlgmr.msra.gmra.mrb[112].mxu1 %vm1429_vm2, %v2342_v7  ;;  %v2348_v57 = vpop.trf.xlu0 }
 0x6e3   : > { %2416 = vmatprep.mubr.bf16.mxu1 %v10597_v0 }
 0x6e6   : > { %v2349_v24 = vpop.trf.xlu0 }
 0x6ea   : > { %5575 = vmatmul.mubr.msk.bf16.gmra.mrb[116].mxu1 %vm1429_vm2, %v2343_v62 }
 0x6eb   : > { %2426 = vmatprep.mubr.bf16.mxu1 %v10597_v0 }
 0x6f2   : > { %5576 = vmatmul.mubr.msk.bf16.gmra.mrb[120].mxu1 %vm1429_vm2, %v2344_v54 }
 0x6f3   : > { %2436 = vmatprep.mubr.bf16.mxu1 %v10597_v0 }
 0x6fa   : > { %5577 = vmatmul.mubr.msk.bf16.gmra.mrb[124].mxu1 %vm1429_vm2, %v2345_v61 }
 0x6fb   : > { %2446 = vmatprep.mubr.bf16.mxu1 %v10597_v0 }
 0x702   : > { %5578 = vmatmul.mubr.msk.bf16.gmra.mrb[128].mxu1 %vm1429_vm2, %v2346_v20 }
 0x703   : > { %2456 = vmatprep.mubr.bf16.mxu1 %v10597_v0 }
 0x70a   : > { %5579 = vmatmul.mubr.msk.bf16.gmra.mrb[132].mxu1 %vm1429_vm2, %v2347_v55 }
 0x70b   : > { %2466 = vmatprep.mubr.bf16.mxu1 %v10597_v0 }
 0x712   : > { %5580 = vmatmul.mubr.msk.bf16.gmra.mrb[136].mxu1 %vm1429_vm2, %v2348_v57 }
 0x713   : > { %2476 = vmatprep.mubr.bf16.mxu1 %v10597_v0 }
 0x71a   : > { %5581 = vmatmul.mubr.msk.bf16.gmra.mrb[140].mxu1 %vm1429_vm2, %v2349_v24 }
 0x7a5   : > { %v8273_v6 = vpop.f32.mrb[104].mxu1 }
 0x7a6   : > { %10617 = vst [vmem:[#allocation19_spill] sm:$0xff] %v8273_v6  ;;  %v2319_v11 = vpop.f32.mrb[105].mxu1 }
 0x7a7   : > { %v8275_v46 = vpop.f32.mrb[106].mxu1 }
 0x7a8   : > { %10618 = vst [vmem:[#allocation43_spill] sm:$0xff] %v8275_v46  ;;  %v2322_v25 = vpop.f32.mrb[107].mxu1 }
 0x7ad   : > { %v8279_v1 = vpop.f32.mrb[108].mxu1 }
 0x7ae   : > { %10619 = vst [vmem:[#allocation41_spill] sm:$0xff] %v8279_v1  ;;  %v2327_v5 = vpop.f32.mrb[109].mxu1 }
 0x7af   : > { %v8281_v59 = vpop.f32.mrb[110].mxu1 }
 0x7b0   : > { %10620 = vst [vmem:[#allocation42_spill] sm:$0xff] %v8281_v59  ;;  %v2330_v41 = vpop.f32.mrb[111].mxu1 }
 0x7b5   : > { %v8285_v48 = vpop.f32.mrb[112].mxu1 }
 0x7b6   : > { %v8287_v63 = vpop.f32.mrb[113].mxu1 }
 0x7b7   : > { %v8289_v2 = vpop.f32.mrb[114].mxu1  ;;  %v2487_v47 = vmax.f32 %v8285_v48, %v8287_v63 }
 0x7b8   : > { %v8293_v3 = vpop.f32.mrb[115].mxu1 }
 0x7b9   : > { %2488 = vmax.xlane.f32.xlu1 %v2487_v47  ;;  %v2490_v32 = vmax.f32 %v8289_v2, %v8293_v3 }
 0x7bd   : > { %2491 = vmax.xlane.f32.xlu1 %v2490_v32  ;;  %v8297_v15 = vpop.f32.mrb[116].mxu1 }
 0x7be   : > { %v8299_v22 = vpop.f32.mrb[117].mxu1 }
 0x7bf   : > { %v2493_v21 = vmax.f32 %v8297_v15, %v8299_v22  ;;  %v8303_v56 = vpop.f32.mrb[118].mxu1 }
 0x7c0   : > { %v8305_v27 = vpop.f32.mrb[119].mxu1 }
 0x7c1   : > { %2494 = vmax.xlane.f32.xlu1 %v2493_v21  ;;  %v2496_v8 = vmax.f32 %v8303_v56, %v8305_v27 }
 0x7c5   : > { %2497 = vmax.xlane.f32.xlu1 %v2496_v8  ;;  %v8309_v39 = vpop.f32.mrb[120].mxu1 }
 0x7c6   : > { %v8311_v10 = vpop.f32.mrb[121].mxu1 }
 0x7c7   : > { %v2499_v49 = vmax.f32 %v8309_v39, %v8311_v10  ;;  %v8315_v26 = vpop.f32.mrb[122].mxu1 }
 0x7c8   : > { %v8317_v51 = vpop.f32.mrb[123].mxu1 }
 0x7c9   : > { %2500 = vmax.xlane.f32.xlu1 %v2499_v49  ;;  %v2502_v38 = vmax.f32 %v8315_v26, %v8317_v51 }
 0x7cd   : > { %2503 = vmax.xlane.f32.xlu1 %v2502_v38  ;;  %v8321_v33 = vpop.f32.mrb[124].mxu1 }
 0x7ce   : > { %v8323_v19 = vpop.f32.mrb[125].mxu1 }
 0x7cf   : > { %v2505_v52 = vmax.f32 %v8321_v33, %v8323_v19  ;;  %v8327_v50 = vpop.f32.mrb[126].mxu1 }
 0x7d0   : > { %v8329_v23 = vpop.f32.mrb[127].mxu1 }
 0x7d1   : > { %2506 = vmax.xlane.f32.xlu1 %v2505_v52  ;;  %v2508_v28 = vmax.f32 %v8327_v50, %v8329_v23 }
 0x7d5   : > { %2509 = vmax.xlane.f32.xlu1 %v2508_v28  ;;  %v8333_v17 = vpop.f32.mrb[128].mxu1 }
 0x7d6   : > { %v8335_v13 = vpop.f32.mrb[129].mxu1 }
 0x7d7   : > { %v2511_v14 = vmax.f32 %v8333_v17, %v8335_v13  ;;  %v8339_v4 = vpop.f32.mrb[130].mxu1 }
 0x7d8   : > { %v8341_v40 = vpop.f32.mrb[131].mxu1 }
 0x7d9   : > { %2512 = vmax.xlane.f32.xlu1 %v2511_v14  ;;  %v2514_v9 = vmax.f32 %v8339_v4, %v8341_v40 }
 0x7dd   : > { %2515 = vmax.xlane.f32.xlu1 %v2514_v9  ;;  %v8345_v34 = vpop.f32.mrb[132].mxu1 }
 0x7de   : > { %v8348_v16 = vpop.f32.mrb[133].mxu1 }
 0x7df   : > { %v2517_v44 = vmax.f32 %v8345_v34, %v8348_v16  ;;  %v8353_v37 = vpop.f32.mrb[134].mxu1 }
 0x7e0   : > { %v8355_v45 = vpop.f32.mrb[135].mxu1 }
 0x7e1   : > { %2518 = vmax.xlane.f32.xlu1 %v2517_v44  ;;  %v2520_v53 = vmax.f32 %v8353_v37, %v8355_v45 }
 0x7e5   : > { %2521 = vmax.xlane.f32.xlu1 %v2520_v53  ;;  %v8359_v43 = vpop.f32.mrb[136].mxu1 }
 0x7e6   : > { %v8362_v7 = vpop.f32.mrb[137].mxu1 }
 0x7e7   : > { %v2523_v62 = vmax.f32 %v8359_v43, %v8362_v7  ;;  %v8367_v54 = vpop.f32.mrb[138].mxu1 }
 0x7e8   : > { %v8369_v61 = vpop.f32.mrb[139].mxu1 }
 0x7e9   : > { %2524 = vmax.xlane.f32.xlu0 %v2523_v62  ;;  %v2526_v20 = vmax.f32 %v8367_v54, %v8369_v61 }
 0x7eb   : > { %2527 = vmax.xlane.f32.xlu1 %v2526_v20 }
 0x7ed   : > { %v8373_v55 = vpop.f32.mrb[140].mxu1 }
 0x7ee   : > { %v8375_v57 = vpop.f32.mrb[141].mxu1 }
 0x7ef   : > { %v2529_v24 = vmax.f32 %v8373_v55, %v8375_v57  ;;  %v8379_v11 = vpop.f32.mrb[142].mxu1 }
 0x7f0   : > { %v8381_v25 = vpop.f32.mrb[143].mxu1 }
 0x7f1   : > { %2530 = vmax.xlane.f32.xlu1 %v2529_v24  ;;  %v2532_v5 = vmax.f32 %v8379_v11, %v8381_v25 }
 0x7f5   : > { %2533 = vmax.xlane.f32.xlu1 %v2532_v5 }
 0x846   : > { %v2489_v41 = vpop.xlane.xlu1 %2488 }
 0x847   : > { %v2535_v47 = vsub.f32 %v8285_v48, %v2489_v41  ;;  %v2536_v32 = vsub.f32 %v8287_v63, %v2489_v41 }
 0x849   : > { %v2567_v21 = vmul.f32 1.442695, %v2535_v47  ;;  %v2569_v8 = vmul.f32 1.442695, %v2536_v32 }
 0x84a   : > { %v2492_v49 = vpop.xlane.xlu1 %2491 }
 0x84b   : > { %6121 = vpow2.f32 %v2567_v21  ;;  %v2537_v38 = vsub.f32 %v8289_v2, %v2492_v49  ;;  %v2538_v52 = vsub.f32 %v8293_v3, %v2492_v49 }
 0x84c   : > { %6123 = vpow2.f32 %v2569_v8 }
 0x84d   : > { %v2571_v28 = vmul.f32 1.442695, %v2537_v38  ;;  %v2573_v14 = vmul.f32 1.442695, %v2538_v52 }
 0x84e   : > { %v2495_v9 = vpop.xlane.xlu1 %2494 }
 0x84f   : > { %6125 = vpow2.f32 %v2571_v28  ;;  %v2539_v12 = vsub.f32 %v8297_v15, %v2495_v9  ;;  %v2540_v44 = vsub.f32 %v8299_v22, %v2495_v9 }
 0x850   : > { %6127 = vpow2.f32 %v2573_v14 }
 0x851   : > { %v2575_v48 = vmul.f32 1.442695, %v2539_v12  ;;  %v2577_v63 = vmul.f32 1.442695, %v2540_v44 }
 0x852   : > { %v2498_v53 = vpop.xlane.xlu1 %2497 }
 0x853   : > { %6129 = vpow2.f32 %v2575_v48  ;;  %v2541_v42 = vsub.f32 %v8303_v56, %v2498_v53  ;;  %v2542_v2 = vsub.f32 %v8305_v27, %v2498_v53 }
 0x854   : > { %6131 = vpow2.f32 %v2577_v63 }
 0x855   : > { %v8393_v3 = vpop.eup %6121  ;;  %v2579_v62 = vmul.f32 1.442695, %v2541_v42  ;;  %v2581_v20 = vmul.f32 1.442695, %v2542_v2 }
 0x856   : > { %v8395_v24 = vpop.eup %6123  ;;  %v2501_v5 = vpop.xlane.xlu1 %2500 }
 0x857   : > { %6133 = vpow2.f32 %v2579_v62  ;;  %v2543_v15 = vsub.f32 %v8309_v39, %v2501_v5  ;;  %v2544_v22 = vsub.f32 %v8311_v10, %v2501_v5  ;;  %v2631_v41 = vadd.f32 %v8395_v24, %v8393_v3  ;;  %v5903_v5 = vld [vmem:[#allocation7 + $0xb0] sm:$0xff]  }
 0x858   : > { %6135 = vpow2.f32 %v2581_v20  ;;  %5516 = vmatmul.mubr.msk.bf16.gmra.mrb[88].mxu0 %vm552_vm1, %v5903_v5 }
 0x859   : > { %v8401_v56 = vpop.eup %6125  ;;  %v2583_v27 = vmul.f32 1.442695, %v2543_v15  ;;  %v2585_v47 = vmul.f32 1.442695, %v2544_v22  ;;  %2632 = vadd.xlane.f32.xlu1 %v2631_v41  ;;  %918 = vmatprep.mubr.bf16.mxu0 %v10597_v0 }
 0x85a   : > { %v8403_v32 = vpop.eup %6127  ;;  %v2504_v21 = vpop.xlane.xlu1 %2503 }
 0x85b   : > { %6137 = vpow2.f32 %v2583_v27  ;;  %v2545_v8 = vsub.f32 %v8315_v26, %v2504_v21  ;;  %v2546_v49 = vsub.f32 %v8317_v51, %v2504_v21  ;;  %v2634_v39 = vadd.f32 %v8403_v32, %v8401_v56 }
 0x85c   : > { %6139 = vpow2.f32 %v2585_v47 }
 0x85d   : > { %v8409_v10 = vpop.eup %6129  ;;  %v2587_v38 = vmul.f32 1.442695, %v2545_v8  ;;  %v2589_v52 = vmul.f32 1.442695, %v2546_v49  ;;  %2635 = vadd.xlane.f32.xlu1 %v2634_v39 }
 0x85e   : > { %v8411_v28 = vpop.eup %6131  ;;  %v2507_v14 = vpop.xlane.xlu1 %2506 }
 0x85f   : > { %6141 = vpow2.f32 %v2587_v38  ;;  %v2547_v9 = vsub.f32 %v8321_v33, %v2507_v14  ;;  %v2548_v12 = vsub.f32 %v8323_v19, %v2507_v14  ;;  %v2637_v26 = vadd.f32 %v8411_v28, %v8409_v10 }
 0x860   : > { %6143 = vpow2.f32 %v2589_v52 }
 0x861   : > { %v8417_v51 = vpop.eup %6133  ;;  %v2591_v44 = vmul.f32 1.442695, %v2547_v9  ;;  %v2593_v48 = vmul.f32 1.442695, %v2548_v12  ;;  %2638 = vadd.xlane.f32.xlu1 %v2637_v26  ;;  %v5904_v9 = vld [vmem:[#allocation7 + $0xb8] sm:$0xff]  }
 0x862   : > { %v8419_v63 = vpop.eup %6135  ;;  %v2510_v53 = vpop.xlane.xlu1 %2509  ;;  %5517 = vmatmul.mubr.msk.bf16.gmra.mrb[92].mxu0 %vm552_vm1, %v5904_v9 }
 0x863   : > { %6145 = vpow2.f32 %v2591_v44  ;;  %v2549_v42 = vsub.f32 %v8327_v50, %v2510_v53  ;;  %v2550_v2 = vsub.f32 %v8329_v23, %v2510_v53  ;;  %v2640_v33 = vadd.f32 %v8419_v63, %v8417_v51  ;;  %928 = vmatprep.mubr.bf16.mxu0 %v10597_v0 }
 0x864   : > { %6147 = vpow2.f32 %v2593_v48 }
 0x865   : > { %v8425_v19 = vpop.eup %6137  ;;  %v2595_v62 = vmul.f32 1.442695, %v2549_v42  ;;  %v2597_v20 = vmul.f32 1.442695, %v2550_v2  ;;  %2641 = vadd.xlane.f32.xlu1 %v2640_v33 }
 0x866   : > { %v8427_v15 = vpop.eup %6139  ;;  %v2513_v22 = vpop.xlane.xlu1 %2512 }
 0x867   : > { %6149 = vpow2.f32 %v2595_v62  ;;  %v2551_v41 = vsub.f32 %v8333_v17, %v2513_v22  ;;  %v2552_v50 = vsub.f32 %v8335_v13, %v2513_v22  ;;  %v2643_v23 = vadd.f32 %v8427_v15, %v8425_v19 }
 0x868   : > { %6151 = vpow2.f32 %v2597_v20 }
 0x869   : > { %v8435_v27 = vpop.eup %6141  ;;  %v2599_v47 = vmul.f32 1.442695, %v2551_v41  ;;  %v2601_v21 = vmul.f32 1.442695, %v2552_v50  ;;  %2644 = vadd.xlane.f32.xlu1 %v2643_v23  ;;  %v5905_v41 = vld [vmem:[#allocation7 + $0xc0] sm:$0xff]  }
 0x86a   : > { %v8437_v8 = vpop.eup %6143  ;;  %v2516_v49 = vpop.xlane.xlu1 %2515  ;;  %5518 = vmatmul.mubr.msk.bf16.gmra.mrb[96].mxu0 %vm552_vm1, %v5905_v41 }
 0x86b   : > { %6153 = vpow2.f32 %v2599_v47  ;;  %v2553_v17 = vsub.f32 %v8339_v4, %v2516_v49  ;;  %v2554_v13 = vsub.f32 %v8341_v40, %v2516_v49  ;;  %v2646_v39 = vadd.f32 %v8437_v8, %v8435_v27  ;;  %938 = vmatprep.mubr.bf16.mxu0 %v10597_v0 }
 0x86c   : > { %6155 = vpow2.f32 %v2601_v21 }
 0x86d   : > { %v8443_v38 = vpop.eup %6145  ;;  %v2603_v52 = vmul.f32 1.442695, %v2553_v17  ;;  %v2605_v14 = vmul.f32 1.442695, %v2554_v13  ;;  %2647 = vadd.xlane.f32.xlu1 %v2646_v39 }
 0x86e   : > { %v8445_v12 = vpop.eup %6147  ;;  %v2519_v26 = vpop.xlane.xlu1 %2518 }
 0x86f   : > { %6157 = vpow2.f32 %v2603_v52  ;;  %v2555_v44 = vsub.f32 %v8345_v34, %v2519_v26  ;;  %v2556_v4 = vsub.f32 %v8348_v16, %v2519_v26  ;;  %v2649_v40 = vadd.f32 %v8445_v12, %v8443_v38 }
 0x870   : > { %6159 = vpow2.f32 %v2605_v14 }
 0x871   : > { %v8453_v48 = vpop.eup %6149  ;;  %v2607_v53 = vmul.f32 1.442695, %v2555_v44  ;;  %v2609_v42 = vmul.f32 1.442695, %v2556_v4  ;;  %2650 = vadd.xlane.f32.xlu1 %v2649_v40  ;;  %v5906_v44 = vld [vmem:[#allocation7 + $0xc8] sm:$0xff]  }
 0x872   : > { %v8455_v2 = vpop.eup %6151  ;;  %v2522_v33 = vpop.xlane.xlu1 %2521  ;;  %5519 = vmatmul.mubr.msk.bf16.gmra.mrb[100].mxu0 %vm552_vm1, %v5906_v44  ;;  %v5909_v44 = vld [vmem:[#allocation7 + $0xe0] sm:$0xff]  }
 0x873   : > { %6161 = vpow2.f32 %v2607_v53  ;;  %v2557_v34 = vsub.f32 %v8353_v37, %v2522_v33  ;;  %v2558_v16 = vsub.f32 %v8355_v45, %v2522_v33  ;;  %v2652_v62 = vadd.f32 %v8455_v2, %v8453_v48  ;;  %948 = vmatprep.mubr.bf16.mxu0 %v10597_v0 }
 0x874   : > { %6163 = vpow2.f32 %v2609_v42 }
 0x875   : > { %v8461_v20 = vpop.eup %6153  ;;  %v2611_v5 = vmul.f32 1.442695, %v2557_v34  ;;  %v2613_v22 = vmul.f32 1.442695, %v2558_v16  ;;  %2653 = vadd.xlane.f32.xlu0 %v2652_v62 }
 0x876   : > { %v8463_v50 = vpop.eup %6155  ;;  %v2525_v23 = vpop.xlane.xlu0 %2524 }
 0x877   : > { %6165 = vpow2.f32 %v2611_v5  ;;  %v2559_v47 = vsub.f32 %v8359_v43, %v2525_v23  ;;  %v2560_v37 = vsub.f32 %v8362_v7, %v2525_v23  ;;  %v2655_v45 = vadd.f32 %v8463_v50, %v8461_v20 }
 0x878   : > { %6167 = vpow2.f32 %v2613_v22  ;;  %v2528_v21 = vpop.xlane.xlu1 %2527 }
 0x879   : > { %v8471_v49 = vpop.eup %6157  ;;  %v2615_v17 = vmul.f32 1.442695, %v2559_v47  ;;  %v2617_v13 = vmul.f32 1.442695, %v2560_v37  ;;  %v2561_v39 = vsub.f32 %v8367_v54, %v2528_v21  ;;  %v2562_v52 = vsub.f32 %v8369_v61, %v2528_v21  ;;  %2656 = vadd.xlane.f32.xlu1 %v2655_v45  ;;  %v5907_v47 = vld [vmem:[#allocation7 + $0xd0] sm:$0xff]  }
 0x87a   : > { %v8475_v43 = vpop.eup %6159  ;;  %5520 = vmatmul.mubr.msk.bf16.gmra.mrb[104].mxu0 %vm552_vm1, %v5907_v47 }
 0x87b   : > { %6169 = vpow2.f32 %v2615_v17  ;;  %v2619_v7 = vmul.f32 1.442695, %v2561_v39  ;;  %v2621_v14 = vmul.f32 1.442695, %v2562_v52  ;;  %v2658_v9 = vadd.f32 %v8475_v43, %v8471_v49  ;;  %958 = vmatprep.mubr.bf16.mxu0 %v10597_v0 }
 0x87c   : > { %6171 = vpow2.f32 %v2617_v13  ;;  %v5908_v13 = vld [vmem:[#allocation7 + $0xd8] sm:$0xff]  }
 0x87d   : > { %v8479_v26 = vpop.eup %6161  ;;  %6173 = vpow2.f32 %v2619_v7  ;;  %2659 = vadd.xlane.f32.xlu0 %v2658_v9 }
 0x87e   : > { %v8481_v4 = vpop.eup %6163  ;;  %6175 = vpow2.f32 %v2621_v14  ;;  %v2531_v54 = vpop.xlane.xlu1 %2530 }
 0x87f   : > { %v2563_v61 = vsub.f32 %v8373_v55, %v2531_v54  ;;  %v2564_v40 = vsub.f32 %v8375_v57, %v2531_v54  ;;  %v2661_v53 = vadd.f32 %v8481_v4, %v8479_v26  ;;  %v5910_v54 = vld [vmem:[#allocation7 + $0xe8] sm:$0xff]  }
 0x881   : > { %v8489_v42 = vpop.eup %6165  ;;  %v2623_v33 = vmul.f32 1.442695, %v2563_v61  ;;  %v2625_v34 = vmul.f32 1.442695, %v2564_v40  ;;  %2662 = vadd.xlane.f32.xlu1 %v2661_v53  ;;  %v5911_v61 = vld [vmem:[#allocation7 + $0xf0] sm:$0xff]   ;;  %v5912_v40 = vld [vmem:[#allocation7 + $0xf8] sm:$0xff]  }
 0x882   : > { %v8491_v16 = vpop.eup %6167  ;;  %v2534_v62 = vpop.xlane.xlu1 %2533  ;;  %5521 = vmatmul.mubr.msk.bf16.gmra.mrb[108].mxu0 %vm552_vm1, %v5908_v13  ;;  %v10621_v13 = vld [vmem:[#allocation23_spill] sm:$0xff] }
 0x883   : > { %6177 = vpow2.f32 %v2623_v33  ;;  %v2565_v55 = vsub.f32 %v8379_v11, %v2534_v62  ;;  %v2566_v57 = vsub.f32 %v8381_v25, %v2534_v62  ;;  %v2664_v5 = vadd.f32 %v8491_v16, %v8489_v42  ;;  %968 = vmatprep.mubr.bf16.mxu0 %v10597_v0  ;;  %v8532_v53 = vpop.f32.mrb[80].mxu0 }
 0x884   : > { %6179 = vpow2.f32 %v2625_v34  ;;  %v892_v33 = vpop.f32.mrb[81].mxu0 }
 0x885   : > { %v8497_v22 = vpop.eup %6169  ;;  %v2627_v41 = vmul.f32 1.442695, %v2565_v55  ;;  %v2629_v23 = vmul.f32 1.442695, %v2566_v57  ;;  %2665 = vadd.xlane.f32.xlu0 %v2664_v5  ;;  %v8534_v34 = vpop.f32.mrb[82].mxu0 }
 0x886   : > { %v8499_v37 = vpop.eup %6171  ;;  %v896_v62 = vpop.f32.mrb[83].mxu0  ;;  %v1373_v55 = vpack.c.bf16 %v8534_v34, %v8532_v53 }
 0x887   : > { %v8501_v45 = vpop.eup %6173  ;;  %6181 = vpow2.f32 %v2627_v41  ;;  %v2667_v11 = vadd.f32 %v8499_v37, %v8497_v22  ;;  %v1374_v57 = vpack.c.bf16 %v896_v62, %v892_v33  ;;  %v8538_v5 = vpop.f32.mrb[84].mxu0 }
 0x888   : > { %v8506_v25 = vpop.eup %6175  ;;  %6183 = vpow2.f32 %v2629_v23  ;;  %v8540_v41 = vpop.f32.mrb[85].mxu0 }
 0x889   : > { %2668 = vadd.xlane.f32.xlu1 %v2667_v11  ;;  %v2670_v21 = vadd.f32 %v8506_v25, %v8501_v45  ;;  %v8542_v23 = vpop.f32.mrb[86].mxu0 }
 0x88a   : > { %5522 = vmatmul.mubr.msk.bf16.gmra.mrb[112].mxu0 %vm552_vm1, %v5909_v44  ;;  %v8544_v47 = vpop.f32.mrb[87].mxu0  ;;  %v1375_v11 = vpack.c.bf16 %v8542_v23, %v8538_v5  ;;  %v10624_v44 = vld [vmem:[#allocation22_spill] sm:$0xff] }
 0x88b   : > { %2671 = vadd.xlane.f32.xlu0 %v2670_v21  ;;  %978 = vmatprep.mubr.bf16.mxu0 %v10597_v0  ;;  %v1376_v21 = vpack.c.bf16 %v8544_v47, %v8540_v41 }
 0x88d   : > { %v8511_v17 = vpop.eup %6177 }
 0x88e   : > { %v8513_v39 = vpop.eup %6179 }
 0x88f   : > { %v2673_v52 = vadd.f32 %v8513_v39, %v8511_v17 }
 0x891   : > { %v8519_v7 = vpop.eup %6181  ;;  %2674 = vadd.xlane.f32.xlu1 %v2673_v52  ;;  %v10622_v52 = vld [vmem:[#allocation21_spill] sm:$0xff] }
 0x892   : > { %v8521_v14 = vpop.eup %6183  ;;  %5523 = vmatmul.mubr.msk.bf16.gmra.mrb[116].mxu0 %vm552_vm1, %v5910_v54  ;;  %v10625_v54 = vld [vmem:[#allocation20_spill] sm:$0xff] }
 0x893   : > { %v2676_v9 = vadd.f32 %v8521_v14, %v8519_v7  ;;  %988 = vmatprep.mubr.bf16.mxu0 %v10597_v0 }
 0x895   : > { %2677 = vadd.xlane.f32.xlu0 %v2676_v9  ;;  %v10623_v9 = vpack.c.bf16 %v10621_v13, %v10622_v52 }
 0x89a   : > { %5524 = vmatmul.mubr.msk.bf16.gmra.mrb[120].mxu0 %vm552_vm1, %v5911_v61  ;;  %v10626_v61 = vpack.c.bf16 %v10624_v44, %v10625_v54 }
 0x89b   : > { %998 = vmatprep.mubr.bf16.mxu0 %v10597_v0 }
 0x8a2   : > { %5525 = vmatmul.mubr.msk.bf16.gmra.mrb[124].mxu0 %vm552_vm1, %v5912_v40 }
 0x8a3   : > { %2775 = vmatprep.mubr.bf16.mxu0 %v1374_v57 }
 0x8be   : > { %2794 = vxpose.xlu1.c.b16.start [1/2] (short) %v10623_v9, 128 }
 0x8c2   : > { %2795 = vxpose.xlu1.c.b16.end [2/2] (short) %v10626_v61, 128 }
 0x8e6   : > { %v2633_v40 = vpop.xlane.xlu1 %2632 }
 0x8e7   : > { %6185 = vrcp.f32 %v2633_v40 }
 0x8ea   : > { %v2636_v33 = vpop.xlane.xlu1 %2635 }
 0x8eb   : > { %6187 = vrcp.f32 %v2636_v33 }
 0x8ee   : > { %v2639_v62 = vpop.xlane.xlu1 %2638 }
 0x8ef   : > { %6189 = vrcp.f32 %v2639_v62 }
 0x8f1   : > { %v6186_v18 = vpop.eup %6185 }
 0x8f2   : > { %v2642_v57 = vpop.xlane.xlu1 %2641  ;;  %v2696_v58 = vmul.f32 %v6186_v18, %v8395_v24  ;;  %v2695_v52 = vmul.f32 %v6186_v18, %v8393_v3 }
 0x8f3   : > { %6191 = vrcp.f32 %v2642_v57 }
 0x8f5   : > { %v6188_v60 = vpop.eup %6187 }
 0x8f6   : > { %v2645_v31 = vpop.xlane.xlu1 %2644  ;;  %v2698_v13 = vmul.f32 %v6188_v60, %v8403_v32  ;;  %v2697_v9 = vmul.f32 %v6188_v60, %v8401_v56 }
 0x8f7   : > { %6193 = vrcp.f32 %v2645_v31 }
 0x8f8   : > { %v2728_v44 = vpack.c.bf16 %v2698_v13, %v2696_v58  ;;  %v2727_v54 = vpack.c.bf16 %v2697_v9, %v2695_v52 }
 0x8f9   : > { %v6190_v40 = vpop.eup %6189 }
 0x8fa   : > { %2743 = vmatprep.subr.bf16.mxu0 %v2728_v44  ;;  %v2648_v61 = vpop.xlane.xlu1 %2647  ;;  %v2700_v57 = vmul.f32 %v6190_v40, %v8411_v28  ;;  %v2699_v32 = vmul.f32 %v6190_v40, %v8409_v10 }
 0x8fb   : > { %6195 = vrcp.f32 %v2648_v61  ;;  %2744 = vmatpush1.bf16.xpose.msra.mxu0 %v2727_v54 }
 0x8fd   : > { %v6192_v33 = vpop.eup %6191 }
 0x8fe   : > { %v2651_v62 = vpop.xlane.xlu1 %2650  ;;  %v2702_v24 = vmul.f32 %v6192_v33, %v8419_v63  ;;  %v2701_v18 = vmul.f32 %v6192_v33, %v8417_v51 }
 0x8ff   : > { %6197 = vrcp.f32 %v2651_v62 }
 0x900   : > { %v2730_v3 = vpack.c.bf16 %v2702_v24, %v2700_v57  ;;  %v2729_v60 = vpack.c.bf16 %v2701_v18, %v2699_v32 }
 0x901   : > { %v6194_v31 = vpop.eup %6193 }
 0x902   : > { %v2654_v58 = vpop.xlane.xlu0 %2653  ;;  %2745 = vmatprep.subr.bf16.mxu0 %v2730_v3  ;;  %v2704_v52 = vmul.f32 %v6194_v31, %v8427_v15  ;;  %v2703_v63 = vmul.f32 %v6194_v31, %v8425_v19 }
 0x903   : > { %6199 = vrcp.f32 %v2654_v58  ;;  %2746 = vmatpush1.bf16.xpose.msra.mxu0 %v2729_v60 }
 0x905   : > { %v6196_v56 = vpop.eup %6195 }
 0x906   : > { %v2657_v13 = vpop.xlane.xlu1 %2656  ;;  %v2706_v28 = vmul.f32 %v6196_v56, %v8437_v8  ;;  %v2705_v10 = vmul.f32 %v6196_v56, %v8435_v27 }
 0x907   : > { %6201 = vrcp.f32 %v2657_v13 }
 0x908   : > { %v2732_v9 = vpack.c.bf16 %v2706_v28, %v2704_v52  ;;  %v2731_v51 = vpack.c.bf16 %v2705_v10, %v2703_v63 }
 0x909   : > { %v6198_v54 = vpop.eup %6197 }
 0x90a   : > { %v2660_v44 = vpop.xlane.xlu0 %2659  ;;  %2747 = vmatprep.subr.bf16.mxu0 %v2732_v9  ;;  %v2708_v33 = vmul.f32 %v6198_v54, %v8445_v12  ;;  %v2707_v8 = vmul.f32 %v6198_v54, %v8443_v38 }
 0x90b   : > { %6203 = vrcp.f32 %v2660_v44  ;;  %2748 = vmatpush1.bf16.xpose.msra.mxu0 %v2731_v51 }
 0x90d   : > { %v6200_v61 = vpop.eup %6199 }
 0x90e   : > { %v2663_v40 = vpop.xlane.xlu1 %2662  ;;  %v2710_v15 = vmul.f32 %v6200_v61, %v8455_v2  ;;  %v2709_v19 = vmul.f32 %v6200_v61, %v8453_v48 }
 0x90f   : > { %6205 = vrcp.f32 %v2663_v40 }
 0x910   : > { %v2734_v62 = vpack.c.bf16 %v2710_v15, %v2708_v33  ;;  %v2733_v27 = vpack.c.bf16 %v2709_v19, %v2707_v8  ;;  %v10628_v19 = vld [vmem:[#allocation49_spill] sm:$0xff] }
 0x911   : > { %v6202_v24 = vpop.eup %6201 }
 0x912   : > { %v2666_v57 = vpop.xlane.xlu0 %2665  ;;  %2749 = vmatprep.subr.bf16.mxu0 %v2734_v62  ;;  %v2712_v3 = vmul.f32 %v6202_v24, %v8463_v50  ;;  %v2711_v2 = vmul.f32 %v6202_v24, %v8461_v20 }
 0x913   : > { %6207 = vrcp.f32 %v2666_v57  ;;  %2750 = vmatpush1.bf16.xpose.msra.mxu0 %v2733_v27  ;;  %v10634_v57 = vld [vmem:[#allocation53_spill] sm:$0xff] }
 0x915   : > { %v6204_v32 = vpop.eup %6203 }
 0x916   : > { %v2669_v18 = vpop.xlane.xlu1 %2668  ;;  %v2714_v12 = vmul.f32 %v6204_v32, %v8475_v43  ;;  %v2713_v38 = vmul.f32 %v6204_v32, %v8471_v49 }
 0x917   : > { %6209 = vrcp.f32 %v2669_v18  ;;  %v10636_v18 = vld [vmem:[#allocation54_spill] sm:$0xff] }
 0x918   : > { %v2672_v48 = vpop.xlane.xlu0 %2671  ;;  %v2736_v60 = vpack.c.bf16 %v2714_v12, %v2712_v3  ;;  %v2735_v58 = vpack.c.bf16 %v2713_v38, %v2711_v2  ;;  %v10637_v3 = vld [vmem:[#allocation52_spill] sm:$0xff] }
 0x919   : > { %6211 = vrcp.f32 %v2672_v48  ;;  %v6206_v31 = vpop.eup %6205  ;;  %v10638_v12 = vpack.c.bf16 %v10636_v18, %v10637_v3 }
 0x91a   : > { %2751 = vmatprep.subr.bf16.mxu0 %v2736_v60  ;;  %v2716_v52 = vmul.f32 %v6206_v31, %v8481_v4  ;;  %v2715_v43 = vmul.f32 %v6206_v31, %v8479_v26 }
 0x91b   : > { %2752 = vmatpush1.bf16.xpose.msra.mxu0 %v2735_v58 }
 0x91d   : > { %v6208_v56 = vpop.eup %6207 }
 0x91e   : > { %v2675_v13 = vpop.xlane.xlu1 %2674  ;;  %v2718_v50 = vmul.f32 %v6208_v56, %v8491_v16  ;;  %v2717_v20 = vmul.f32 %v6208_v56, %v8489_v42 }
 0x91f   : > { %6213 = vrcp.f32 %v2675_v13 }
 0x920   : > { %v2738_v28 = vpack.c.bf16 %v2718_v50, %v2716_v52  ;;  %v2737_v49 = vpack.c.bf16 %v2717_v20, %v2715_v43 }
 0x921   : > { %v6210_v63 = vpop.eup %6209 }
 0x922   : > { %v2678_v10 = vpop.xlane.xlu0 %2677  ;;  %2753 = vmatprep.subr.bf16.mxu0 %v2738_v28  ;;  %v2720_v51 = vmul.f32 %v6210_v63, %v8499_v37  ;;  %v2719_v26 = vmul.f32 %v6210_v63, %v8497_v22 }
 0x923   : > { %v6212_v9 = vpop.eup %6211  ;;  %6215 = vrcp.f32 %v2678_v10  ;;  %2754 = vmatpush1.bf16.xpose.msra.mxu0 %v2737_v49 }
 0x924   : > { %v2722_v44 = vmul.f32 %v6212_v9, %v8506_v25  ;;  %v2721_v4 = vmul.f32 %v6212_v9, %v8501_v45  ;;  %v10627_v45 = vld [vmem:[#allocation51_spill] sm:$0xff]  ;;  %v2802_v60 = vpop.trf.xlu1 }
 0x925   : > { %v10629_v22 = vpack.c.bf16 %v10627_v45, %v10628_v19 }
 0x926   : > { %v2740_v16 = vpack.c.bf16 %v2722_v44, %v2720_v51  ;;  %v2739_v42 = vpack.c.bf16 %v2721_v4, %v2719_v26 }
 0x928   : > { %2755 = vmatprep.subr.bf16.mxu0 %v2740_v16  ;;  %v2803_v13 = vpop.trf.xlu1 }
 0x929   : > { %v6214_v54 = vpop.eup %6213 }
 0x92a   : > { %v2724_v40 = vmul.f32 %v6214_v54, %v8513_v39  ;;  %v2723_v15 = vmul.f32 %v6214_v54, %v8511_v17  ;;  %v10630_v39 = vld [vmem:[#allocation50_spill] sm:$0xff] }
 0x92b   : > { %2756 = vmatpush1.bf16.xpose.msra.mxu0 %v2739_v42  ;;  %v8594_v62 = vpop.f32.mrb[88].mxu0 }
 0x92c   : > { %v912_v17 = vpop.f32.mrb[89].mxu0  ;;  %v2804_v63 = vpop.trf.xlu1 }
 0x92d   : > { %v6216_v61 = vpop.eup %6215  ;;  %v8605_v32 = vpop.f32.mrb[90].mxu0 }
 0x92e   : > { %v2726_v33 = vmul.f32 %v6216_v61, %v8521_v14  ;;  %v2725_v37 = vmul.f32 %v6216_v61, %v8519_v7  ;;  %v10631_v14 = vld [vmem:[#allocation48_spill] sm:$0xff]  ;;  %v10633_v7 = vld [vmem:[#allocation55_spill] sm:$0xff]  ;;  %v916_v34 = vpop.f32.mrb[91].mxu0 }
 0x92f   : > { %v10632_v27 = vpack.c.bf16 %v10630_v39, %v10631_v14  ;;  %v10635_v24 = vpack.c.bf16 %v10633_v7, %v10634_v57 }
 0x930   : > { %v2742_v8 = vpack.c.bf16 %v2726_v33, %v2724_v40  ;;  %v2741_v25 = vpack.c.bf16 %v2725_v37, %v2723_v15  ;;  %v2805_v26 = vpop.trf.xlu1 }
 0x932   : > { %2757 = vmatprep.subr.bf16.mxu0 %v2742_v8 }
 0x933   : > { %2758 = vmatpush1.bf16.xpose.msra.mxu0 %v2741_v25 }
 0x934   : > { %2834 = vmatprep.subr.bf16.mxu0 %v10629_v22  ;;  %v2806_v37 = vpop.trf.xlu1 }
 0x935   : > { %v8615_v41 = vpop.f32.mrb[92].mxu0 }
 0x936   : > { %v8618_v47 = vpop.f32.mrb[93].mxu0 }
 0x938   : > { %v2807_v14 = vpop.trf.xlu1 }
 0x93a   : > { %2776 = vmatmul.mubr.bf16.vlgmr.msra.gmra.mrb[128].mxu0 %v1373_v55  ;;  %v1378_v55 = vpack.c.bf16 %v916_v34, %v912_v17 }
 0x93b   : > { %2835 = vmatpush1.bf16.msra.mxu0 %v10632_v27  ;;  %2783 = vmatprep.mubr.bf16.mxu0 %v1376_v21  ;;  %v8620_v21 = vpop.f32.mrb[94].mxu0 }
 0x93c   : > { %2836 = vmatprep.subr.bf16.mxu0 %v10635_v24  ;;  %3235 = vmatprep.mubr.bf16.mxu1 %v1378_v55  ;;  %v8624_v38 = vpop.f32.mrb[95].mxu0  ;;  %v2808_v55 = vpop.trf.xlu1 }
 0x93d   : > { %v8629_v5 = vpop.f32.mrb[96].mxu0 }
 0x93e   : > { %v8632_v23 = vpop.f32.mrb[97].mxu0 }
 0x93f   : > { %2837 = vmatpush1.bf16.msra.mxu0 %v10638_v12 }
 0x942   : > { %2784 = vmatmul.mubr.bf16.gmra.mrb[132].mxu0 %v1375_v11  ;;  %v8634_v11 = vpop.f32.mrb[98].mxu0 }
 0x943   : > { %2866 = vmatprep.mubr.bf16.mxu0 %v10597_v0  ;;  %v936_v31 = vpop.f32.mrb[99].mxu0 }
 0x944   : > { %v1382_v56 = vpack.c.bf16 %v936_v31, %v8632_v23 }
 0x945   : > { %v8640_v52 = vpop.f32.mrb[100].mxu0 }
 0x946   : > { %v8643_v50 = vpop.f32.mrb[101].mxu0 }
 0x947   : > { %v8645_v43 = vpop.f32.mrb[102].mxu0 }
 0x948   : > { %v8649_v28 = vpop.f32.mrb[103].mxu0 }
 0x94a   : > { %5582 = vmatmul.mubr.msk.bf16.vlgmr.msra.gmra.mrb[136].mxu0 %vm1429_vm2, %v2802_v60 }
 0x94b   : > { %2876 = vmatprep.mubr.bf16.mxu0 %v10597_v0 }
 0x94d   : > { %v8654_v10 = vpop.f32.mrb[104].mxu0 }
 0x94e   : > { %10639 = vst [vmem:[#allocation40_spill] sm:$0xff] %v8654_v10  ;;  %v8657_v9 = vpop.f32.mrb[105].mxu0 }
 0x94f   : > { %v8659_v51 = vpop.f32.mrb[106].mxu0 }
 0x950   : > { %v8663_v4 = vpop.f32.mrb[107].mxu0 }
 0x952   : > { %5583 = vmatmul.mubr.msk.bf16.gmra.mrb[140].mxu0 %vm1429_vm2, %v2803_v13  ;;  %v2809_v13 = vpop.trf.xlu1 }
 0x953   : > { %2886 = vmatprep.mubr.bf16.mxu0 %v10597_v0 }
 0x955   : > { %v8668_v42 = vpop.f32.mrb[108].mxu0 }
 0x956   : > { %10640 = vst [vmem:[#allocation47_spill] sm:$0xff] %v8668_v42  ;;  %v8671_v54 = vpop.f32.mrb[109].mxu0 }
 0x957   : > { %10641 = vst [vmem:[#allocation45_spill] sm:$0xff] %v8671_v54  ;;  %v8673_v61 = vpop.f32.mrb[110].mxu0 }
 0x958   : > { %10642 = vst [vmem:[#allocation46_spill] sm:$0xff] %v8673_v61  ;;  %v8677_v33 = vpop.f32.mrb[111].mxu0 }
 0x959   : > { %10643 = vst [vmem:[#allocation44_spill] sm:$0xff] %v8677_v33 }
 0x95a   : > { %5584 = vmatmul.mubr.msk.bf16.gmra.mrb[144].mxu0 %vm1429_vm2, %v2804_v63 }
 0x95b   : > { %2896 = vmatprep.mubr.bf16.mxu0 %v10597_v0 }
 0x95d   : > { %v8682_v8 = vpop.f32.mrb[112].mxu0 }
 0x95e   : > { %10644 = vst [vmem:[#allocation23_spill] sm:$0xff] %v8682_v8  ;;  %v8685_v25 = vpop.f32.mrb[113].mxu0 }
 0x95f   : > { %v8687_v45 = vpop.f32.mrb[114].mxu0 }
 0x960   : > { %10645 = vst [vmem:[#allocation21_spill] sm:$0xff] %v8687_v45  ;;  %v8691_v22 = vpop.f32.mrb[115].mxu0 }
 0x962   : > { %5585 = vmatmul.mubr.msk.bf16.gmra.mrb[148].mxu0 %vm1429_vm2, %v2805_v26 }
 0x963   : > { %2906 = vmatprep.mubr.bf16.mxu0 %v10597_v0 }
 0x965   : > { %v8696_v27 = vpop.f32.mrb[116].mxu0 }
 0x966   : > { %10646 = vst [vmem:[#allocation22_spill] sm:$0xff] %v8696_v27  ;;  %v8699_v17 = vpop.f32.mrb[117].mxu0 }
 0x967   : > { %10647 = vst [vmem:[#allocation20_spill] sm:$0xff] %v8699_v17  ;;  %v8701_v7 = vpop.f32.mrb[118].mxu0 }
 0x968   : > { %10648 = vst [vmem:[#allocation51_spill] sm:$0xff] %v8701_v7  ;;  %v8705_v24 = vpop.f32.mrb[119].mxu0 }
 0x969   : > { %10649 = vst [vmem:[#allocation49_spill] sm:$0xff] %v8705_v24 }
 0x96a   : > { %5586 = vmatmul.mubr.msk.bf16.gmra.mrb[152].mxu0 %vm1429_vm2, %v2806_v37 }
 0x96b   : > { %2916 = vmatprep.mubr.bf16.mxu0 %v10597_v0 }
 0x96d   : > { %v8710_v18 = vpop.f32.mrb[120].mxu0 }
 0x96e   : > { %10650 = vst [vmem:[#allocation50_spill] sm:$0xff] %v8710_v18  ;;  %v8713_v3 = vpop.f32.mrb[121].mxu0 }
 0x96f   : > { %10651 = vst [vmem:[#allocation48_spill] sm:$0xff] %v8713_v3  ;;  %v8715_v12 = vpop.f32.mrb[122].mxu0 }
 0x970   : > { %10652 = vst [vmem:[#allocation55_spill] sm:$0xff] %v8715_v12  ;;  %v8719_v23 = vpop.f32.mrb[123].mxu0 }
 0x971   : > { %10653 = vst [vmem:[#allocation53_spill] sm:$0xff] %v8719_v23 }
 0x972   : > { %5587 = vmatmul.mubr.msk.bf16.gmra.mrb[156].mxu0 %vm1429_vm2, %v2807_v14 }
 0x973   : > { %2926 = vmatprep.mubr.bf16.mxu0 %v10597_v0 }
 0x975   : > { %v8724_v63 = vpop.f32.mrb[124].mxu0 }
 0x976   : > { %10654 = vst [vmem:[#allocation54_spill] sm:$0xff] %v8724_v63  ;;  %v8726_v26 = vpop.f32.mrb[125].mxu0 }
 0x977   : > { %10655 = vst [vmem:[#allocation52_spill] sm:$0xff] %v8726_v26  ;;  %v8728_v37 = vpop.f32.mrb[126].mxu0 }
 0x978   : > { %10656 = vst [vmem:[#allocation92_spill] sm:$0xff] %v8728_v37 }
 0x97a   : > { %5588 = vmatmul.mubr.msk.bf16.gmra.mrb[160].mxu0 %vm1429_vm2, %v2808_v55  ;;  %v8732_v55 = vpop.f32.mrb[127].mxu0 }
 0x97b   : > { %2936 = vmatprep.mubr.bf16.mxu0 %v10597_v0  ;;  %10657 = vst [vmem:[#allocation93_spill] sm:$0xff] %v8732_v55 }
 0x982   : > { %5589 = vmatmul.mubr.msk.bf16.gmra.mrb[164].mxu0 %vm1429_vm2, %v2809_v13 }
 0x983   : > { %3695 = vmatprep.mubr.bf16.mxu0 %v1382_v56 }
 0xa0d   : > { %v8736_v57 = vpop.f32.mrb[128].mxu0 }
 0xa0e   : > { %10658 = vst [vmem:[#allocation94_spill] sm:$0xff] %v8736_v57  ;;  %v2779_v34 = vpop.f32.mrb[129].mxu0 }
 0xa0f   : > { %v8738_v19 = vpop.f32.mrb[130].mxu0 }
 0xa10   : > { %10659 = vst [vmem:[#allocation95_spill] sm:$0xff] %v8738_v19  ;;  %v2782_v31 = vpop.f32.mrb[131].mxu0 }
 0xa15   : > { %v8742_v56 = vpop.f32.mrb[132].mxu0 }
 0xa16   : > { %10660 = vst [vmem:[#allocation96_spill] sm:$0xff] %v8742_v56  ;;  %v2787_v40 = vpop.f32.mrb[133].mxu0 }
 0xa17   : > { %v8744_v15 = vpop.f32.mrb[134].mxu0 }
 0xa18   : > { %10661 = vst [vmem:[#allocation97_spill] sm:$0xff] %v8744_v15  ;;  %v2790_v44 = vpop.f32.mrb[135].mxu0 }
 0xa1d   : > { %v8748_v39 = vpop.f32.mrb[136].mxu0 }
 0xa1e   : > { %v8750_v60 = vpop.f32.mrb[137].mxu0 }
 0xa1f   : > { %v2947_v34 = vmax.f32 %v8748_v39, %v8750_v60  ;;  %v8754_v20 = vpop.f32.mrb[138].mxu0 }
 0xa20   : > { %v8756_v13 = vpop.f32.mrb[139].mxu0 }
 0xa21   : > { %2948 = vmax.xlane.f32.xlu0 %v2947_v34  ;;  %v2950_v40 = vmax.f32 %v8754_v20, %v8756_v13 }
 0xa25   : > { %2951 = vmax.xlane.f32.xlu0 %v2950_v40  ;;  %v8760_v31 = vpop.f32.mrb[140].mxu0 }
 0xa26   : > { %v8762_v14 = vpop.f32.mrb[141].mxu0 }
 0xa27   : > { %v2953_v44 = vmax.f32 %v8760_v31, %v8762_v14  ;;  %v8766_v49 = vpop.f32.mrb[142].mxu0 }
 0xa28   : > { %v8768_v58 = vpop.f32.mrb[143].mxu0 }
 0xa29   : > { %2954 = vmax.xlane.f32.xlu0 %v2953_v44  ;;  %v2956_v16 = vmax.f32 %v8766_v49, %v8768_v58 }
 0xa2d   : > { %2957 = vmax.xlane.f32.xlu0 %v2956_v16  ;;  %v8772_v34 = vpop.f32.mrb[144].mxu0 }
 0xa2e   : > { %v8774_v2 = vpop.f32.mrb[145].mxu0 }
 0xa2f   : > { %v2959_v40 = vmax.f32 %v8772_v34, %v8774_v2  ;;  %v8778_v48 = vpop.f32.mrb[146].mxu0 }
 0xa30   : > { %v8780_v53 = vpop.f32.mrb[147].mxu0 }
 0xa31   : > { %2960 = vmax.xlane.f32.xlu0 %v2959_v40  ;;  %v2962_v56 = vmax.f32 %v8778_v48, %v8780_v53 }
 0xa35   : > { %2963 = vmax.xlane.f32.xlu0 %v2962_v56  ;;  %v8784_v44 = vpop.f32.mrb[148].mxu0 }
 0xa36   : > { %v8786_v15 = vpop.f32.mrb[149].mxu0 }
 0xa37   : > { %v2965_v16 = vmax.f32 %v8784_v44, %v8786_v15  ;;  %v8790_v57 = vpop.f32.mrb[150].mxu0 }
 0xa38   : > { %v8792_v19 = vpop.f32.mrb[151].mxu0 }
 0xa39   : > { %2966 = vmax.xlane.f32.xlu0 %v2965_v16  ;;  %v2968_v1 = vmax.f32 %v8790_v57, %v8792_v19 }
 0xa3d   : > { %2969 = vmax.xlane.f32.xlu0 %v2968_v1  ;;  %v8796_v40 = vpop.f32.mrb[152].mxu0 }
 0xa3e   : > { %v8798_v59 = vpop.f32.mrb[153].mxu0 }
 0xa3f   : > { %v2971_v56 = vmax.f32 %v8796_v40, %v8798_v59  ;;  %v8802_v6 = vpop.f32.mrb[154].mxu0 }
 0xa40   : > { %v8804_v46 = vpop.f32.mrb[155].mxu0 }
 0xa41   : > { %2972 = vmax.xlane.f32.xlu0 %v2971_v56  ;;  %v2974_v63 = vmax.f32 %v8802_v6, %v8804_v46 }
 0xa45   : > { %2975 = vmax.xlane.f32.xlu0 %v2974_v63  ;;  %v8808_v16 = vpop.f32.mrb[156].mxu0 }
 0xa46   : > { %v8810_v37 = vpop.f32.mrb[157].mxu0 }
 0xa47   : > { %v2977_v1 = vmax.f32 %v8808_v16, %v8810_v37  ;;  %v8814_v36 = vpop.f32.mrb[158].mxu0 }
 0xa48   : > { %v8816_v29 = vpop.f32.mrb[159].mxu0 }
 0xa49   : > { %2978 = vmax.xlane.f32.xlu0 %v2977_v1  ;;  %v2980_v30 = vmax.f32 %v8814_v36, %v8816_v29 }
 0xa4d   : > { %2981 = vmax.xlane.f32.xlu0 %v2980_v30  ;;  %v8820_v56 = vpop.f32.mrb[160].mxu0 }
 0xa4e   : > { %v8822_v35 = vpop.f32.mrb[161].mxu0 }
 0xa4f   : > { %v2983_v63 = vmax.f32 %v8820_v56, %v8822_v35  ;;  %v8826_v26 = vpop.f32.mrb[162].mxu0 }
 0xa50   : > { %v8828_v55 = vpop.f32.mrb[163].mxu0 }
 0xa51   : > { %v2986_v18 = vmax.f32 %v8826_v26, %v8828_v55  ;;  %2984 = vmax.xlane.f32.xlu0 %v2983_v63 }
 0xa53   : > { %2987 = vmax.xlane.f32.xlu1 %v2986_v18 }
 0xa55   : > { %v8832_v1 = vpop.f32.mrb[164].mxu0 }
 0xa56   : > { %v8834_v12 = vpop.f32.mrb[165].mxu0 }
 0xa57   : > { %v2989_v30 = vmax.f32 %v8832_v1, %v8834_v12  ;;  %v8838_v27 = vpop.f32.mrb[166].mxu0 }
 0xa58   : > { %v8840_v7 = vpop.f32.mrb[167].mxu0 }
 0xa59   : > { %2990 = vmax.xlane.f32.xlu0 %v2989_v30  ;;  %v2992_v17 = vmax.f32 %v8838_v27, %v8840_v7 }
 0xa5d   : > { %2993 = vmax.xlane.f32.xlu0 %v2992_v17 }
 0xaae   : > { %v2949_v24 = vpop.xlane.xlu0 %2948 }
 0xaaf   : > { %v2995_v63 = vsub.f32 %v8748_v39, %v2949_v24  ;;  %v2996_v18 = vsub.f32 %v8750_v60, %v2949_v24 }
 0xab1   : > { %v3027_v8 = vmul.f32 1.442695, %v2995_v63  ;;  %v3029_v45 = vmul.f32 1.442695, %v2996_v18 }
 0xab2   : > { %v2952_v3 = vpop.xlane.xlu0 %2951 }
 0xab3   : > { %6217 = vpow2.f32 %v3027_v8  ;;  %v2997_v23 = vsub.f32 %v8754_v20, %v2952_v3  ;;  %v2998_v42 = vsub.f32 %v8756_v13, %v2952_v3 }
 0xab4   : > { %6219 = vpow2.f32 %v3029_v45 }
 0xab5   : > { %v3031_v61 = vmul.f32 1.442695, %v2997_v23  ;;  %v3033_v30 = vmul.f32 1.442695, %v2998_v42 }
 0xab6   : > { %v2955_v54 = vpop.xlane.xlu0 %2954 }
 0xab7   : > { %6221 = vpow2.f32 %v3031_v61  ;;  %v2999_v17 = vsub.f32 %v8760_v31, %v2955_v54  ;;  %v3000_v33 = vsub.f32 %v8762_v14, %v2955_v54 }
 0xab8   : > { %6223 = vpow2.f32 %v3033_v30 }
 0xab9   : > { %v3035_v39 = vmul.f32 1.442695, %v2999_v17  ;;  %v3037_v24 = vmul.f32 1.442695, %v3000_v33 }
 0xaba   : > { %v2958_v60 = vpop.xlane.xlu0 %2957 }
 0xabb   : > { %6225 = vpow2.f32 %v3035_v39  ;;  %v3001_v8 = vsub.f32 %v8766_v49, %v2958_v60  ;;  %v3002_v20 = vsub.f32 %v8768_v58, %v2958_v60 }
 0xabc   : > { %6227 = vpow2.f32 %v3037_v24 }
 0xabd   : > { %v8852_v3 = vpop.eup %6217  ;;  %v3039_v45 = vmul.f32 1.442695, %v3001_v8  ;;  %v3041_v42 = vmul.f32 1.442695, %v3002_v20 }
 0xabe   : > { %v8854_v23 = vpop.eup %6219  ;;  %v2961_v61 = vpop.xlane.xlu0 %2960 }
 0xabf   : > { %6229 = vpow2.f32 %v3039_v45  ;;  %v3003_v54 = vsub.f32 %v8772_v34, %v2961_v61  ;;  %v3004_v14 = vsub.f32 %v8774_v2, %v2961_v61  ;;  %v3091_v33 = vadd.f32 %v8854_v23, %v8852_v3 }
 0xac0   : > { %6231 = vpow2.f32 %v3041_v42 }
 0xac1   : > { %v8860_v49 = vpop.eup %6221  ;;  %v3043_v58 = vmul.f32 1.442695, %v3003_v54  ;;  %v3045_v13 = vmul.f32 1.442695, %v3004_v14  ;;  %3092 = vadd.xlane.f32.xlu0 %v3091_v33 }
 0xac2   : > { %v8862_v31 = vpop.eup %6223  ;;  %v2964_v63 = vpop.xlane.xlu0 %2963 }
 0xac3   : > { %6233 = vpow2.f32 %v3043_v58  ;;  %v3005_v18 = vsub.f32 %v8778_v48, %v2964_v63  ;;  %v3006_v30 = vsub.f32 %v8780_v53, %v2964_v63  ;;  %v3094_v2 = vadd.f32 %v8862_v31, %v8860_v49 }
 0xac4   : > { %6235 = vpow2.f32 %v3045_v13 }
 0xac5   : > { %v8868_v34 = vpop.eup %6225  ;;  %v3047_v17 = vmul.f32 1.442695, %v3005_v18  ;;  %v3049_v39 = vmul.f32 1.442695, %v3006_v30  ;;  %3095 = vadd.xlane.f32.xlu0 %v3094_v2 }
 0xac6   : > { %v8870_v24 = vpop.eup %6227  ;;  %v2967_v60 = vpop.xlane.xlu0 %2966 }
 0xac7   : > { %6237 = vpow2.f32 %v3047_v17  ;;  %v3007_v8 = vsub.f32 %v8784_v44, %v2967_v60  ;;  %v3008_v20 = vsub.f32 %v8786_v15, %v2967_v60  ;;  %v3097_v53 = vadd.f32 %v8870_v24, %v8868_v34 }
 0xac8   : > { %6239 = vpow2.f32 %v3049_v39 }
 0xac9   : > { %v8876_v48 = vpop.eup %6229  ;;  %v3051_v45 = vmul.f32 1.442695, %v3007_v8  ;;  %v3053_v42 = vmul.f32 1.442695, %v3008_v20  ;;  %3098 = vadd.xlane.f32.xlu0 %v3097_v53 }
 0xaca   : > { %v8878_v61 = vpop.eup %6231  ;;  %v2970_v54 = vpop.xlane.xlu0 %2969 }
 0xacb   : > { %6241 = vpow2.f32 %v3051_v45  ;;  %v3009_v14 = vsub.f32 %v8790_v57, %v2970_v54  ;;  %v3010_v33 = vsub.f32 %v8792_v19, %v2970_v54  ;;  %v3100_v15 = vadd.f32 %v8878_v61, %v8876_v48 }
 0xacc   : > { %6243 = vpow2.f32 %v3053_v42 }
 0xacd   : > { %v8884_v44 = vpop.eup %6233  ;;  %v3055_v58 = vmul.f32 1.442695, %v3009_v14  ;;  %v3057_v13 = vmul.f32 1.442695, %v3010_v33  ;;  %3101 = vadd.xlane.f32.xlu0 %v3100_v15 }
 0xace   : > { %v8886_v63 = vpop.eup %6235  ;;  %v2973_v18 = vpop.xlane.xlu0 %2972 }
 0xacf   : > { %6245 = vpow2.f32 %v3055_v58  ;;  %v3011_v30 = vsub.f32 %v8796_v40, %v2973_v18  ;;  %v3012_v2 = vsub.f32 %v8798_v59, %v2973_v18  ;;  %v3103_v19 = vadd.f32 %v8886_v63, %v8884_v44 }
 0xad0   : > { %6247 = vpow2.f32 %v3057_v13 }
 0xad1   : > { %v8892_v57 = vpop.eup %6237  ;;  %v3059_v17 = vmul.f32 1.442695, %v3011_v30  ;;  %v3061_v39 = vmul.f32 1.442695, %v3012_v2  ;;  %3104 = vadd.xlane.f32.xlu0 %v3103_v19 }
 0xad2   : > { %v8894_v60 = vpop.eup %6239  ;;  %v2976_v8 = vpop.xlane.xlu0 %2975 }
 0xad3   : > { %6249 = vpow2.f32 %v3059_v17  ;;  %v3013_v20 = vsub.f32 %v8802_v6, %v2976_v8  ;;  %v3014_v53 = vsub.f32 %v8804_v46, %v2976_v8  ;;  %v3106_v59 = vadd.f32 %v8894_v60, %v8892_v57 }
 0xad4   : > { %6251 = vpow2.f32 %v3061_v39 }
 0xad5   : > { %v8900_v40 = vpop.eup %6241  ;;  %v3063_v45 = vmul.f32 1.442695, %v3013_v20  ;;  %v3065_v42 = vmul.f32 1.442695, %v3014_v53  ;;  %3107 = vadd.xlane.f32.xlu0 %v3106_v59 }
 0xad6   : > { %v8902_v54 = vpop.eup %6243  ;;  %v2979_v14 = vpop.xlane.xlu0 %2978 }
 0xad7   : > { %6253 = vpow2.f32 %v3063_v45  ;;  %v3015_v33 = vsub.f32 %v8808_v16, %v2979_v14  ;;  %v3016_v15 = vsub.f32 %v8810_v37, %v2979_v14  ;;  %v3109_v6 = vadd.f32 %v8902_v54, %v8900_v40 }
 0xad8   : > { %6255 = vpow2.f32 %v3065_v42 }
 0xad9   : > { %v8908_v46 = vpop.eup %6245  ;;  %v3067_v58 = vmul.f32 1.442695, %v3015_v33  ;;  %v3069_v13 = vmul.f32 1.442695, %v3016_v15  ;;  %3110 = vadd.xlane.f32.xlu0 %v3109_v6 }
 0xada   : > { %v8910_v18 = vpop.eup %6247  ;;  %v2982_v30 = vpop.xlane.xlu0 %2981 }
 0xadb   : > { %6257 = vpow2.f32 %v3067_v58  ;;  %v3017_v2 = vsub.f32 %v8814_v36, %v2982_v30  ;;  %v3018_v19 = vsub.f32 %v8816_v29, %v2982_v30  ;;  %v3112_v37 = vadd.f32 %v8910_v18, %v8908_v46 }
 0xadc   : > { %6259 = vpow2.f32 %v3069_v13 }
 0xadd   : > { %v8916_v16 = vpop.eup %6249  ;;  %v3071_v17 = vmul.f32 1.442695, %v3017_v2  ;;  %v3073_v39 = vmul.f32 1.442695, %v3018_v19  ;;  %3113 = vadd.xlane.f32.xlu1 %v3112_v37 }
 0xade   : > { %v8918_v8 = vpop.eup %6251  ;;  %v2985_v20 = vpop.xlane.xlu0 %2984 }
 0xadf   : > { %6261 = vpow2.f32 %v3071_v17  ;;  %v3019_v53 = vsub.f32 %v8820_v56, %v2985_v20  ;;  %v3020_v59 = vsub.f32 %v8822_v35, %v2985_v20  ;;  %v3115_v36 = vadd.f32 %v8918_v8, %v8916_v16 }
 0xae0   : > { %6263 = vpow2.f32 %v3073_v39  ;;  %v2988_v29 = vpop.xlane.xlu1 %2987 }
 0xae1   : > { %v8924_v45 = vpop.eup %6253  ;;  %v3075_v42 = vmul.f32 1.442695, %v3019_v53  ;;  %v3077_v14 = vmul.f32 1.442695, %v3020_v59  ;;  %v3021_v33 = vsub.f32 %v8826_v26, %v2988_v29  ;;  %v3022_v15 = vsub.f32 %v8828_v55, %v2988_v29  ;;  %3116 = vadd.xlane.f32.xlu0 %v3115_v36 }
 0xae2   : > { %v8928_v6 = vpop.eup %6255 }
 0xae3   : > { %6265 = vpow2.f32 %v3075_v42  ;;  %v3079_v56 = vmul.f32 1.442695, %v3021_v33  ;;  %v3081_v58 = vmul.f32 1.442695, %v3022_v15  ;;  %v3118_v35 = vadd.f32 %v8928_v6, %v8924_v45 }
 0xae4   : > { %6267 = vpow2.f32 %v3077_v14 }
 0xae5   : > { %v8932_v13 = vpop.eup %6257  ;;  %6269 = vpow2.f32 %v3079_v56  ;;  %3119 = vadd.xlane.f32.xlu1 %v3118_v35 }
 0xae6   : > { %v8934_v30 = vpop.eup %6259  ;;  %6271 = vpow2.f32 %v3081_v58  ;;  %v2991_v26 = vpop.xlane.xlu0 %2990 }
 0xae7   : > { %v3023_v55 = vsub.f32 %v8832_v1, %v2991_v26  ;;  %v3024_v2 = vsub.f32 %v8834_v12, %v2991_v26  ;;  %v3121_v19 = vadd.f32 %v8934_v30, %v8932_v13 }
 0xae9   : > { %v8940_v37 = vpop.eup %6261  ;;  %v3083_v17 = vmul.f32 1.442695, %v3023_v55  ;;  %v3085_v39 = vmul.f32 1.442695, %v3024_v2  ;;  %3122 = vadd.xlane.f32.xlu0 %v3121_v19  ;;  %v10662_v19 = vld [vmem:[#allocation27_spill] sm:$0xff] }
 0xaea   : > { %v8942_v20 = vpop.eup %6263  ;;  %v2994_v53 = vpop.xlane.xlu0 %2993 }
 0xaeb   : > { %6273 = vpow2.f32 %v3083_v17  ;;  %v3025_v59 = vsub.f32 %v8838_v27, %v2994_v53  ;;  %v3026_v36 = vsub.f32 %v8840_v7, %v2994_v53  ;;  %v3124_v1 = vadd.f32 %v8942_v20, %v8940_v37  ;;  %v10663_v17 = vld [vmem:[#allocation25_spill] sm:$0xff]  ;;  %v10665_v53 = vld [vmem:[#allocation26_spill] sm:$0xff] }
 0xaec   : > { %6275 = vpow2.f32 %v3085_v39  ;;  %v10664_v39 = vpack.c.bf16 %v10662_v19, %v10663_v17 }
 0xaed   : > { %v8948_v12 = vpop.eup %6265  ;;  %v3087_v29 = vmul.f32 1.442695, %v3025_v59  ;;  %v3089_v42 = vmul.f32 1.442695, %v3026_v36  ;;  %3125 = vadd.xlane.f32.xlu1 %v3124_v1  ;;  %v10666_v59 = vld [vmem:[#allocation24_spill] sm:$0xff] }
 0xaee   : > { %v8950_v14 = vpop.eup %6267  ;;  %v10667_v36 = vpack.c.bf16 %v10665_v53, %v10666_v59 }
 0xaef   : > { %v8952_v33 = vpop.eup %6269  ;;  %6277 = vpow2.f32 %v3087_v29  ;;  %v3127_v15 = vadd.f32 %v8950_v14, %v8948_v12 }
 0xaf0   : > { %v8956_v27 = vpop.eup %6271  ;;  %6279 = vpow2.f32 %v3089_v42 }
 0xaf1   : > { %3128 = vadd.xlane.f32.xlu0 %v3127_v15  ;;  %v3130_v7 = vadd.f32 %v8956_v27, %v8952_v33 }
 0xaf3   : > { %3131 = vadd.xlane.f32.xlu1 %v3130_v7 }
 0xaf5   : > { %v8960_v56 = vpop.eup %6273 }
 0xaf6   : > { %v8962_v58 = vpop.eup %6275 }
 0xaf7   : > { %v3133_v35 = vadd.f32 %v8962_v58, %v8960_v56 }
 0xaf9   : > { %v8966_v26 = vpop.eup %6277  ;;  %3134 = vadd.xlane.f32.xlu0 %v3133_v35 }
 0xafa   : > { %v8968_v55 = vpop.eup %6279 }
 0xafb   : > { %v3136_v2 = vadd.f32 %v8968_v55, %v8966_v26 }
 0xafd   : > { %3137 = vadd.xlane.f32.xlu1 %v3136_v2 }
 0xb26   : > { %3254 = vxpose.xlu0.c.b16.start [1/2] (short) %v10664_v39, 128 }
 0xb2a   : > { %3255 = vxpose.xlu0.c.b16.end [2/2] (short) %v10667_v36, 128 }
 0xb4e   : > { %v3093_v1 = vpop.xlane.xlu0 %3092 }
 0xb4f   : > { %6281 = vrcp.f32 %v3093_v1 }
 0xb52   : > { %v3096_v29 = vpop.xlane.xlu0 %3095 }
 0xb53   : > { %6283 = vrcp.f32 %v3096_v29 }
 0xb56   : > { %v3099_v42 = vpop.xlane.xlu0 %3098 }
 0xb57   : > { %6285 = vrcp.f32 %v3099_v42 }
 0xb59   : > { %v6282_v7 = vpop.eup %6281 }
 0xb5a   : > { %v3102_v15 = vpop.xlane.xlu0 %3101  ;;  %v3156_v2 = vmul.f32 %v6282_v7, %v8854_v23  ;;  %v3155_v17 = vmul.f32 %v6282_v7, %v8852_v3 }
 0xb5b   : > { %6287 = vrcp.f32 %v3102_v15 }
 0xb5d   : > { %v6284_v35 = vpop.eup %6283 }
 0xb5e   : > { %v3105_v10 = vpop.xlane.xlu0 %3104  ;;  %v3158_v19 = vmul.f32 %v6284_v35, %v8862_v31  ;;  %v3157_v39 = vmul.f32 %v6284_v35, %v8860_v49 }
 0xb5f   : > { %6289 = vrcp.f32 %v3105_v10 }
 0xb60   : > { %v3188_v53 = vpack.c.bf16 %v3158_v19, %v3156_v2  ;;  %v3187_v59 = vpack.c.bf16 %v3157_v39, %v3155_v17 }
 0xb61   : > { %v6286_v1 = vpop.eup %6285 }
 0xb62   : > { %3203 = vmatprep.subr.bf16.mxu1 %v3188_v53  ;;  %v3108_v36 = vpop.xlane.xlu0 %3107  ;;  %v3160_v15 = vmul.f32 %v6286_v1, %v8870_v24  ;;  %v3159_v31 = vmul.f32 %v6286_v1, %v8868_v34 }
 0xb63   : > { %6291 = vrcp.f32 %v3108_v36  ;;  %3204 = vmatpush1.bf16.xpose.msra.mxu1 %v3187_v59 }
 0xb65   : > { %v6288_v29 = vpop.eup %6287 }
 0xb66   : > { %v3111_v42 = vpop.xlane.xlu0 %3110  ;;  %v3162_v23 = vmul.f32 %v6288_v29, %v8878_v61  ;;  %v3161_v3 = vmul.f32 %v6288_v29, %v8876_v48 }
 0xb67   : > { %6293 = vrcp.f32 %v3111_v42 }
 0xb68   : > { %v3190_v7 = vpack.c.bf16 %v3162_v23, %v3160_v15  ;;  %v3189_v49 = vpack.c.bf16 %v3161_v3, %v3159_v31 }
 0xb69   : > { %v6290_v10 = vpop.eup %6289 }
 0xb6a   : > { %v3114_v35 = vpop.xlane.xlu1 %3113  ;;  %3205 = vmatprep.subr.bf16.mxu1 %v3190_v7  ;;  %v3164_v17 = vmul.f32 %v6290_v10, %v8886_v63  ;;  %v3163_v61 = vmul.f32 %v6290_v10, %v8884_v44 }
 0xb6b   : > { %6295 = vrcp.f32 %v3114_v35  ;;  %3206 = vmatpush1.bf16.xpose.msra.mxu1 %v3189_v49 }
 0xb6d   : > { %v6292_v2 = vpop.eup %6291 }
 0xb6e   : > { %v3117_v19 = vpop.xlane.xlu0 %3116  ;;  %v3166_v24 = vmul.f32 %v6292_v2, %v8894_v60  ;;  %v3165_v34 = vmul.f32 %v6292_v2, %v8892_v57 }
 0xb6f   : > { %6297 = vrcp.f32 %v3117_v19 }
 0xb70   : > { %v3192_v39 = vpack.c.bf16 %v3166_v24, %v3164_v17  ;;  %v3191_v48 = vpack.c.bf16 %v3165_v34, %v3163_v61 }
 0xb71   : > { %v6294_v59 = vpop.eup %6293 }
 0xb72   : > { %v3120_v53 = vpop.xlane.xlu1 %3119  ;;  %3207 = vmatprep.subr.bf16.mxu1 %v3192_v39  ;;  %v3168_v29 = vmul.f32 %v6294_v59, %v8902_v54  ;;  %v3167_v60 = vmul.f32 %v6294_v59, %v8900_v40 }
 0xb73   : > { %6299 = vrcp.f32 %v3120_v53  ;;  %3208 = vmatpush1.bf16.xpose.msra.mxu1 %v3191_v48 }
 0xb75   : > { %v6296_v36 = vpop.eup %6295 }
 0xb76   : > { %v3123_v1 = vpop.xlane.xlu0 %3122  ;;  %v3170_v63 = vmul.f32 %v6296_v36, %v8910_v18  ;;  %v3169_v44 = vmul.f32 %v6296_v36, %v8908_v46 }
 0xb77   : > { %6301 = vrcp.f32 %v3123_v1 }
 0xb78   : > { %v3194_v42 = vpack.c.bf16 %v3170_v63, %v3168_v29  ;;  %v3193_v57 = vpack.c.bf16 %v3169_v44, %v3167_v60  ;;  %v10669_v44 = vld [vmem:[#allocation57_spill] sm:$0xff] }
 0xb79   : > { %v6298_v23 = vpop.eup %6297 }
 0xb7a   : > { %v3126_v15 = vpop.xlane.xlu1 %3125  ;;  %3209 = vmatprep.subr.bf16.mxu1 %v3194_v42  ;;  %v3172_v7 = vmul.f32 %v6298_v23, %v8918_v8  ;;  %v3171_v18 = vmul.f32 %v6298_v23, %v8916_v16  ;;  %v10671_v42 = vpack.c.bf16 %v8605_v32, %v8594_v62  ;;  %v10682_v62 = vpack.c.bf16 %v8620_v21, %v8615_v41 }
 0xb7b   : > { %6303 = vrcp.f32 %v3126_v15  ;;  %3210 = vmatpush1.bf16.xpose.msra.mxu1 %v3193_v57  ;;  %v10677_v15 = vld [vmem:[#allocation61_spill] sm:$0xff] }
 0xb7d   : > { %v6300_v31 = vpop.eup %6299 }
 0xb7e   : > { %v3129_v3 = vpop.xlane.xlu0 %3128  ;;  %v3174_v54 = vmul.f32 %v6300_v31, %v8928_v6  ;;  %v3173_v40 = vmul.f32 %v6300_v31, %v8924_v45  ;;  %v10679_v31 = vld [vmem:[#allocation62_spill] sm:$0xff] }
 0xb7f   : > { %6305 = vrcp.f32 %v3129_v3  ;;  %v10680_v3 = vld [vmem:[#allocation60_spill] sm:$0xff] }
 0xb80   : > { %v3132_v46 = vpop.xlane.xlu1 %3131  ;;  %v3196_v49 = vpack.c.bf16 %v3174_v54, %v3172_v7  ;;  %v3195_v35 = vpack.c.bf16 %v3173_v40, %v3171_v18  ;;  %v10681_v7 = vpack.c.bf16 %v10679_v31, %v10680_v3 }
 0xb81   : > { %6307 = vrcp.f32 %v3132_v46  ;;  %v6302_v10 = vpop.eup %6301  ;;  %v10683_v46 = vpack.c.bf16 %v8663_v4, %v8657_v9 }
 0xb82   : > { %3211 = vmatprep.subr.bf16.mxu1 %v3196_v49  ;;  %v3176_v17 = vmul.f32 %v6302_v10, %v8934_v30  ;;  %v3175_v6 = vmul.f32 %v6302_v10, %v8932_v13 }
 0xb83   : > { %3212 = vmatpush1.bf16.xpose.msra.mxu1 %v3195_v35 }
 0xb85   : > { %v6304_v2 = vpop.eup %6303 }
 0xb86   : > { %v3135_v19 = vpop.xlane.xlu0 %3134  ;;  %v3178_v8 = vmul.f32 %v6304_v2, %v8942_v20  ;;  %v3177_v16 = vmul.f32 %v6304_v2, %v8940_v37 }
 0xb87   : > { %6309 = vrcp.f32 %v3135_v19 }
 0xb88   : > { %v3198_v24 = vpack.c.bf16 %v3178_v8, %v3176_v17  ;;  %v3197_v45 = vpack.c.bf16 %v3177_v16, %v3175_v6 }
 0xb89   : > { %v6306_v61 = vpop.eup %6305 }
 0xb8a   : > { %v3138_v34 = vpop.xlane.xlu1 %3137  ;;  %3213 = vmatprep.subr.bf16.mxu1 %v3198_v24  ;;  %v3180_v48 = vmul.f32 %v6306_v61, %v8950_v14  ;;  %v3179_v13 = vmul.f32 %v6306_v61, %v8948_v12 }
 0xb8b   : > { %v6308_v39 = vpop.eup %6307  ;;  %6311 = vrcp.f32 %v3138_v34  ;;  %3214 = vmatpush1.bf16.xpose.msra.mxu1 %v3197_v45 }
 0xb8c   : > { %v3182_v53 = vmul.f32 %v6308_v39, %v8956_v27  ;;  %v3181_v30 = vmul.f32 %v6308_v39, %v8952_v33  ;;  %v10668_v33 = vld [vmem:[#allocation59_spill] sm:$0xff]  ;;  %v3262_v32 = vpop.trf.xlu0 }
 0xb8d   : > { %v10670_v12 = vpack.c.bf16 %v10668_v33, %v10669_v44 }
 0xb8e   : > { %v3200_v20 = vpack.c.bf16 %v3182_v53, %v3180_v48  ;;  %v3199_v37 = vpack.c.bf16 %v3181_v30, %v3179_v13 }
 0xb90   : > { %3215 = vmatprep.subr.bf16.mxu1 %v3200_v20 }
 0xb91   : > { %v6310_v59 = vpop.eup %6309 }
 0xb92   : > { %v3184_v1 = vmul.f32 %v6310_v59, %v8962_v58  ;;  %v3183_v63 = vmul.f32 %v6310_v59, %v8960_v56  ;;  %v10672_v58 = vpack.c.bf16 %v8624_v38, %v8618_v47  ;;  %v10674_v56 = vld [vmem:[#allocation56_spill] sm:$0xff]  ;;  %v3263_v47 = vpop.trf.xlu0 }
 0xb93   : > { %3216 = vmatpush1.bf16.xpose.msra.mxu1 %v3199_v37 }
 0xb95   : > { %v6312_v36 = vpop.eup %6311 }
 0xb96   : > { %v3186_v29 = vmul.f32 %v6312_v36, %v8968_v55  ;;  %v3185_v14 = vmul.f32 %v6312_v36, %v8966_v26  ;;  %v10673_v55 = vld [vmem:[#allocation58_spill] sm:$0xff]  ;;  %v10676_v26 = vld [vmem:[#allocation63_spill] sm:$0xff]  ;;  %v3264_v38 = vpop.trf.xlu0 }
 0xb97   : > { %v10675_v57 = vpack.c.bf16 %v10673_v55, %v10674_v56  ;;  %v10678_v23 = vpack.c.bf16 %v10676_v26, %v10677_v15 }
 0xb98   : > { %v3202_v60 = vpack.c.bf16 %v3186_v29, %v3184_v1  ;;  %v3201_v27 = vpack.c.bf16 %v3185_v14, %v3183_v63 }
 0xb9a   : > { %3217 = vmatprep.subr.bf16.mxu1 %v3202_v60  ;;  %v3265_v54 = vpop.trf.xlu0 }
 0xb9b   : > { %3218 = vmatpush1.bf16.xpose.msra.mxu1 %v3201_v27 }
 0xb9c   : > { %3294 = vmatprep.subr.bf16.mxu1 %v10670_v12 }
 0xb9e   : > { %v3266_v41 = vpop.trf.xlu0 }
 0xba2   : > { %3236 = vmatmul.mubr.bf16.vlgmr.msra.gmra.mrb[144].mxu1 %v10671_v42  ;;  %v3267_v21 = vpop.trf.xlu0 }
 0xba3   : > { %3243 = vmatprep.mubr.bf16.mxu1 %v10672_v58  ;;  %3295 = vmatpush1.bf16.msra.mxu1 %v10675_v57 }
 0xba4   : > { %3296 = vmatprep.subr.bf16.mxu1 %v10678_v23 }
 0xba6   : > { %v3268_v18 = vpop.trf.xlu0 }
 0xba7   : > { %3297 = vmatpush1.bf16.msra.mxu1 %v10681_v7 }
 0xbaa   : > { %3244 = vmatmul.mubr.bf16.gmra.mrb[148].mxu1 %v10682_v62  ;;  %v3269_v40 = vpop.trf.xlu0 }
 0xbab   : > { %3326 = vmatprep.mubr.bf16.mxu1 %v10597_v0 }
 0xbb2   : > { %5590 = vmatmul.mubr.msk.bf16.vlgmr.msra.gmra.mrb[152].mxu1 %vm1429_vm2, %v3262_v32 }
 0xbb3   : > { %3336 = vmatprep.mubr.bf16.mxu1 %v10597_v0 }
 0xbba   : > { %5591 = vmatmul.mubr.msk.bf16.gmra.mrb[156].mxu1 %vm1429_vm2, %v3263_v47 }
 0xbbb   : > { %3346 = vmatprep.mubr.bf16.mxu1 %v10597_v0 }
 0xbc2   : > { %5592 = vmatmul.mubr.msk.bf16.gmra.mrb[160].mxu1 %vm1429_vm2, %v3264_v38 }
 0xbc3   : > { %3356 = vmatprep.mubr.bf16.mxu1 %v10597_v0 }
 0xbca   : > { %5593 = vmatmul.mubr.msk.bf16.gmra.mrb[164].mxu1 %vm1429_vm2, %v3265_v54 }
 0xbcb   : > { %3366 = vmatprep.mubr.bf16.mxu1 %v10597_v0 }
 0xbd2   : > { %5594 = vmatmul.mubr.msk.bf16.gmra.mrb[168].mxu1 %vm1429_vm2, %v3266_v41 }
 0xbd3   : > { %3376 = vmatprep.mubr.bf16.mxu1 %v10597_v0 }
 0xbda   : > { %5595 = vmatmul.mubr.msk.bf16.gmra.mrb[172].mxu1 %vm1429_vm2, %v3267_v21 }
 0xbdb   : > { %3386 = vmatprep.mubr.bf16.mxu1 %v10597_v0 }
 0xbe2   : > { %5596 = vmatmul.mubr.msk.bf16.gmra.mrb[176].mxu1 %vm1429_vm2, %v3268_v18 }
 0xbe3   : > { %3396 = vmatprep.mubr.bf16.mxu1 %v10597_v0 }
 0xbea   : > { %5597 = vmatmul.mubr.msk.bf16.gmra.mrb[180].mxu1 %vm1429_vm2, %v3269_v40 }
 0xbeb   : > { %4155 = vmatprep.mubr.bf16.mxu1 %v10683_v46 }
 0xc75   : > { %v9050_v49 = vpop.f32.mrb[144].mxu1 }
 0xc76   : > { %v3239_v35 = vpop.f32.mrb[145].mxu1 }
 0xc77   : > { %v9052_v10 = vpop.f32.mrb[146].mxu1 }
 0xc78   : > { %v3242_v19 = vpop.f32.mrb[147].mxu1 }
 0xc7d   : > { %v9056_v17 = vpop.f32.mrb[148].mxu1 }
 0xc7e   : > { %v3247_v8 = vpop.f32.mrb[149].mxu1 }
 0xc7f   : > { %v9058_v6 = vpop.f32.mrb[150].mxu1 }
 0xc80   : > { %v3250_v24 = vpop.f32.mrb[151].mxu1 }
 0xc85   : > { %v9062_v9 = vpop.f32.mrb[152].mxu1 }
 0xc86   : > { %v9064_v4 = vpop.f32.mrb[153].mxu1 }
 0xc87   : > { %v3407_v45 = vmax.f32 %v9062_v9, %v9064_v4  ;;  %v9068_v61 = vpop.f32.mrb[154].mxu1 }
 0xc88   : > { %v9070_v34 = vpop.f32.mrb[155].mxu1 }
 0xc89   : > { %3408 = vmax.xlane.f32.xlu1 %v3407_v45  ;;  %v3410_v39 = vmax.f32 %v9068_v61, %v9070_v34 }
 0xc8d   : > { %3411 = vmax.xlane.f32.xlu1 %v3410_v39  ;;  %v9074_v48 = vpop.f32.mrb[156].mxu1 }
 0xc8e   : > { %v9076_v53 = vpop.f32.mrb[157].mxu1 }
 0xc8f   : > { %v3413_v30 = vmax.f32 %v9074_v48, %v9076_v53  ;;  %v9080_v20 = vpop.f32.mrb[158].mxu1 }
 0xc90   : > { %v9082_v13 = vpop.f32.mrb[159].mxu1 }
 0xc91   : > { %3414 = vmax.xlane.f32.xlu1 %v3413_v30  ;;  %v3416_v37 = vmax.f32 %v9080_v20, %v9082_v13 }
 0xc95   : > { %3417 = vmax.xlane.f32.xlu1 %v3416_v37  ;;  %v9086_v59 = vpop.f32.mrb[160].mxu1 }
 0xc96   : > { %v9088_v36 = vpop.f32.mrb[161].mxu1 }
 0xc97   : > { %v3419_v1 = vmax.f32 %v9086_v59, %v9088_v36  ;;  %v9092_v29 = vpop.f32.mrb[162].mxu1 }
 0xc98   : > { %v9094_v63 = vpop.f32.mrb[163].mxu1 }
 0xc99   : > { %3420 = vmax.xlane.f32.xlu1 %v3419_v1  ;;  %v3422_v14 = vmax.f32 %v9092_v29, %v9094_v63 }
 0xc9d   : > { %3423 = vmax.xlane.f32.xlu1 %v3422_v14  ;;  %v9098_v60 = vpop.f32.mrb[164].mxu1 }
 0xc9e   : > { %v9100_v27 = vpop.f32.mrb[165].mxu1 }
 0xc9f   : > { %v3425_v33 = vmax.f32 %v9098_v60, %v9100_v27  ;;  %v9104_v44 = vpop.f32.mrb[166].mxu1 }
 0xca0   : > { %v9106_v12 = vpop.f32.mrb[167].mxu1 }
 0xca1   : > { %3426 = vmax.xlane.f32.xlu1 %v3425_v33  ;;  %v3428_v42 = vmax.f32 %v9104_v44, %v9106_v12 }
 0xca5   : > { %3429 = vmax.xlane.f32.xlu1 %v3428_v42  ;;  %v9110_v58 = vpop.f32.mrb[168].mxu1 }
 0xca6   : > { %v9112_v55 = vpop.f32.mrb[169].mxu1 }
 0xca7   : > { %v3431_v56 = vmax.f32 %v9110_v58, %v9112_v55  ;;  %v9116_v57 = vpop.f32.mrb[170].mxu1 }
 0xca8   : > { %v9118_v26 = vpop.f32.mrb[171].mxu1 }
 0xca9   : > { %3432 = vmax.xlane.f32.xlu1 %v3431_v56  ;;  %v3434_v15 = vmax.f32 %v9116_v57, %v9118_v26 }
 0xcad   : > { %3435 = vmax.xlane.f32.xlu1 %v3434_v15  ;;  %v9122_v23 = vpop.f32.mrb[172].mxu1 }
 0xcae   : > { %v9124_v31 = vpop.f32.mrb[173].mxu1 }
 0xcaf   : > { %v3437_v3 = vmax.f32 %v9122_v23, %v9124_v31  ;;  %v9128_v7 = vpop.f32.mrb[174].mxu1 }
 0xcb0   : > { %v9130_v62 = vpop.f32.mrb[175].mxu1 }
 0xcb1   : > { %3438 = vmax.xlane.f32.xlu1 %v3437_v3  ;;  %v3440_v32 = vmax.f32 %v9128_v7, %v9130_v62 }
 0xcb5   : > { %3441 = vmax.xlane.f32.xlu1 %v3440_v32  ;;  %v9134_v47 = vpop.f32.mrb[176].mxu1 }
 0xcb6   : > { %v9136_v38 = vpop.f32.mrb[177].mxu1 }
 0xcb7   : > { %v3443_v54 = vmax.f32 %v9134_v47, %v9136_v38  ;;  %v9140_v41 = vpop.f32.mrb[178].mxu1 }
 0xcb8   : > { %v9142_v21 = vpop.f32.mrb[179].mxu1 }
 0xcb9   : > { %v3446_v18 = vmax.f32 %v9140_v41, %v9142_v21  ;;  %3444 = vmax.xlane.f32.xlu0 %v3443_v54 }
 0xcbb   : > { %3447 = vmax.xlane.f32.xlu1 %v3446_v18 }
 0xcbd   : > { %v9146_v40 = vpop.f32.mrb[180].mxu1 }
 0xcbe   : > { %v9148_v46 = vpop.f32.mrb[181].mxu1 }
 0xcbf   : > { %v3449_v35 = vmax.f32 %v9146_v40, %v9148_v46  ;;  %v9152_v19 = vpop.f32.mrb[182].mxu1 }
 0xcc0   : > { %v9154_v8 = vpop.f32.mrb[183].mxu1 }
 0xcc1   : > { %3450 = vmax.xlane.f32.xlu1 %v3449_v35  ;;  %v3452_v24 = vmax.f32 %v9152_v19, %v9154_v8 }
 0xcc5   : > { %3453 = vmax.xlane.f32.xlu1 %v3452_v24 }
 0xd16   : > { %v3409_v45 = vpop.xlane.xlu1 %3408 }
 0xd17   : > { %v3455_v39 = vsub.f32 %v9062_v9, %v3409_v45  ;;  %v3456_v30 = vsub.f32 %v9064_v4, %v3409_v45 }
 0xd19   : > { %v3487_v37 = vmul.f32 1.442695, %v3455_v39  ;;  %v3489_v1 = vmul.f32 1.442695, %v3456_v30 }
 0xd1a   : > { %v3412_v14 = vpop.xlane.xlu1 %3411 }
 0xd1b   : > { %6313 = vpow2.f32 %v3487_v37  ;;  %v3457_v33 = vsub.f32 %v9068_v61, %v3412_v14  ;;  %v3458_v42 = vsub.f32 %v9070_v34, %v3412_v14 }
 0xd1c   : > { %6315 = vpow2.f32 %v3489_v1 }
 0xd1d   : > { %v3491_v56 = vmul.f32 1.442695, %v3457_v33  ;;  %v3493_v15 = vmul.f32 1.442695, %v3458_v42 }
 0xd1e   : > { %v3415_v3 = vpop.xlane.xlu1 %3414 }
 0xd1f   : > { %6317 = vpow2.f32 %v3491_v56  ;;  %v3459_v32 = vsub.f32 %v9074_v48, %v3415_v3  ;;  %v3460_v54 = vsub.f32 %v9076_v53, %v3415_v3 }
 0xd20   : > { %6319 = vpow2.f32 %v3493_v15 }
 0xd21   : > { %v3495_v9 = vmul.f32 1.442695, %v3459_v32  ;;  %v3497_v4 = vmul.f32 1.442695, %v3460_v54 }
 0xd22   : > { %v3418_v18 = vpop.xlane.xlu1 %3417 }
 0xd23   : > { %6321 = vpow2.f32 %v3495_v9  ;;  %v3461_v35 = vsub.f32 %v9080_v20, %v3418_v18  ;;  %v3462_v61 = vsub.f32 %v9082_v13, %v3418_v18 }
 0xd24   : > { %6323 = vpow2.f32 %v3497_v4 }
 0xd25   : > { %v9166_v34 = vpop.eup %6313  ;;  %v3499_v24 = vmul.f32 1.442695, %v3461_v35  ;;  %v3501_v45 = vmul.f32 1.442695, %v3462_v61 }
 0xd26   : > { %v9168_v39 = vpop.eup %6315  ;;  %v3421_v30 = vpop.xlane.xlu1 %3420 }
 0xd27   : > { %6325 = vpow2.f32 %v3499_v24  ;;  %v3463_v48 = vsub.f32 %v9086_v59, %v3421_v30  ;;  %v3464_v53 = vsub.f32 %v9088_v36, %v3421_v30  ;;  %v3551_v37 = vadd.f32 %v9168_v39, %v9166_v34 }
 0xd28   : > { %6327 = vpow2.f32 %v3501_v45 }
 0xd29   : > { %v9174_v20 = vpop.eup %6317  ;;  %v3503_v13 = vmul.f32 1.442695, %v3463_v48  ;;  %v3505_v1 = vmul.f32 1.442695, %v3464_v53  ;;  %3552 = vadd.xlane.f32.xlu1 %v3551_v37 }
 0xd2a   : > { %v9176_v14 = vpop.eup %6319  ;;  %v3424_v33 = vpop.xlane.xlu1 %3423 }
 0xd2b   : > { %6329 = vpow2.f32 %v3503_v13  ;;  %v3465_v42 = vsub.f32 %v9092_v29, %v3424_v33  ;;  %v3466_v56 = vsub.f32 %v9094_v63, %v3424_v33  ;;  %v3554_v59 = vadd.f32 %v9176_v14, %v9174_v20 }
 0xd2c   : > { %6331 = vpow2.f32 %v3505_v1 }
 0xd2d   : > { %v9182_v36 = vpop.eup %6321  ;;  %v3507_v15 = vmul.f32 1.442695, %v3465_v42  ;;  %v3509_v3 = vmul.f32 1.442695, %v3466_v56  ;;  %3555 = vadd.xlane.f32.xlu1 %v3554_v59 }
 0xd2e   : > { %v9184_v32 = vpop.eup %6323  ;;  %v3427_v54 = vpop.xlane.xlu1 %3426 }
 0xd2f   : > { %6333 = vpow2.f32 %v3507_v15  ;;  %v3467_v9 = vsub.f32 %v9098_v60, %v3427_v54  ;;  %v3468_v4 = vsub.f32 %v9100_v27, %v3427_v54  ;;  %v3557_v29 = vadd.f32 %v9184_v32, %v9182_v36 }
 0xd30   : > { %6335 = vpow2.f32 %v3509_v3 }
 0xd31   : > { %v9190_v63 = vpop.eup %6325  ;;  %v3511_v18 = vmul.f32 1.442695, %v3467_v9  ;;  %v3513_v35 = vmul.f32 1.442695, %v3468_v4  ;;  %3558 = vadd.xlane.f32.xlu1 %v3557_v29 }
 0xd32   : > { %v9192_v61 = vpop.eup %6327  ;;  %v3430_v24 = vpop.xlane.xlu1 %3429 }
 0xd33   : > { %6337 = vpow2.f32 %v3511_v18  ;;  %v3469_v45 = vsub.f32 %v9104_v44, %v3430_v24  ;;  %v3470_v30 = vsub.f32 %v9106_v12, %v3430_v24  ;;  %v3560_v60 = vadd.f32 %v9192_v61, %v9190_v63 }
 0xd34   : > { %6339 = vpow2.f32 %v3513_v35 }
 0xd35   : > { %v9198_v27 = vpop.eup %6329  ;;  %v3515_v48 = vmul.f32 1.442695, %v3469_v45  ;;  %v3517_v53 = vmul.f32 1.442695, %v3470_v30  ;;  %3561 = vadd.xlane.f32.xlu1 %v3560_v60 }
 0xd36   : > { %v9200_v37 = vpop.eup %6331  ;;  %v3433_v13 = vpop.xlane.xlu1 %3432 }
 0xd37   : > { %6341 = vpow2.f32 %v3515_v48  ;;  %v3471_v1 = vsub.f32 %v9110_v58, %v3433_v13  ;;  %v3472_v33 = vsub.f32 %v9112_v55, %v3433_v13  ;;  %v3563_v44 = vadd.f32 %v9200_v37, %v9198_v27 }
 0xd38   : > { %6343 = vpow2.f32 %v3517_v53 }
 0xd39   : > { %v9206_v12 = vpop.eup %6333  ;;  %v3519_v42 = vmul.f32 1.442695, %v3471_v1  ;;  %v3521_v56 = vmul.f32 1.442695, %v3472_v33  ;;  %3564 = vadd.xlane.f32.xlu1 %v3563_v44 }
 0xd3a   : > { %v9208_v59 = vpop.eup %6335  ;;  %v3436_v15 = vpop.xlane.xlu1 %3435 }
 0xd3b   : > { %6345 = vpow2.f32 %v3519_v42  ;;  %v3473_v3 = vsub.f32 %v9116_v57, %v3436_v15  ;;  %v3474_v54 = vsub.f32 %v9118_v26, %v3436_v15  ;;  %v3566_v58 = vadd.f32 %v9208_v59, %v9206_v12 }
 0xd3c   : > { %6347 = vpow2.f32 %v3521_v56 }
 0xd3d   : > { %v9214_v55 = vpop.eup %6337  ;;  %v3523_v9 = vmul.f32 1.442695, %v3473_v3  ;;  %v3525_v4 = vmul.f32 1.442695, %v3474_v54  ;;  %3567 = vadd.xlane.f32.xlu1 %v3566_v58 }
 0xd3e   : > { %v9216_v29 = vpop.eup %6339  ;;  %v3439_v18 = vpop.xlane.xlu1 %3438 }
 0xd3f   : > { %6349 = vpow2.f32 %v3523_v9  ;;  %v3475_v35 = vsub.f32 %v9122_v23, %v3439_v18  ;;  %v3476_v24 = vsub.f32 %v9124_v31, %v3439_v18  ;;  %v3569_v57 = vadd.f32 %v9216_v29, %v9214_v55 }
 0xd40   : > { %6351 = vpow2.f32 %v3525_v4 }
 0xd41   : > { %v9222_v26 = vpop.eup %6341  ;;  %v3527_v45 = vmul.f32 1.442695, %v3475_v35  ;;  %v3529_v30 = vmul.f32 1.442695, %v3476_v24  ;;  %3570 = vadd.xlane.f32.xlu1 %v3569_v57 }
 0xd42   : > { %v9224_v60 = vpop.eup %6343  ;;  %v3442_v48 = vpop.xlane.xlu1 %3441 }
 0xd43   : > { %6353 = vpow2.f32 %v3527_v45  ;;  %v3477_v53 = vsub.f32 %v9128_v7, %v3442_v48  ;;  %v3478_v13 = vsub.f32 %v9130_v62, %v3442_v48  ;;  %v3572_v23 = vadd.f32 %v9224_v60, %v9222_v26 }
 0xd44   : > { %6355 = vpow2.f32 %v3529_v30 }
 0xd45   : > { %v9230_v31 = vpop.eup %6345  ;;  %v3531_v1 = vmul.f32 1.442695, %v3477_v53  ;;  %v3533_v33 = vmul.f32 1.442695, %v3478_v13  ;;  %3573 = vadd.xlane.f32.xlu0 %v3572_v23 }
 0xd46   : > { %v9232_v44 = vpop.eup %6347  ;;  %v3445_v42 = vpop.xlane.xlu0 %3444 }
 0xd47   : > { %6357 = vpow2.f32 %v3531_v1  ;;  %v3479_v56 = vsub.f32 %v9134_v47, %v3445_v42  ;;  %v3480_v15 = vsub.f32 %v9136_v38, %v3445_v42  ;;  %v3575_v7 = vadd.f32 %v9232_v44, %v9230_v31 }
 0xd48   : > { %6359 = vpow2.f32 %v3533_v33  ;;  %v3448_v62 = vpop.xlane.xlu1 %3447 }
 0xd49   : > { %v9238_v3 = vpop.eup %6349  ;;  %v3535_v54 = vmul.f32 1.442695, %v3479_v56  ;;  %v3537_v58 = vmul.f32 1.442695, %v3480_v15  ;;  %v3481_v9 = vsub.f32 %v9140_v41, %v3448_v62  ;;  %v3482_v4 = vsub.f32 %v9142_v21, %v3448_v62  ;;  %3576 = vadd.xlane.f32.xlu1 %v3575_v7 }
 0xd4a   : > { %v9242_v18 = vpop.eup %6351 }
 0xd4b   : > { %6361 = vpow2.f32 %v3535_v54  ;;  %v3539_v47 = vmul.f32 1.442695, %v3481_v9  ;;  %v3541_v35 = vmul.f32 1.442695, %v3482_v4  ;;  %v3578_v38 = vadd.f32 %v9242_v18, %v9238_v3 }
 0xd4c   : > { %6363 = vpow2.f32 %v3537_v58 }
 0xd4d   : > { %v9246_v24 = vpop.eup %6353  ;;  %6365 = vpow2.f32 %v3539_v47  ;;  %3579 = vadd.xlane.f32.xlu0 %v3578_v38 }
 0xd4e   : > { %v9248_v57 = vpop.eup %6355  ;;  %6367 = vpow2.f32 %v3541_v35  ;;  %v3451_v41 = vpop.xlane.xlu1 %3450 }
 0xd4f   : > { %v3483_v21 = vsub.f32 %v9146_v40, %v3451_v41  ;;  %v3484_v45 = vsub.f32 %v9148_v46, %v3451_v41  ;;  %v3581_v30 = vadd.f32 %v9248_v57, %v9246_v24  ;;  %v10684_v41 = vld [vmem:[#allocation31_spill] sm:$0xff] }
 0xd51   : > { %v9254_v48 = vpop.eup %6357  ;;  %v3543_v53 = vmul.f32 1.442695, %v3483_v21  ;;  %v3545_v13 = vmul.f32 1.442695, %v3484_v45  ;;  %3582 = vadd.xlane.f32.xlu1 %v3581_v30  ;;  %v10685_v21 = vld [vmem:[#allocation29_spill] sm:$0xff]  ;;  %v10687_v30 = vld [vmem:[#allocation30_spill] sm:$0xff] }
 0xd52   : > { %v9256_v23 = vpop.eup %6359  ;;  %v3454_v1 = vpop.xlane.xlu1 %3453  ;;  %v10686_v45 = vpack.c.bf16 %v10684_v41, %v10685_v21 }
 0xd53   : > { %6369 = vpow2.f32 %v3543_v53  ;;  %v3485_v33 = vsub.f32 %v9152_v19, %v3454_v1  ;;  %v3486_v42 = vsub.f32 %v9154_v8, %v3454_v1  ;;  %v3584_v40 = vadd.f32 %v9256_v23, %v9254_v48  ;;  %v10688_v53 = vld [vmem:[#allocation28_spill] sm:$0xff] }
 0xd54   : > { %6371 = vpow2.f32 %v3545_v13  ;;  %v10689_v13 = vpack.c.bf16 %v10687_v30, %v10688_v53 }
 0xd55   : > { %v9262_v46 = vpop.eup %6361  ;;  %v3547_v56 = vmul.f32 1.442695, %v3485_v33  ;;  %v3549_v15 = vmul.f32 1.442695, %v3486_v42  ;;  %3585 = vadd.xlane.f32.xlu0 %v3584_v40 }
 0xd56   : > { %v9264_v7 = vpop.eup %6363 }
 0xd57   : > { %v9266_v62 = vpop.eup %6365  ;;  %6373 = vpow2.f32 %v3547_v56  ;;  %v3587_v54 = vadd.f32 %v9264_v7, %v9262_v46 }
 0xd58   : > { %v9270_v19 = vpop.eup %6367  ;;  %6375 = vpow2.f32 %v3549_v15 }
 0xd59   : > { %3588 = vadd.xlane.f32.xlu1 %v3587_v54  ;;  %v3590_v8 = vadd.f32 %v9270_v19, %v9266_v62 }
 0xd5b   : > { %3591 = vadd.xlane.f32.xlu0 %v3590_v8 }
 0xd5d   : > { %v9274_v58 = vpop.eup %6369 }
 0xd5e   : > { %v9276_v9 = vpop.eup %6371 }
 0xd5f   : > { %v3593_v4 = vadd.f32 %v9276_v9, %v9274_v58 }
 0xd61   : > { %v9280_v47 = vpop.eup %6373  ;;  %3594 = vadd.xlane.f32.xlu1 %v3593_v4 }
 0xd62   : > { %v9282_v35 = vpop.eup %6375 }
 0xd63   : > { %v3596_v38 = vadd.f32 %v9282_v35, %v9280_v47 }
 0xd65   : > { %3597 = vadd.xlane.f32.xlu0 %v3596_v38 }
 0xd8e   : > { %3714 = vxpose.xlu1.c.b16.start [1/2] (short) %v10686_v45, 128 }
 0xd92   : > { %3715 = vxpose.xlu1.c.b16.end [2/2] (short) %v10689_v13, 128 }
 0xdb6   : > { %v3553_v1 = vpop.xlane.xlu1 %3552 }
 0xdb7   : > { %6377 = vrcp.f32 %v3553_v1 }
 0xdba   : > { %v3556_v33 = vpop.xlane.xlu1 %3555 }
 0xdbb   : > { %6379 = vrcp.f32 %v3556_v33 }
 0xdbe   : > { %v3559_v42 = vpop.xlane.xlu1 %3558 }
 0xdbf   : > { %6381 = vrcp.f32 %v3559_v42 }
 0xdc1   : > { %v6378_v56 = vpop.eup %6377 }
 0xdc2   : > { %v3562_v40 = vpop.xlane.xlu1 %3561  ;;  %v3616_v8 = vmul.f32 %v6378_v56, %v9168_v39  ;;  %v3615_v38 = vmul.f32 %v6378_v56, %v9166_v34 }
 0xdc3   : > { %6383 = vrcp.f32 %v3562_v40 }
 0xdc5   : > { %v6380_v15 = vpop.eup %6379 }
 0xdc6   : > { %v3565_v54 = vpop.xlane.xlu1 %3564  ;;  %v3618_v4 = vmul.f32 %v6380_v15, %v9176_v14  ;;  %v3617_v41 = vmul.f32 %v6380_v15, %v9174_v20 }
 0xdc7   : > { %6385 = vrcp.f32 %v3565_v54 }
 0xdc8   : > { %v3648_v21 = vpack.c.bf16 %v3618_v4, %v3616_v8  ;;  %v3647_v45 = vpack.c.bf16 %v3617_v41, %v3615_v38 }
 0xdc9   : > { %v6382_v53 = vpop.eup %6381 }
 0xdca   : > { %3663 = vmatprep.subr.bf16.mxu0 %v3648_v21  ;;  %v3568_v30 = vpop.xlane.xlu1 %3567  ;;  %v3620_v33 = vmul.f32 %v6382_v53, %v9184_v32  ;;  %v3619_v14 = vmul.f32 %v6382_v53, %v9182_v36 }
 0xdcb   : > { %6387 = vrcp.f32 %v3568_v30  ;;  %3664 = vmatpush1.bf16.xpose.msra.mxu0 %v3647_v45 }
 0xdcd   : > { %v6384_v13 = vpop.eup %6383 }
 0xdce   : > { %v3571_v1 = vpop.xlane.xlu1 %3570  ;;  %v3622_v39 = vmul.f32 %v6384_v13, %v9192_v61  ;;  %v3621_v34 = vmul.f32 %v6384_v13, %v9190_v63 }
 0xdcf   : > { %6389 = vrcp.f32 %v3571_v1 }
 0xdd0   : > { %v3650_v42 = vpack.c.bf16 %v3622_v39, %v3620_v33  ;;  %v3649_v20 = vpack.c.bf16 %v3621_v34, %v3619_v14 }
 0xdd1   : > { %v6386_v56 = vpop.eup %6385 }
 0xdd2   : > { %3665 = vmatprep.subr.bf16.mxu0 %v3650_v42  ;;  %v3574_v40 = vpop.xlane.xlu0 %3573  ;;  %v3624_v8 = vmul.f32 %v6386_v56, %v9200_v37  ;;  %v3623_v61 = vmul.f32 %v6386_v56, %v9198_v27 }
 0xdd3   : > { %6391 = vrcp.f32 %v3574_v40  ;;  %3666 = vmatpush1.bf16.xpose.msra.mxu0 %v3649_v20 }
 0xdd5   : > { %v6388_v15 = vpop.eup %6387 }
 0xdd6   : > { %v3577_v54 = vpop.xlane.xlu1 %3576  ;;  %v3626_v32 = vmul.f32 %v6388_v15, %v9208_v59  ;;  %v3625_v36 = vmul.f32 %v6388_v15, %v9206_v12 }
 0xdd7   : > { %6393 = vrcp.f32 %v3577_v54 }
 0xdd8   : > { %v3652_v4 = vpack.c.bf16 %v3626_v32, %v3624_v8  ;;  %v3651_v63 = vpack.c.bf16 %v3625_v36, %v3623_v61 }
 0xdd9   : > { %v6390_v41 = vpop.eup %6389 }
 0xdda   : > { %3667 = vmatprep.subr.bf16.mxu0 %v3652_v4  ;;  %v3580_v38 = vpop.xlane.xlu0 %3579  ;;  %v3628_v30 = vmul.f32 %v6390_v41, %v9216_v29  ;;  %v3627_v59 = vmul.f32 %v6390_v41, %v9214_v55 }
 0xddb   : > { %6395 = vrcp.f32 %v3580_v38  ;;  %3668 = vmatpush1.bf16.xpose.msra.mxu0 %v3651_v63 }
 0xddd   : > { %v6392_v21 = vpop.eup %6391 }
 0xdde   : > { %v3583_v45 = vpop.xlane.xlu1 %3582  ;;  %v3630_v37 = vmul.f32 %v6392_v21, %v9224_v60  ;;  %v3629_v27 = vmul.f32 %v6392_v21, %v9222_v26 }
 0xddf   : > { %6397 = vrcp.f32 %v3583_v45 }
 0xde0   : > { %v3654_v53 = vpack.c.bf16 %v3630_v37, %v3628_v30  ;;  %v3653_v12 = vpack.c.bf16 %v3629_v27, %v3627_v59  ;;  %v10691_v37 = vld [vmem:[#allocation65_spill] sm:$0xff]  ;;  %v10693_v59 = vpack.c.bf16 %v8634_v11, %v8629_v5  ;;  %v10704_v5 = vpack.c.bf16 %v8645_v43, %v8640_v52 }
 0xde1   : > { %v6394_v1 = vpop.eup %6393 }
 0xde2   : > { %3669 = vmatprep.subr.bf16.mxu0 %v3654_v53  ;;  %v3586_v13 = vpop.xlane.xlu0 %3585  ;;  %v3632_v14 = vmul.f32 %v6394_v1, %v9232_v44  ;;  %v3631_v60 = vmul.f32 %v6394_v1, %v9230_v31  ;;  %v10699_v53 = vld [vmem:[#allocation69_spill] sm:$0xff]  ;;  %v10702_v1 = vld [vmem:[#allocation68_spill] sm:$0xff] }
 0xde3   : > { %6399 = vrcp.f32 %v3586_v13  ;;  %3670 = vmatpush1.bf16.xpose.msra.mxu0 %v3653_v12  ;;  %v10701_v13 = vld [vmem:[#allocation70_spill] sm:$0xff] }
 0xde5   : > { %v6396_v33 = vpop.eup %6395 }
 0xde6   : > { %v3589_v39 = vpop.xlane.xlu1 %3588  ;;  %v3634_v29 = vmul.f32 %v6396_v33, %v9242_v18  ;;  %v3633_v55 = vmul.f32 %v6396_v33, %v9238_v3  ;;  %v10703_v33 = vpack.c.bf16 %v10701_v13, %v10702_v1 }
 0xde7   : > { %6401 = vrcp.f32 %v3589_v39 }
 0xde8   : > { %v3592_v26 = vpop.xlane.xlu0 %3591  ;;  %v3656_v34 = vpack.c.bf16 %v3634_v29, %v3632_v14  ;;  %v3655_v42 = vpack.c.bf16 %v3633_v55, %v3631_v60  ;;  %v10705_v60 = vpack.c.bf16 %v8691_v22, %v8685_v25 }
 0xde9   : > { %6403 = vrcp.f32 %v3592_v26  ;;  %v6398_v20 = vpop.eup %6397 }
 0xdea   : > { %3671 = vmatprep.subr.bf16.mxu0 %v3656_v34  ;;  %v3636_v15 = vmul.f32 %v6398_v20, %v9248_v57  ;;  %v3635_v18 = vmul.f32 %v6398_v20, %v9246_v24 }
 0xdeb   : > { %3672 = vmatpush1.bf16.xpose.msra.mxu0 %v3655_v42 }
 0xded   : > { %v6400_v40 = vpop.eup %6399 }
 0xdee   : > { %v3595_v56 = vpop.xlane.xlu1 %3594  ;;  %v3638_v44 = vmul.f32 %v6400_v40, %v9256_v23  ;;  %v3637_v31 = vmul.f32 %v6400_v40, %v9254_v48 }
 0xdef   : > { %6405 = vrcp.f32 %v3595_v56 }
 0xdf0   : > { %v3658_v54 = vpack.c.bf16 %v3638_v44, %v3636_v15  ;;  %v3657_v3 = vpack.c.bf16 %v3637_v31, %v3635_v18 }
 0xdf1   : > { %v6402_v8 = vpop.eup %6401 }
 0xdf2   : > { %3673 = vmatprep.subr.bf16.mxu0 %v3658_v54  ;;  %v3598_v32 = vpop.xlane.xlu0 %3597  ;;  %v3640_v36 = vmul.f32 %v6402_v8, %v9264_v7  ;;  %v3639_v24 = vmul.f32 %v6402_v8, %v9262_v46 }
 0xdf3   : > { %v6404_v61 = vpop.eup %6403  ;;  %6407 = vrcp.f32 %v3598_v32  ;;  %3674 = vmatpush1.bf16.xpose.msra.mxu0 %v3657_v3 }
 0xdf4   : > { %v3642_v4 = vmul.f32 %v6404_v61, %v9270_v19  ;;  %v3641_v57 = vmul.f32 %v6404_v61, %v9266_v62  ;;  %v10690_v62 = vld [vmem:[#allocation67_spill] sm:$0xff]  ;;  %v3722_v11 = vpop.trf.xlu1 }
 0xdf5   : > { %v10692_v46 = vpack.c.bf16 %v10690_v62, %v10691_v37 }
 0xdf6   : > { %v3660_v23 = vpack.c.bf16 %v3642_v4, %v3640_v36  ;;  %v3659_v48 = vpack.c.bf16 %v3641_v57, %v3639_v24 }
 0xdf8   : > { %3675 = vmatprep.subr.bf16.mxu0 %v3660_v23 }
 0xdf9   : > { %v6406_v63 = vpop.eup %6405 }
 0xdfa   : > { %v3644_v41 = vmul.f32 %v6406_v63, %v9276_v9  ;;  %v3643_v45 = vmul.f32 %v6406_v63, %v9274_v58  ;;  %v10694_v9 = vpack.c.bf16 %v8649_v28, %v8643_v50  ;;  %v10696_v58 = vld [vmem:[#allocation64_spill] sm:$0xff]  ;;  %v3723_v50 = vpop.trf.xlu1 }
 0xdfb   : > { %3676 = vmatpush1.bf16.xpose.msra.mxu0 %v3659_v48 }
 0xdfd   : > { %v6408_v38 = vpop.eup %6407 }
 0xdfe   : > { %v3646_v21 = vmul.f32 %v6408_v38, %v9282_v35  ;;  %v3645_v7 = vmul.f32 %v6408_v38, %v9280_v47  ;;  %v10695_v35 = vld [vmem:[#allocation66_spill] sm:$0xff]  ;;  %v10698_v47 = vld [vmem:[#allocation71_spill] sm:$0xff]  ;;  %v3724_v28 = vpop.trf.xlu1 }
 0xdff   : > { %v10697_v27 = vpack.c.bf16 %v10695_v35, %v10696_v58  ;;  %v10700_v12 = vpack.c.bf16 %v10698_v47, %v10699_v53 }
 0xe00   : > { %v3662_v30 = vpack.c.bf16 %v3646_v21, %v3644_v41  ;;  %v3661_v19 = vpack.c.bf16 %v3645_v7, %v3643_v45 }
 0xe02   : > { %3677 = vmatprep.subr.bf16.mxu0 %v3662_v30  ;;  %v3725_v39 = vpop.trf.xlu1 }
 0xe03   : > { %3678 = vmatpush1.bf16.xpose.msra.mxu0 %v3661_v19 }
 0xe04   : > { %3754 = vmatprep.subr.bf16.mxu0 %v10692_v46 }
 0xe06   : > { %v3726_v52 = vpop.trf.xlu1 }
 0xe0a   : > { %3696 = vmatmul.mubr.bf16.vlgmr.msra.gmra.mrb[168].mxu0 %v10693_v59  ;;  %v3727_v43 = vpop.trf.xlu1 }
 0xe0b   : > { %3703 = vmatprep.mubr.bf16.mxu0 %v10694_v9  ;;  %3755 = vmatpush1.bf16.msra.mxu0 %v10697_v27 }
 0xe0c   : > { %3756 = vmatprep.subr.bf16.mxu0 %v10700_v12 }
 0xe0e   : > { %v3728_v14 = vpop.trf.xlu1 }
 0xe0f   : > { %3757 = vmatpush1.bf16.msra.mxu0 %v10703_v33 }
 0xe12   : > { %3704 = vmatmul.mubr.bf16.gmra.mrb[172].mxu0 %v10704_v5  ;;  %v3729_v29 = vpop.trf.xlu1 }
 0xe13   : > { %3786 = vmatprep.mubr.bf16.mxu0 %v10597_v0 }
 0xe1a   : > { %5598 = vmatmul.mubr.msk.bf16.vlgmr.msra.gmra.mrb[176].mxu0 %vm1429_vm2, %v3722_v11 }
 0xe1b   : > { %3796 = vmatprep.mubr.bf16.mxu0 %v10597_v0 }
 0xe22   : > { %5599 = vmatmul.mubr.msk.bf16.gmra.mrb[180].mxu0 %vm1429_vm2, %v3723_v50 }
 0xe23   : > { %3806 = vmatprep.mubr.bf16.mxu0 %v10597_v0 }
 0xe2a   : > { %5600 = vmatmul.mubr.msk.bf16.gmra.mrb[184].mxu0 %vm1429_vm2, %v3724_v28 }
 0xe2b   : > { %3816 = vmatprep.mubr.bf16.mxu0 %v10597_v0 }
 0xe32   : > { %5601 = vmatmul.mubr.msk.bf16.gmra.mrb[188].mxu0 %vm1429_vm2, %v3725_v39 }
 0xe33   : > { %3826 = vmatprep.mubr.bf16.mxu0 %v10597_v0 }
 0xe3a   : > { %5602 = vmatmul.mubr.msk.bf16.gmra.mrb[192].mxu0 %vm1429_vm2, %v3726_v52 }
 0xe3b   : > { %3836 = vmatprep.mubr.bf16.mxu0 %v10597_v0 }
 0xe42   : > { %5603 = vmatmul.mubr.msk.bf16.gmra.mrb[196].mxu0 %vm1429_vm2, %v3727_v43 }
 0xe43   : > { %3846 = vmatprep.mubr.bf16.mxu0 %v10597_v0 }
 0xe4a   : > { %5604 = vmatmul.mubr.msk.bf16.gmra.mrb[200].mxu0 %vm1429_vm2, %v3728_v14 }
 0xe4b   : > { %3856 = vmatprep.mubr.bf16.mxu0 %v10597_v0 }
 0xe52   : > { %5605 = vmatmul.mubr.msk.bf16.gmra.mrb[204].mxu0 %vm1429_vm2, %v3729_v29 }
 0xe53   : > { %4615 = vmatprep.mubr.bf16.mxu0 %v10705_v60 }
 0xedd   : > { %v9364_v55 = vpop.f32.mrb[168].mxu0 }
 0xede   : > { %v3699_v26 = vpop.f32.mrb[169].mxu0 }
 0xedf   : > { %v9366_v34 = vpop.f32.mrb[170].mxu0 }
 0xee0   : > { %v3712_v42 = vpack.c.bf16 %v9366_v34, %v9364_v55  ;;  %v3702_v20 = vpop.f32.mrb[171].mxu0  ;;  %v5917_v34 = vld [vmem:[#allocation8 + $0x50] sm:$0xff]  }
 0xee5   : > { %v9370_v40 = vpop.f32.mrb[172].mxu0 }
 0xee6   : > { %v3707_v56 = vpop.f32.mrb[173].mxu0 }
 0xee7   : > { %v9372_v15 = vpop.f32.mrb[174].mxu0 }
 0xee8   : > { %v3710_v18 = vpop.f32.mrb[175].mxu0  ;;  %v10771_v55 = vpack.c.bf16 %v9372_v15, %v9370_v40  ;;  %v10779_v40 = vld [vmem:[#allocation43_spill] sm:$0xff] }
 0xee9   : > { %v10780_v15 = vld [vmem:[#allocation19_spill] sm:$0xff] }
 0xeed   : > { %v9376_v25 = vpop.f32.mrb[176].mxu0 }
 0xeee   : > { %v9378_v22 = vpop.f32.mrb[177].mxu0 }
 0xeef   : > { %v3867_v31 = vmax.f32 %v9376_v25, %v9378_v22  ;;  %v9382_v54 = vpop.f32.mrb[178].mxu0 }
 0xef0   : > { %v9384_v3 = vpop.f32.mrb[179].mxu0 }
 0xef1   : > { %3868 = vmax.xlane.f32.xlu0 %v3867_v31  ;;  %v3870_v8 = vmax.f32 %v9382_v54, %v9384_v3 }
 0xef5   : > { %3871 = vmax.xlane.f32.xlu0 %v3870_v8  ;;  %v9388_v32 = vpop.f32.mrb[180].mxu0 }
 0xef6   : > { %v9390_v61 = vpop.f32.mrb[181].mxu0 }
 0xef7   : > { %v3873_v36 = vmax.f32 %v9388_v32, %v9390_v61  ;;  %v9394_v4 = vpop.f32.mrb[182].mxu0 }
 0xef8   : > { %v9396_v57 = vpop.f32.mrb[183].mxu0 }
 0xef9   : > { %3874 = vmax.xlane.f32.xlu0 %v3873_v36  ;;  %v3876_v23 = vmax.f32 %v9394_v4, %v9396_v57 }
 0xefd   : > { %3877 = vmax.xlane.f32.xlu0 %v3876_v23  ;;  %v9400_v24 = vpop.f32.mrb[184].mxu0 }
 0xefe   : > { %v9402_v48 = vpop.f32.mrb[185].mxu0 }
 0xeff   : > { %v3879_v63 = vmax.f32 %v9400_v24, %v9402_v48  ;;  %v9406_v38 = vpop.f32.mrb[186].mxu0 }
 0xf00   : > { %v9408_v41 = vpop.f32.mrb[187].mxu0 }
 0xf01   : > { %3880 = vmax.xlane.f32.xlu0 %v3879_v63  ;;  %v3882_v21 = vmax.f32 %v9406_v38, %v9408_v41 }
 0xf05   : > { %3883 = vmax.xlane.f32.xlu0 %v3882_v21  ;;  %v9412_v45 = vpop.f32.mrb[188].mxu0 }
 0xf06   : > { %v9414_v7 = vpop.f32.mrb[189].mxu0 }
 0xf07   : > { %v3885_v30 = vmax.f32 %v9412_v45, %v9414_v7  ;;  %v9418_v19 = vpop.f32.mrb[190].mxu0 }
 0xf08   : > { %v9420_v62 = vpop.f32.mrb[191].mxu0 }
 0xf09   : > { %3886 = vmax.xlane.f32.xlu0 %v3885_v30  ;;  %v3888_v37 = vmax.f32 %v9418_v19, %v9420_v62 }
 0xf0d   : > { %3889 = vmax.xlane.f32.xlu0 %v3888_v37  ;;  %v9424_v46 = vpop.f32.mrb[192].mxu0 }
 0xf0e   : > { %v9426_v59 = vpop.f32.mrb[193].mxu0 }
 0xf0f   : > { %v3891_v9 = vmax.f32 %v9424_v46, %v9426_v59  ;;  %v9430_v35 = vpop.f32.mrb[194].mxu0 }
 0xf10   : > { %v9432_v58 = vpop.f32.mrb[195].mxu0 }
 0xf11   : > { %3892 = vmax.xlane.f32.xlu0 %v3891_v9  ;;  %v3894_v27 = vmax.f32 %v9430_v35, %v9432_v58 }
 0xf15   : > { %3895 = vmax.xlane.f32.xlu0 %v3894_v27  ;;  %v9436_v47 = vpop.f32.mrb[196].mxu0 }
 0xf16   : > { %v9438_v53 = vpop.f32.mrb[197].mxu0 }
 0xf17   : > { %v3897_v12 = vmax.f32 %v9436_v47, %v9438_v53  ;;  %v9442_v13 = vpop.f32.mrb[198].mxu0 }
 0xf18   : > { %v9444_v1 = vpop.f32.mrb[199].mxu0 }
 0xf19   : > { %3898 = vmax.xlane.f32.xlu0 %v3897_v12  ;;  %v3900_v33 = vmax.f32 %v9442_v13, %v9444_v1 }
 0xf1d   : > { %3901 = vmax.xlane.f32.xlu0 %v3900_v33  ;;  %v9448_v5 = vpop.f32.mrb[200].mxu0 }
 0xf1e   : > { %v9450_v11 = vpop.f32.mrb[201].mxu0 }
 0xf1f   : > { %v3903_v50 = vmax.f32 %v9448_v5, %v9450_v11  ;;  %v9454_v28 = vpop.f32.mrb[202].mxu0 }
 0xf20   : > { %v9456_v39 = vpop.f32.mrb[203].mxu0 }
 0xf21   : > { %v3906_v52 = vmax.f32 %v9454_v28, %v9456_v39  ;;  %3904 = vmax.xlane.f32.xlu0 %v3903_v50 }
 0xf23   : > { %3907 = vmax.xlane.f32.xlu1 %v3906_v52 }
 0xf25   : > { %v9460_v43 = vpop.f32.mrb[204].mxu0 }
 0xf26   : > { %v9462_v14 = vpop.f32.mrb[205].mxu0 }
 0xf27   : > { %v3909_v29 = vmax.f32 %v9460_v43, %v9462_v14  ;;  %v9466_v60 = vpop.f32.mrb[206].mxu0 }
 0xf28   : > { %v9468_v26 = vpop.f32.mrb[207].mxu0 }
 0xf29   : > { %3910 = vmax.xlane.f32.xlu0 %v3909_v29  ;;  %v3912_v20 = vmax.f32 %v9466_v60, %v9468_v26 }
 0xf2d   : > { %3913 = vmax.xlane.f32.xlu0 %v3912_v20 }
 0xf7e   : > { %v3869_v56 = vpop.xlane.xlu0 %3868 }
 0xf7f   : > { %v3915_v18 = vsub.f32 %v9376_v25, %v3869_v56  ;;  %v3916_v31 = vsub.f32 %v9378_v22, %v3869_v56 }
 0xf81   : > { %v3947_v8 = vmul.f32 1.442695, %v3915_v18  ;;  %v3949_v36 = vmul.f32 1.442695, %v3916_v31 }
 0xf82   : > { %v3872_v23 = vpop.xlane.xlu0 %3871 }
 0xf83   : > { %6409 = vpow2.f32 %v3947_v8  ;;  %v3917_v63 = vsub.f32 %v9382_v54, %v3872_v23  ;;  %v3918_v21 = vsub.f32 %v9384_v3, %v3872_v23 }
 0xf84   : > { %6411 = vpow2.f32 %v3949_v36 }
 0xf85   : > { %v3951_v30 = vmul.f32 1.442695, %v3917_v63  ;;  %v3953_v37 = vmul.f32 1.442695, %v3918_v21 }
 0xf86   : > { %v3875_v9 = vpop.xlane.xlu0 %3874 }
 0xf87   : > { %6413 = vpow2.f32 %v3951_v30  ;;  %v3919_v27 = vsub.f32 %v9388_v32, %v3875_v9  ;;  %v3920_v12 = vsub.f32 %v9390_v61, %v3875_v9 }
 0xf88   : > { %6415 = vpow2.f32 %v3953_v37 }
 0xf89   : > { %v3955_v25 = vmul.f32 1.442695, %v3919_v27  ;;  %v3957_v22 = vmul.f32 1.442695, %v3920_v12 }
 0xf8a   : > { %v3878_v33 = vpop.xlane.xlu0 %3877 }
 0xf8b   : > { %6417 = vpow2.f32 %v3955_v25  ;;  %v3921_v50 = vsub.f32 %v9394_v4, %v3878_v33  ;;  %v3922_v54 = vsub.f32 %v9396_v57, %v3878_v33 }
 0xf8c   : > { %6419 = vpow2.f32 %v3957_v22 }
 0xf8d   : > { %v9480_v3 = vpop.eup %6409  ;;  %v3959_v52 = vmul.f32 1.442695, %v3921_v50  ;;  %v3961_v29 = vmul.f32 1.442695, %v3922_v54 }
 0xf8e   : > { %v9482_v20 = vpop.eup %6411  ;;  %v3881_v56 = vpop.xlane.xlu0 %3880 }
 0xf8f   : > { %6421 = vpow2.f32 %v3959_v52  ;;  %v3923_v32 = vsub.f32 %v9400_v24, %v3881_v56  ;;  %v3924_v61 = vsub.f32 %v9402_v48, %v3881_v56  ;;  %v4011_v18 = vadd.f32 %v9482_v20, %v9480_v3 }
 0xf90   : > { %6423 = vpow2.f32 %v3961_v29 }
 0xf91   : > { %v9488_v4 = vpop.eup %6413  ;;  %v3963_v57 = vmul.f32 1.442695, %v3923_v32  ;;  %v3965_v31 = vmul.f32 1.442695, %v3924_v61  ;;  %4012 = vadd.xlane.f32.xlu0 %v4011_v18 }
 0xf92   : > { %v9490_v8 = vpop.eup %6415  ;;  %v3884_v36 = vpop.xlane.xlu0 %3883 }
 0xf93   : > { %6425 = vpow2.f32 %v3963_v57  ;;  %v3925_v23 = vsub.f32 %v9406_v38, %v3884_v36  ;;  %v3926_v63 = vsub.f32 %v9408_v41, %v3884_v36  ;;  %v4014_v24 = vadd.f32 %v9490_v8, %v9488_v4 }
 0xf94   : > { %6427 = vpow2.f32 %v3965_v31 }
 0xf95   : > { %v9496_v48 = vpop.eup %6417  ;;  %v3967_v21 = vmul.f32 1.442695, %v3925_v23  ;;  %v3969_v30 = vmul.f32 1.442695, %v3926_v63  ;;  %4015 = vadd.xlane.f32.xlu0 %v4014_v24 }
 0xf96   : > { %v9498_v37 = vpop.eup %6419  ;;  %v3887_v9 = vpop.xlane.xlu0 %3886 }
 0xf97   : > { %6429 = vpow2.f32 %v3967_v21  ;;  %v3927_v27 = vsub.f32 %v9412_v45, %v3887_v9  ;;  %v3928_v12 = vsub.f32 %v9414_v7, %v3887_v9  ;;  %v4017_v38 = vadd.f32 %v9498_v37, %v9496_v48 }
 0xf98   : > { %6431 = vpow2.f32 %v3969_v30 }
 0xf99   : > { %v9504_v41 = vpop.eup %6421  ;;  %v3971_v25 = vmul.f32 1.442695, %v3927_v27  ;;  %v3973_v22 = vmul.f32 1.442695, %v3928_v12  ;;  %4018 = vadd.xlane.f32.xlu0 %v4017_v38 }
 0xf9a   : > { %v9506_v33 = vpop.eup %6423  ;;  %v3890_v50 = vpop.xlane.xlu0 %3889 }
 0xf9b   : > { %6433 = vpow2.f32 %v3971_v25  ;;  %v3929_v54 = vsub.f32 %v9418_v19, %v3890_v50  ;;  %v3930_v52 = vsub.f32 %v9420_v62, %v3890_v50  ;;  %v4020_v45 = vadd.f32 %v9506_v33, %v9504_v41 }
 0xf9c   : > { %6435 = vpow2.f32 %v3973_v22 }
 0xf9d   : > { %v9512_v7 = vpop.eup %6425  ;;  %v3975_v29 = vmul.f32 1.442695, %v3929_v54  ;;  %v3977_v56 = vmul.f32 1.442695, %v3930_v52  ;;  %4021 = vadd.xlane.f32.xlu0 %v4020_v45 }
 0xf9e   : > { %v9514_v32 = vpop.eup %6427  ;;  %v3893_v61 = vpop.xlane.xlu0 %3892 }
 0xf9f   : > { %6437 = vpow2.f32 %v3975_v29  ;;  %v3931_v18 = vsub.f32 %v9424_v46, %v3893_v61  ;;  %v3932_v57 = vsub.f32 %v9426_v59, %v3893_v61  ;;  %v4023_v19 = vadd.f32 %v9514_v32, %v9512_v7 }
 0xfa0   : > { %6439 = vpow2.f32 %v3977_v56 }
 0xfa1   : > { %v9520_v62 = vpop.eup %6429  ;;  %v3979_v31 = vmul.f32 1.442695, %v3931_v18  ;;  %v3981_v36 = vmul.f32 1.442695, %v3932_v57  ;;  %4024 = vadd.xlane.f32.xlu0 %v4023_v19 }
 0xfa2   : > { %v9522_v23 = vpop.eup %6431  ;;  %v3896_v63 = vpop.xlane.xlu0 %3895 }
 0xfa3   : > { %6441 = vpow2.f32 %v3979_v31  ;;  %v3933_v24 = vsub.f32 %v9430_v35, %v3896_v63  ;;  %v3934_v21 = vsub.f32 %v9432_v58, %v3896_v63  ;;  %v4026_v46 = vadd.f32 %v9522_v23, %v9520_v62 }
 0xfa4   : > { %6443 = vpow2.f32 %v3981_v36 }
 0xfa5   : > { %v9528_v59 = vpop.eup %6433  ;;  %v3983_v30 = vmul.f32 1.442695, %v3933_v24  ;;  %v3985_v9 = vmul.f32 1.442695, %v3934_v21  ;;  %4027 = vadd.xlane.f32.xlu0 %v4026_v46 }
 0xfa6   : > { %v9530_v27 = vpop.eup %6435  ;;  %v3899_v12 = vpop.xlane.xlu0 %3898 }
 0xfa7   : > { %6445 = vpow2.f32 %v3983_v30  ;;  %v3935_v38 = vsub.f32 %v9436_v47, %v3899_v12  ;;  %v3936_v25 = vsub.f32 %v9438_v53, %v3899_v12  ;;  %v4029_v35 = vadd.f32 %v9530_v27, %v9528_v59 }
 0xfa8   : > { %6447 = vpow2.f32 %v3985_v9 }
 0xfa9   : > { %v9536_v58 = vpop.eup %6437  ;;  %v3987_v22 = vmul.f32 1.442695, %v3935_v38  ;;  %v3989_v50 = vmul.f32 1.442695, %v3936_v25  ;;  %4030 = vadd.xlane.f32.xlu0 %v4029_v35 }
 0xfaa   : > { %v9538_v54 = vpop.eup %6439  ;;  %v3902_v52 = vpop.xlane.xlu0 %3901 }
 0xfab   : > { %6449 = vpow2.f32 %v3987_v22  ;;  %v3937_v45 = vsub.f32 %v9442_v13, %v3902_v52  ;;  %v3938_v29 = vsub.f32 %v9444_v1, %v3902_v52  ;;  %v4032_v47 = vadd.f32 %v9538_v54, %v9536_v58 }
 0xfac   : > { %6451 = vpow2.f32 %v3989_v50 }
 0xfad   : > { %v9544_v53 = vpop.eup %6441  ;;  %v3991_v56 = vmul.f32 1.442695, %v3937_v45  ;;  %v3993_v61 = vmul.f32 1.442695, %v3938_v29  ;;  %4033 = vadd.xlane.f32.xlu1 %v4032_v47 }
 0xfae   : > { %v9546_v18 = vpop.eup %6443  ;;  %v3905_v57 = vpop.xlane.xlu0 %3904 }
 0xfaf   : > { %6453 = vpow2.f32 %v3991_v56  ;;  %v3939_v19 = vsub.f32 %v9448_v5, %v3905_v57  ;;  %v3940_v31 = vsub.f32 %v9450_v11, %v3905_v57  ;;  %v4035_v13 = vadd.f32 %v9546_v18, %v9544_v53 }
 0xfb0   : > { %6455 = vpow2.f32 %v3993_v61  ;;  %v3908_v1 = vpop.xlane.xlu1 %3907 }
 0xfb1   : > { %v9552_v36 = vpop.eup %6445  ;;  %v3995_v63 = vmul.f32 1.442695, %v3939_v19  ;;  %v3997_v24 = vmul.f32 1.442695, %v3940_v31  ;;  %v3941_v21 = vsub.f32 %v9454_v28, %v3908_v1  ;;  %v3942_v46 = vsub.f32 %v9456_v39, %v3908_v1  ;;  %4036 = vadd.xlane.f32.xlu0 %v4035_v13 }
 0xfb2   : > { %v9556_v30 = vpop.eup %6447 }
 0xfb3   : > { %6457 = vpow2.f32 %v3995_v63  ;;  %v3999_v5 = vmul.f32 1.442695, %v3941_v21  ;;  %v4001_v9 = vmul.f32 1.442695, %v3942_v46  ;;  %v4038_v11 = vadd.f32 %v9556_v30, %v9552_v36 }
 0xfb4   : > { %6459 = vpow2.f32 %v3997_v24 }
 0xfb5   : > { %v9560_v12 = vpop.eup %6449  ;;  %6461 = vpow2.f32 %v3999_v5  ;;  %4039 = vadd.xlane.f32.xlu1 %v4038_v11  ;;  %v10707_v11 = vld [vmem:[#allocation33_spill] sm:$0xff] }
 0xfb6   : > { %v9562_v38 = vpop.eup %6451  ;;  %6463 = vpow2.f32 %v4001_v9  ;;  %v3911_v28 = vpop.xlane.xlu0 %3910  ;;  %v10706_v9 = vld [vmem:[#allocation35_spill] sm:$0xff] }
 0xfb7   : > { %v3943_v39 = vsub.f32 %v9460_v43, %v3911_v28  ;;  %v3944_v25 = vsub.f32 %v9462_v14, %v3911_v28  ;;  %v4041_v35 = vadd.f32 %v9562_v38, %v9560_v12  ;;  %v10708_v28 = vpack.c.bf16 %v10706_v9, %v10707_v11 }
 0xfb9   : > { %v9568_v22 = vpop.eup %6453  ;;  %v4003_v50 = vmul.f32 1.442695, %v3943_v39  ;;  %v4005_v52 = vmul.f32 1.442695, %v3944_v25  ;;  %4042 = vadd.xlane.f32.xlu0 %v4041_v35  ;;  %v10709_v39 = vld [vmem:[#allocation34_spill] sm:$0xff]  ;;  %v10710_v25 = vld [vmem:[#allocation32_spill] sm:$0xff] }
 0xfba   : > { %v9570_v45 = vpop.eup %6455  ;;  %v3914_v29 = vpop.xlane.xlu0 %3913  ;;  %v10711_v35 = vpack.c.bf16 %v10709_v39, %v10710_v25 }
 0xfbb   : > { %6465 = vpow2.f32 %v4003_v50  ;;  %v3945_v47 = vsub.f32 %v9466_v60, %v3914_v29  ;;  %v3946_v56 = vsub.f32 %v9468_v26, %v3914_v29  ;;  %v4044_v43 = vadd.f32 %v9570_v45, %v9568_v22 }
 0xfbc   : > { %6467 = vpow2.f32 %v4005_v52 }
 0xfbd   : > { %v9576_v14 = vpop.eup %6457  ;;  %v4007_v61 = vmul.f32 1.442695, %v3945_v47  ;;  %v4009_v57 = vmul.f32 1.442695, %v3946_v56  ;;  %4045 = vadd.xlane.f32.xlu1 %v4044_v43 }
 0xfbe   : > { %v9578_v19 = vpop.eup %6459 }
 0xfbf   : > { %v9580_v31 = vpop.eup %6461  ;;  %6469 = vpow2.f32 %v4007_v61  ;;  %v4047_v13 = vadd.f32 %v9578_v19, %v9576_v14 }
 0xfc0   : > { %v9584_v60 = vpop.eup %6463  ;;  %6471 = vpow2.f32 %v4009_v57 }
 0xfc1   : > { %4048 = vadd.xlane.f32.xlu0 %v4047_v13  ;;  %v4050_v26 = vadd.f32 %v9584_v60, %v9580_v31 }
 0xfc3   : > { %4051 = vadd.xlane.f32.xlu1 %v4050_v26 }
 0xfc5   : > { %v9588_v1 = vpop.eup %6465 }
 0xfc6   : > { %v9590_v63 = vpop.eup %6467 }
 0xfc7   : > { %v4053_v24 = vadd.f32 %v9590_v63, %v9588_v1 }
 0xfc9   : > { %v9594_v21 = vpop.eup %6469  ;;  %4054 = vadd.xlane.f32.xlu0 %v4053_v24 }
 0xfca   : > { %v9596_v46 = vpop.eup %6471 }
 0xfcb   : > { %v4056_v5 = vadd.f32 %v9596_v46, %v9594_v21 }
 0xfcd   : > { %4057 = vadd.xlane.f32.xlu1 %v4056_v5 }
 0xff6   : > { %4174 = vxpose.xlu0.c.b16.start [1/2] (short) %v10708_v28, 128 }
 0xffa   : > { %4175 = vxpose.xlu0.c.b16.end [2/2] (short) %v10711_v35, 128 }
0x101e   : > { %v4013_v50 = vpop.xlane.xlu0 %4012 }
0x101f   : > { %6473 = vrcp.f32 %v4013_v50 }
0x1022   : > { %v4016_v52 = vpop.xlane.xlu0 %4015 }
0x1023   : > { %6475 = vrcp.f32 %v4016_v52 }
0x1026   : > { %v4019_v29 = vpop.xlane.xlu0 %4018 }
0x1027   : > { %6477 = vrcp.f32 %v4019_v29 }
0x1029   : > { %v6474_v56 = vpop.eup %6473 }
0x102a   : > { %v4022_v47 = vpop.xlane.xlu0 %4021  ;;  %v4076_v57 = vmul.f32 %v6474_v56, %v9482_v20  ;;  %v4075_v26 = vmul.f32 %v6474_v56, %v9480_v3 }
0x102b   : > { %6479 = vrcp.f32 %v4022_v47 }
0x102d   : > { %v6476_v43 = vpop.eup %6475 }
0x102e   : > { %v4025_v61 = vpop.xlane.xlu0 %4024  ;;  %v4078_v13 = vmul.f32 %v6476_v43, %v9490_v8  ;;  %v4077_v24 = vmul.f32 %v6476_v43, %v9488_v4 }
0x102f   : > { %6481 = vrcp.f32 %v4025_v61 }
0x1030   : > { %v4108_v5 = vpack.c.bf16 %v4078_v13, %v4076_v57  ;;  %v4107_v9 = vpack.c.bf16 %v4077_v24, %v4075_v26 }
0x1031   : > { %v6478_v28 = vpop.eup %6477 }
0x1032   : > { %4123 = vmatprep.subr.bf16.mxu1 %v4108_v5  ;;  %v4028_v11 = vpop.xlane.xlu0 %4027  ;;  %v4080_v35 = vmul.f32 %v6478_v28, %v9498_v37  ;;  %v4079_v8 = vmul.f32 %v6478_v28, %v9496_v48 }
0x1033   : > { %6483 = vrcp.f32 %v4028_v11  ;;  %4124 = vmatpush1.bf16.xpose.msra.mxu1 %v4107_v9 }
0x1035   : > { %v6480_v39 = vpop.eup %6479 }
0x1036   : > { %v4031_v25 = vpop.xlane.xlu0 %4030  ;;  %v4082_v20 = vmul.f32 %v6480_v39, %v9506_v33  ;;  %v4081_v3 = vmul.f32 %v6480_v39, %v9504_v41 }
0x1037   : > { %6485 = vrcp.f32 %v4031_v25 }
0x1038   : > { %v4110_v50 = vpack.c.bf16 %v4082_v20, %v4080_v35  ;;  %v4109_v4 = vpack.c.bf16 %v4081_v3, %v4079_v8 }
0x1039   : > { %v6482_v29 = vpop.eup %6481 }
0x103a   : > { %v4034_v52 = vpop.xlane.xlu1 %4033  ;;  %4125 = vmatprep.subr.bf16.mxu1 %v4110_v50  ;;  %v4084_v43 = vmul.f32 %v6482_v29, %v9514_v32  ;;  %v4083_v33 = vmul.f32 %v6482_v29, %v9512_v7 }
0x103b   : > { %6487 = vrcp.f32 %v4034_v52  ;;  %4126 = vmatpush1.bf16.xpose.msra.mxu1 %v4109_v4 }
0x103d   : > { %v6484_v47 = vpop.eup %6483 }
0x103e   : > { %v4037_v56 = vpop.xlane.xlu0 %4036  ;;  %v4086_v37 = vmul.f32 %v6484_v47, %v9522_v23  ;;  %v4085_v48 = vmul.f32 %v6484_v47, %v9520_v62 }
0x103f   : > { %6489 = vrcp.f32 %v4037_v56 }
0x1040   : > { %v4112_v61 = vpack.c.bf16 %v4086_v37, %v4084_v43  ;;  %v4111_v41 = vpack.c.bf16 %v4085_v48, %v4083_v33 }
0x1041   : > { %v6486_v13 = vpop.eup %6485 }
0x1042   : > { %v4040_v57 = vpop.xlane.xlu1 %4039  ;;  %4127 = vmatprep.subr.bf16.mxu1 %v4112_v61  ;;  %v4088_v5 = vmul.f32 %v6486_v13, %v9530_v27  ;;  %v4087_v23 = vmul.f32 %v6486_v13, %v9528_v59 }
0x1043   : > { %6491 = vrcp.f32 %v4040_v57  ;;  %4128 = vmatpush1.bf16.xpose.msra.mxu1 %v4111_v41 }
0x1045   : > { %v6488_v26 = vpop.eup %6487 }
0x1046   : > { %v4043_v24 = vpop.xlane.xlu0 %4042  ;;  %v4090_v32 = vmul.f32 %v6488_v26, %v9538_v54  ;;  %v4089_v7 = vmul.f32 %v6488_v26, %v9536_v58 }
0x1047   : > { %6493 = vrcp.f32 %v4043_v24  ;;  %v10713_v24 = vld [vmem:[#allocation73_spill] sm:$0xff] }
0x1048   : > { %v4114_v9 = vpack.c.bf16 %v4090_v32, %v4088_v5  ;;  %v4113_v62 = vpack.c.bf16 %v4089_v7, %v4087_v23  ;;  %v10715_v5 = vld [vmem:[#allocation40_spill] sm:$0xff] }
0x1049   : > { %v6490_v28 = vpop.eup %6489  ;;  %v10716_v32 = vpack.c.bf16 %v8659_v51, %v10715_v5  ;;  %v10717_v23 = vld [vmem:[#allocation44_spill] sm:$0xff] }
0x104a   : > { %v4046_v11 = vpop.xlane.xlu1 %4045  ;;  %4129 = vmatprep.subr.bf16.mxu1 %v4114_v9  ;;  %v4092_v35 = vmul.f32 %v6490_v28, %v9546_v18  ;;  %v4091_v54 = vmul.f32 %v6490_v28, %v9544_v53  ;;  %v10726_v28 = vld [vmem:[#allocation78_spill] sm:$0xff] }
0x104b   : > { %6495 = vrcp.f32 %v4046_v11  ;;  %4130 = vmatpush1.bf16.xpose.msra.mxu1 %v4113_v62  ;;  %v10724_v62 = vld [vmem:[#allocation77_spill] sm:$0xff] }
0x104d   : > { %v6492_v39 = vpop.eup %6491 }
0x104e   : > { %v4049_v25 = vpop.xlane.xlu0 %4048  ;;  %v4094_v27 = vmul.f32 %v6492_v39, %v9556_v30  ;;  %v4093_v59 = vmul.f32 %v6492_v39, %v9552_v36  ;;  %v10727_v39 = vld [vmem:[#allocation76_spill] sm:$0xff] }
0x104f   : > { %6497 = vrcp.f32 %v4049_v25  ;;  %v10728_v25 = vpack.c.bf16 %v10726_v28, %v10727_v39 }
0x1050   : > { %v4052_v58 = vpop.xlane.xlu1 %4051  ;;  %v4116_v20 = vpack.c.bf16 %v4094_v27, %v4092_v35  ;;  %v4115_v8 = vpack.c.bf16 %v4093_v59, %v4091_v54  ;;  %v10729_v35 = vld [vmem:[#allocation46_spill] sm:$0xff]  ;;  %v10730_v27 = vld [vmem:[#allocation47_spill] sm:$0xff] }
0x1051   : > { %6499 = vrcp.f32 %v4052_v58  ;;  %v6494_v3 = vpop.eup %6493  ;;  %v10731_v51 = vpack.c.bf16 %v10729_v35, %v10730_v27 }
0x1052   : > { %4131 = vmatprep.subr.bf16.mxu1 %v4116_v20  ;;  %v4096_v52 = vmul.f32 %v6494_v3, %v9562_v38  ;;  %v4095_v30 = vmul.f32 %v6494_v3, %v9560_v12 }
0x1053   : > { %4132 = vmatpush1.bf16.xpose.msra.mxu1 %v4115_v8 }
0x1055   : > { %v6496_v50 = vpop.eup %6495 }
0x1056   : > { %v4055_v4 = vpop.xlane.xlu0 %4054  ;;  %v4098_v18 = vmul.f32 %v6496_v50, %v9570_v45  ;;  %v4097_v53 = vmul.f32 %v6496_v50, %v9568_v22 }
0x1057   : > { %6501 = vrcp.f32 %v4055_v4 }
0x1058   : > { %v4118_v29 = vpack.c.bf16 %v4098_v18, %v4096_v52  ;;  %v4117_v36 = vpack.c.bf16 %v4097_v53, %v4095_v30  ;;  %v10732_v52 = vld [vmem:[#allocation53_spill] sm:$0xff]  ;;  %v10733_v18 = vld [vmem:[#allocation48_spill] sm:$0xff] }
0x1059   : > { %v6498_v47 = vpop.eup %6497  ;;  %v10734_v30 = vpack.c.bf16 %v10732_v52, %v10733_v18 }
0x105a   : > { %v4058_v56 = vpop.xlane.xlu1 %4057  ;;  %4133 = vmatprep.subr.bf16.mxu1 %v4118_v29  ;;  %v4100_v37 = vmul.f32 %v6498_v47, %v9578_v19  ;;  %v4099_v12 = vmul.f32 %v6498_v47, %v9576_v14 }
0x105b   : > { %v6500_v43 = vpop.eup %6499  ;;  %6503 = vrcp.f32 %v4058_v56  ;;  %4134 = vmatpush1.bf16.xpose.msra.mxu1 %v4117_v36 }
0x105c   : > { %v4102_v33 = vmul.f32 %v6500_v43, %v9584_v60  ;;  %v4101_v38 = vmul.f32 %v6500_v43, %v9580_v31  ;;  %v10712_v31 = vld [vmem:[#allocation75_spill] sm:$0xff]  ;;  %v4182_v54 = vpop.trf.xlu0 }
0x105d   : > { %v10714_v14 = vpack.c.bf16 %v10712_v31, %v10713_v24 }
0x105e   : > { %v4120_v45 = vpack.c.bf16 %v4102_v33, %v4100_v37  ;;  %v4119_v22 = vpack.c.bf16 %v4101_v38, %v4099_v12 }
0x1060   : > { %4135 = vmatprep.subr.bf16.mxu1 %v4120_v45  ;;  %v4183_v59 = vpop.trf.xlu0 }
0x1061   : > { %v6502_v48 = vpop.eup %6501 }
0x1062   : > { %v4104_v41 = vmul.f32 %v6502_v48, %v9590_v63  ;;  %v4103_v13 = vmul.f32 %v6502_v48, %v9588_v1  ;;  %v10718_v63 = vld [vmem:[#allocation45_spill] sm:$0xff]  ;;  %v10721_v1 = vld [vmem:[#allocation72_spill] sm:$0xff] }
0x1063   : > { %4136 = vmatpush1.bf16.xpose.msra.mxu1 %v4119_v22  ;;  %v10719_v7 = vpack.c.bf16 %v10717_v23, %v10718_v63 }
0x1064   : > { %v4184_v58 = vpop.trf.xlu0 }
0x1065   : > { %v6504_v61 = vpop.eup %6503 }
0x1066   : > { %v4106_v57 = vmul.f32 %v6504_v61, %v9596_v46  ;;  %v4105_v19 = vmul.f32 %v6504_v61, %v9594_v21  ;;  %v10720_v46 = vld [vmem:[#allocation74_spill] sm:$0xff]  ;;  %v10723_v21 = vld [vmem:[#allocation79_spill] sm:$0xff] }
0x1067   : > { %v10722_v9 = vpack.c.bf16 %v10720_v46, %v10721_v1  ;;  %v10725_v11 = vpack.c.bf16 %v10723_v21, %v10724_v62 }
0x1068   : > { %v4122_v26 = vpack.c.bf16 %v4106_v57, %v4104_v41  ;;  %v4121_v60 = vpack.c.bf16 %v4105_v19, %v4103_v13  ;;  %v4185_v20 = vpop.trf.xlu0 }
0x106a   : > { %4137 = vmatprep.subr.bf16.mxu1 %v4122_v26 }
0x106b   : > { %4138 = vmatpush1.bf16.xpose.msra.mxu1 %v4121_v60 }
0x106c   : > { %4214 = vmatprep.subr.bf16.mxu1 %v10714_v14  ;;  %v4186_v8 = vpop.trf.xlu0 }
0x1070   : > { %v4187_v3 = vpop.trf.xlu0 }
0x1072   : > { %4156 = vmatmul.mubr.bf16.vlgmr.msra.gmra.mrb[184].mxu1 %v10716_v32 }
0x1073   : > { %4163 = vmatprep.mubr.bf16.mxu1 %v10719_v7  ;;  %4215 = vmatpush1.bf16.msra.mxu1 %v10722_v9 }
0x1074   : > { %4216 = vmatprep.subr.bf16.mxu1 %v10725_v11  ;;  %v4188_v50 = vpop.trf.xlu0 }
0x1077   : > { %4217 = vmatpush1.bf16.msra.mxu1 %v10728_v25 }
0x1078   : > { %v4189_v4 = vpop.trf.xlu0 }
0x107a   : > { %4164 = vmatmul.mubr.bf16.gmra.mrb[188].mxu1 %v10731_v51 }
0x107b   : > { %4246 = vmatprep.mubr.bf16.mxu1 %v10597_v0 }
0x1082   : > { %5606 = vmatmul.mubr.msk.bf16.vlgmr.msra.gmra.mrb[192].mxu1 %vm1429_vm2, %v4182_v54 }
0x1083   : > { %4256 = vmatprep.mubr.bf16.mxu1 %v10597_v0 }
0x108a   : > { %5607 = vmatmul.mubr.msk.bf16.gmra.mrb[196].mxu1 %vm1429_vm2, %v4183_v59 }
0x108b   : > { %4266 = vmatprep.mubr.bf16.mxu1 %v10597_v0 }
0x1092   : > { %5608 = vmatmul.mubr.msk.bf16.gmra.mrb[200].mxu1 %vm1429_vm2, %v4184_v58 }
0x1093   : > { %4276 = vmatprep.mubr.bf16.mxu1 %v10597_v0 }
0x109a   : > { %5609 = vmatmul.mubr.msk.bf16.gmra.mrb[204].mxu1 %vm1429_vm2, %v4185_v20 }
0x109b   : > { %4286 = vmatprep.mubr.bf16.mxu1 %v10597_v0 }
0x10a2   : > { %5610 = vmatmul.mubr.msk.bf16.gmra.mrb[208].mxu1 %vm1429_vm2, %v4186_v8 }
0x10a3   : > { %4296 = vmatprep.mubr.bf16.mxu1 %v10597_v0 }
0x10aa   : > { %5611 = vmatmul.mubr.msk.bf16.gmra.mrb[212].mxu1 %vm1429_vm2, %v4187_v3 }
0x10ab   : > { %4306 = vmatprep.mubr.bf16.mxu1 %v10597_v0 }
0x10b2   : > { %5612 = vmatmul.mubr.msk.bf16.gmra.mrb[216].mxu1 %vm1429_vm2, %v4188_v50 }
0x10b3   : > { %4316 = vmatprep.mubr.bf16.mxu1 %v10597_v0 }
0x10ba   : > { %5613 = vmatmul.mubr.msk.bf16.gmra.mrb[220].mxu1 %vm1429_vm2, %v4189_v4 }
0x10bb   : > { %5075 = vmatprep.mubr.bf16.mxu1 %v10734_v30 }
0x1145   : > { %v9678_v53 = vpop.f32.mrb[184].mxu1 }
0x1146   : > { %v4159_v29 = vpop.f32.mrb[185].mxu1 }
0x1147   : > { %v9680_v36 = vpop.f32.mrb[186].mxu1 }
0x1148   : > { %v4162_v56 = vpop.f32.mrb[187].mxu1 }
0x114d   : > { %v9684_v43 = vpop.f32.mrb[188].mxu1 }
0x114e   : > { %v4167_v37 = vpop.f32.mrb[189].mxu1 }
0x114f   : > { %v9686_v33 = vpop.f32.mrb[190].mxu1 }
0x1150   : > { %v4170_v45 = vpop.f32.mrb[191].mxu1 }
0x1155   : > { %v9690_v12 = vpop.f32.mrb[192].mxu1 }
0x1156   : > { %v9692_v22 = vpop.f32.mrb[193].mxu1 }
0x1157   : > { %v4327_v48 = vmax.f32 %v9690_v12, %v9692_v22  ;;  %v9696_v61 = vpop.f32.mrb[194].mxu1 }
0x1158   : > { %v9698_v41 = vpop.f32.mrb[195].mxu1 }
0x1159   : > { %4328 = vmax.xlane.f32.xlu1 %v4327_v48  ;;  %v4330_v57 = vmax.f32 %v9696_v61, %v9698_v41 }
0x115d   : > { %4331 = vmax.xlane.f32.xlu1 %v4330_v57  ;;  %v9702_v13 = vpop.f32.mrb[196].mxu1 }
0x115e   : > { %v9704_v19 = vpop.f32.mrb[197].mxu1 }
0x115f   : > { %v4333_v26 = vmax.f32 %v9702_v13, %v9704_v19  ;;  %v9708_v60 = vpop.f32.mrb[198].mxu1 }
0x1160   : > { %v9710_v31 = vpop.f32.mrb[199].mxu1 }
0x1161   : > { %4334 = vmax.xlane.f32.xlu1 %v4333_v26  ;;  %v4336_v24 = vmax.f32 %v9708_v60, %v9710_v31 }
0x1165   : > { %4337 = vmax.xlane.f32.xlu1 %v4336_v24  ;;  %v9714_v14 = vpop.f32.mrb[200].mxu1 }
0x1166   : > { %v9716_v5 = vpop.f32.mrb[201].mxu1 }
0x1167   : > { %v4339_v32 = vmax.f32 %v9714_v14, %v9716_v5  ;;  %v9720_v23 = vpop.f32.mrb[202].mxu1 }
0x1168   : > { %v9722_v63 = vpop.f32.mrb[203].mxu1 }
0x1169   : > { %4340 = vmax.xlane.f32.xlu1 %v4339_v32  ;;  %v4342_v7 = vmax.f32 %v9720_v23, %v9722_v63 }
0x116d   : > { %4343 = vmax.xlane.f32.xlu1 %v4342_v7  ;;  %v9726_v46 = vpop.f32.mrb[204].mxu1 }
0x116e   : > { %v9728_v1 = vpop.f32.mrb[205].mxu1 }
0x116f   : > { %v4345_v9 = vmax.f32 %v9726_v46, %v9728_v1  ;;  %v9732_v21 = vpop.f32.mrb[206].mxu1 }
0x1170   : > { %v9734_v62 = vpop.f32.mrb[207].mxu1 }
0x1171   : > { %4346 = vmax.xlane.f32.xlu1 %v4345_v9  ;;  %v4348_v11 = vmax.f32 %v9732_v21, %v9734_v62 }
0x1175   : > { %4349 = vmax.xlane.f32.xlu1 %v4348_v11  ;;  %v9738_v28 = vpop.f32.mrb[208].mxu1 }
0x1176   : > { %v9740_v39 = vpop.f32.mrb[209].mxu1 }
0x1177   : > { %v4351_v25 = vmax.f32 %v9738_v28, %v9740_v39  ;;  %v9744_v35 = vpop.f32.mrb[210].mxu1 }
0x1178   : > { %v9746_v27 = vpop.f32.mrb[211].mxu1 }
0x1179   : > { %4352 = vmax.xlane.f32.xlu1 %v4351_v25  ;;  %v4354_v51 = vmax.f32 %v9744_v35, %v9746_v27 }
0x117d   : > { %4355 = vmax.xlane.f32.xlu1 %v4354_v51  ;;  %v9750_v54 = vpop.f32.mrb[212].mxu1 }
0x117e   : > { %v9752_v59 = vpop.f32.mrb[213].mxu1 }
0x117f   : > { %v4357_v58 = vmax.f32 %v9750_v54, %v9752_v59  ;;  %v9756_v20 = vpop.f32.mrb[214].mxu1 }
0x1180   : > { %v9758_v8 = vpop.f32.mrb[215].mxu1 }
0x1181   : > { %4358 = vmax.xlane.f32.xlu1 %v4357_v58  ;;  %v4360_v3 = vmax.f32 %v9756_v20, %v9758_v8 }
0x1185   : > { %4361 = vmax.xlane.f32.xlu1 %v4360_v3  ;;  %v9762_v50 = vpop.f32.mrb[216].mxu1 }
0x1186   : > { %v9764_v4 = vpop.f32.mrb[217].mxu1 }
0x1187   : > { %v4363_v52 = vmax.f32 %v9762_v50, %v9764_v4  ;;  %v9768_v18 = vpop.f32.mrb[218].mxu1 }
0x1188   : > { %v9770_v30 = vpop.f32.mrb[219].mxu1 }
0x1189   : > { %v4366_v29 = vmax.f32 %v9768_v18, %v9770_v30  ;;  %4364 = vmax.xlane.f32.xlu0 %v4363_v52 }
0x118b   : > { %4367 = vmax.xlane.f32.xlu1 %v4366_v29 }
0x118d   : > { %v9774_v56 = vpop.f32.mrb[220].mxu1 }
0x118e   : > { %v9776_v37 = vpop.f32.mrb[221].mxu1 }
0x118f   : > { %v4369_v45 = vmax.f32 %v9774_v56, %v9776_v37  ;;  %v9780_v48 = vpop.f32.mrb[222].mxu1 }
0x1190   : > { %v9782_v57 = vpop.f32.mrb[223].mxu1 }
0x1191   : > { %4370 = vmax.xlane.f32.xlu1 %v4369_v45  ;;  %v4372_v26 = vmax.f32 %v9780_v48, %v9782_v57 }
0x1195   : > { %4373 = vmax.xlane.f32.xlu1 %v4372_v26 }
0x11e6   : > { %v4329_v24 = vpop.xlane.xlu1 %4328 }
0x11e7   : > { %v4375_v32 = vsub.f32 %v9690_v12, %v4329_v24  ;;  %v4376_v7 = vsub.f32 %v9692_v22, %v4329_v24 }
0x11e9   : > { %v4407_v9 = vmul.f32 1.442695, %v4375_v32  ;;  %v4409_v11 = vmul.f32 1.442695, %v4376_v7 }
0x11ea   : > { %v4332_v25 = vpop.xlane.xlu1 %4331 }
0x11eb   : > { %6505 = vpow2.f32 %v4407_v9  ;;  %v4377_v51 = vsub.f32 %v9696_v61, %v4332_v25  ;;  %v4378_v58 = vsub.f32 %v9698_v41, %v4332_v25 }
0x11ec   : > { %6507 = vpow2.f32 %v4409_v11 }
0x11ed   : > { %v4411_v3 = vmul.f32 1.442695, %v4377_v51  ;;  %v4413_v52 = vmul.f32 1.442695, %v4378_v58 }
0x11ee   : > { %v4335_v29 = vpop.xlane.xlu1 %4334 }
0x11ef   : > { %6509 = vpow2.f32 %v4411_v3  ;;  %v4379_v45 = vsub.f32 %v9702_v13, %v4335_v29  ;;  %v4380_v26 = vsub.f32 %v9704_v19, %v4335_v29 }
0x11f0   : > { %6511 = vpow2.f32 %v4413_v52 }
0x11f1   : > { %v4415_v12 = vmul.f32 1.442695, %v4379_v45  ;;  %v4417_v22 = vmul.f32 1.442695, %v4380_v26 }
0x11f2   : > { %v4338_v24 = vpop.xlane.xlu1 %4337 }
0x11f3   : > { %6513 = vpow2.f32 %v4415_v12  ;;  %v4381_v32 = vsub.f32 %v9708_v60, %v4338_v24  ;;  %v4382_v61 = vsub.f32 %v9710_v31, %v4338_v24 }
0x11f4   : > { %6515 = vpow2.f32 %v4417_v22 }
0x11f5   : > { %v9794_v41 = vpop.eup %6505  ;;  %v4419_v7 = vmul.f32 1.442695, %v4381_v32  ;;  %v4421_v9 = vmul.f32 1.442695, %v4382_v61 }
0x11f6   : > { %v9796_v11 = vpop.eup %6507  ;;  %v4341_v25 = vpop.xlane.xlu1 %4340 }
0x11f7   : > { %6517 = vpow2.f32 %v4419_v7  ;;  %v4383_v13 = vsub.f32 %v9714_v14, %v4341_v25  ;;  %v4384_v19 = vsub.f32 %v9716_v5, %v4341_v25  ;;  %v4471_v51 = vadd.f32 %v9796_v11, %v9794_v41 }
0x11f8   : > { %6519 = vpow2.f32 %v4421_v9 }
0x11f9   : > { %v9802_v60 = vpop.eup %6509  ;;  %v4423_v31 = vmul.f32 1.442695, %v4383_v13  ;;  %v4425_v58 = vmul.f32 1.442695, %v4384_v19  ;;  %4472 = vadd.xlane.f32.xlu1 %v4471_v51 }
0x11fa   : > { %v9804_v3 = vpop.eup %6511  ;;  %v4344_v52 = vpop.xlane.xlu1 %4343 }
0x11fb   : > { %6521 = vpow2.f32 %v4423_v31  ;;  %v4385_v29 = vsub.f32 %v9720_v23, %v4344_v52  ;;  %v4386_v45 = vsub.f32 %v9722_v63, %v4344_v52  ;;  %v4474_v14 = vadd.f32 %v9804_v3, %v9802_v60 }
0x11fc   : > { %6523 = vpow2.f32 %v4425_v58 }
0x11fd   : > { %v9810_v5 = vpop.eup %6513  ;;  %v4427_v26 = vmul.f32 1.442695, %v4385_v29  ;;  %v4429_v12 = vmul.f32 1.442695, %v4386_v45  ;;  %4475 = vadd.xlane.f32.xlu1 %v4474_v14 }
0x11fe   : > { %v9812_v22 = vpop.eup %6515  ;;  %v4347_v24 = vpop.xlane.xlu1 %4346 }
0x11ff   : > { %6525 = vpow2.f32 %v4427_v26  ;;  %v4387_v32 = vsub.f32 %v9726_v46, %v4347_v24  ;;  %v4388_v61 = vsub.f32 %v9728_v1, %v4347_v24  ;;  %v4477_v23 = vadd.f32 %v9812_v22, %v9810_v5 }
0x1200   : > { %6527 = vpow2.f32 %v4429_v12 }
0x1201   : > { %v9818_v63 = vpop.eup %6517  ;;  %v4431_v7 = vmul.f32 1.442695, %v4387_v32  ;;  %v4433_v9 = vmul.f32 1.442695, %v4388_v61  ;;  %4478 = vadd.xlane.f32.xlu1 %v4477_v23 }
0x1202   : > { %v9820_v25 = vpop.eup %6519  ;;  %v4350_v13 = vpop.xlane.xlu1 %4349 }
0x1203   : > { %6529 = vpow2.f32 %v4431_v7  ;;  %v4389_v19 = vsub.f32 %v9732_v21, %v4350_v13  ;;  %v4390_v51 = vsub.f32 %v9734_v62, %v4350_v13  ;;  %v4480_v46 = vadd.f32 %v9820_v25, %v9818_v63 }
0x1204   : > { %6531 = vpow2.f32 %v4433_v9 }
0x1205   : > { %v9826_v1 = vpop.eup %6521  ;;  %v4435_v31 = vmul.f32 1.442695, %v4389_v19  ;;  %v4437_v58 = vmul.f32 1.442695, %v4390_v51  ;;  %4481 = vadd.xlane.f32.xlu1 %v4480_v46 }
0x1206   : > { %v9828_v52 = vpop.eup %6523  ;;  %v4353_v29 = vpop.xlane.xlu1 %4352 }
0x1207   : > { %6533 = vpow2.f32 %v4435_v31  ;;  %v4391_v45 = vsub.f32 %v9738_v28, %v4353_v29  ;;  %v4392_v14 = vsub.f32 %v9740_v39, %v4353_v29  ;;  %v4483_v21 = vadd.f32 %v9828_v52, %v9826_v1 }
0x1208   : > { %6535 = vpow2.f32 %v4437_v58 }
0x1209   : > { %v9834_v62 = vpop.eup %6525  ;;  %v4439_v26 = vmul.f32 1.442695, %v4391_v45  ;;  %v4441_v12 = vmul.f32 1.442695, %v4392_v14  ;;  %4484 = vadd.xlane.f32.xlu1 %v4483_v21 }
0x120a   : > { %v9836_v24 = vpop.eup %6527  ;;  %v4356_v32 = vpop.xlane.xlu1 %4355 }
0x120b   : > { %6537 = vpow2.f32 %v4439_v26  ;;  %v4393_v61 = vsub.f32 %v9744_v35, %v4356_v32  ;;  %v4394_v23 = vsub.f32 %v9746_v27, %v4356_v32  ;;  %v4486_v28 = vadd.f32 %v9836_v24, %v9834_v62 }
0x120c   : > { %6539 = vpow2.f32 %v4441_v12 }
0x120d   : > { %v9842_v39 = vpop.eup %6529  ;;  %v4443_v7 = vmul.f32 1.442695, %v4393_v61  ;;  %v4445_v9 = vmul.f32 1.442695, %v4394_v23  ;;  %4487 = vadd.xlane.f32.xlu1 %v4486_v28 }
0x120e   : > { %v9844_v13 = vpop.eup %6531  ;;  %v4359_v19 = vpop.xlane.xlu1 %4358 }
0x120f   : > { %6541 = vpow2.f32 %v4443_v7  ;;  %v4395_v51 = vsub.f32 %v9750_v54, %v4359_v19  ;;  %v4396_v46 = vsub.f32 %v9752_v59, %v4359_v19  ;;  %v4489_v35 = vadd.f32 %v9844_v13, %v9842_v39 }
0x1210   : > { %6543 = vpow2.f32 %v4445_v9 }
0x1211   : > { %v9850_v27 = vpop.eup %6533  ;;  %v4447_v31 = vmul.f32 1.442695, %v4395_v51  ;;  %v4449_v58 = vmul.f32 1.442695, %v4396_v46  ;;  %4490 = vadd.xlane.f32.xlu1 %v4489_v35 }
0x1212   : > { %v9852_v29 = vpop.eup %6535  ;;  %v4362_v45 = vpop.xlane.xlu1 %4361 }
0x1213   : > { %6545 = vpow2.f32 %v4447_v31  ;;  %v4397_v14 = vsub.f32 %v9756_v20, %v4362_v45  ;;  %v4398_v21 = vsub.f32 %v9758_v8, %v4362_v45  ;;  %v4492_v54 = vadd.f32 %v9852_v29, %v9850_v27 }
0x1214   : > { %6547 = vpow2.f32 %v4449_v58 }
0x1215   : > { %v9858_v59 = vpop.eup %6537  ;;  %v4451_v26 = vmul.f32 1.442695, %v4397_v14  ;;  %v4453_v12 = vmul.f32 1.442695, %v4398_v21  ;;  %4493 = vadd.xlane.f32.xlu0 %v4492_v54 }
0x1216   : > { %v9860_v32 = vpop.eup %6539  ;;  %v4365_v61 = vpop.xlane.xlu0 %4364 }
0x1217   : > { %6549 = vpow2.f32 %v4451_v26  ;;  %v4399_v23 = vsub.f32 %v9762_v50, %v4365_v61  ;;  %v4400_v28 = vsub.f32 %v9764_v4, %v4365_v61  ;;  %v4495_v20 = vadd.f32 %v9860_v32, %v9858_v59 }
0x1218   : > { %6551 = vpow2.f32 %v4453_v12  ;;  %v4368_v8 = vpop.xlane.xlu1 %4367 }
0x1219   : > { %v9866_v7 = vpop.eup %6541  ;;  %v4455_v9 = vmul.f32 1.442695, %v4399_v23  ;;  %v4457_v19 = vmul.f32 1.442695, %v4400_v28  ;;  %v4401_v51 = vsub.f32 %v9768_v18, %v4368_v8  ;;  %v4402_v46 = vsub.f32 %v9770_v30, %v4368_v8  ;;  %4496 = vadd.xlane.f32.xlu1 %v4495_v20 }
0x121a   : > { %v9870_v35 = vpop.eup %6543 }
0x121b   : > { %6553 = vpow2.f32 %v4455_v9  ;;  %v4459_v50 = vmul.f32 1.442695, %v4401_v51  ;;  %v4461_v31 = vmul.f32 1.442695, %v4402_v46  ;;  %v4498_v4 = vadd.f32 %v9870_v35, %v9866_v7 }
0x121c   : > { %6555 = vpow2.f32 %v4457_v19 }
0x121d   : > { %v9874_v58 = vpop.eup %6545  ;;  %6557 = vpow2.f32 %v4459_v50  ;;  %4499 = vadd.xlane.f32.xlu0 %v4498_v4 }
0x121e   : > { %v9876_v45 = vpop.eup %6547  ;;  %6559 = vpow2.f32 %v4461_v31  ;;  %v4371_v18 = vpop.xlane.xlu1 %4370 }
0x121f   : > { %v4403_v30 = vsub.f32 %v9774_v56, %v4371_v18  ;;  %v4404_v14 = vsub.f32 %v9776_v37, %v4371_v18  ;;  %v4501_v21 = vadd.f32 %v9876_v45, %v9874_v58 }
0x1221   : > { %v9882_v54 = vpop.eup %6549  ;;  %v4463_v26 = vmul.f32 1.442695, %v4403_v30  ;;  %v4465_v12 = vmul.f32 1.442695, %v4404_v14  ;;  %4502 = vadd.xlane.f32.xlu1 %v4501_v21  ;;  %v10735_v21 = vld [vmem:[#allocation39_spill] sm:$0xff] }
0x1222   : > { %v9884_v61 = vpop.eup %6551  ;;  %v4374_v23 = vpop.xlane.xlu1 %4373 }
0x1223   : > { %6561 = vpow2.f32 %v4463_v26  ;;  %v4405_v28 = vsub.f32 %v9780_v48, %v4374_v23  ;;  %v4406_v20 = vsub.f32 %v9782_v57, %v4374_v23  ;;  %v4504_v56 = vadd.f32 %v9884_v61, %v9882_v54  ;;  %v10736_v26 = vld [vmem:[#allocation37_spill] sm:$0xff]  ;;  %v10738_v23 = vld [vmem:[#allocation38_spill] sm:$0xff] }
0x1224   : > { %6563 = vpow2.f32 %v4465_v12  ;;  %v10737_v12 = vpack.c.bf16 %v10735_v21, %v10736_v26 }
0x1225   : > { %v9890_v37 = vpop.eup %6553  ;;  %v4467_v8 = vmul.f32 1.442695, %v4405_v28  ;;  %v4469_v9 = vmul.f32 1.442695, %v4406_v20  ;;  %4505 = vadd.xlane.f32.xlu0 %v4504_v56  ;;  %v10739_v28 = vld [vmem:[#allocation36_spill] sm:$0xff] }
0x1226   : > { %v9892_v19 = vpop.eup %6555  ;;  %v10740_v20 = vpack.c.bf16 %v10738_v23, %v10739_v28 }
0x1227   : > { %v9894_v51 = vpop.eup %6557  ;;  %6565 = vpow2.f32 %v4467_v8  ;;  %v4507_v46 = vadd.f32 %v9892_v19, %v9890_v37 }
0x1228   : > { %v9898_v48 = vpop.eup %6559  ;;  %6567 = vpow2.f32 %v4469_v9 }
0x1229   : > { %4508 = vadd.xlane.f32.xlu1 %v4507_v46  ;;  %v4510_v57 = vadd.f32 %v9898_v48, %v9894_v51 }
0x122b   : > { %4511 = vadd.xlane.f32.xlu0 %v4510_v57 }
0x122d   : > { %v9902_v50 = vpop.eup %6561 }
0x122e   : > { %v9904_v31 = vpop.eup %6563 }
0x122f   : > { %v4513_v4 = vadd.f32 %v9904_v31, %v9902_v50 }
0x1231   : > { %v9908_v18 = vpop.eup %6565  ;;  %4514 = vadd.xlane.f32.xlu1 %v4513_v4 }
0x1232   : > { %v9910_v30 = vpop.eup %6567 }
0x1233   : > { %v4516_v14 = vadd.f32 %v9910_v30, %v9908_v18 }
0x1235   : > { %4517 = vadd.xlane.f32.xlu0 %v4516_v14 }
0x125e   : > { %4634 = vxpose.xlu1.c.b16.start [1/2] (short) %v10737_v12, 128 }
0x1262   : > { %4635 = vxpose.xlu1.c.b16.end [2/2] (short) %v10740_v20, 128 }
0x1286   : > { %v4473_v56 = vpop.xlane.xlu1 %4472 }
0x1287   : > { %6569 = vrcp.f32 %v4473_v56 }
0x128a   : > { %v4476_v8 = vpop.xlane.xlu1 %4475 }
0x128b   : > { %6571 = vrcp.f32 %v4476_v8 }
0x128e   : > { %v4479_v9 = vpop.xlane.xlu1 %4478 }
0x128f   : > { %6573 = vrcp.f32 %v4479_v9 }
0x1291   : > { %v6570_v57 = vpop.eup %6569 }
0x1292   : > { %v4482_v46 = vpop.xlane.xlu1 %4481  ;;  %v4536_v14 = vmul.f32 %v6570_v57, %v9796_v11  ;;  %v4535_v26 = vmul.f32 %v6570_v57, %v9794_v41 }
0x1293   : > { %6575 = vrcp.f32 %v4482_v46 }
0x1295   : > { %v6572_v4 = vpop.eup %6571 }
0x1296   : > { %v4485_v16 = vpop.xlane.xlu1 %4484  ;;  %v4538_v21 = vmul.f32 %v6572_v4, %v9804_v3  ;;  %v4537_v12 = vmul.f32 %v6572_v4, %v9802_v60 }
0x1297   : > { %6577 = vrcp.f32 %v4485_v16 }
0x1298   : > { %v4568_v23 = vpack.c.bf16 %v4538_v21, %v4536_v14  ;;  %v4567_v28 = vpack.c.bf16 %v4537_v12, %v4535_v26 }
0x1299   : > { %v6574_v56 = vpop.eup %6573 }
0x129a   : > { %4583 = vmatprep.subr.bf16.mxu0 %v4568_v23  ;;  %v4488_v20 = vpop.xlane.xlu1 %4487  ;;  %v4540_v46 = vmul.f32 %v6574_v56, %v9812_v22  ;;  %v4539_v3 = vmul.f32 %v6574_v56, %v9810_v5 }
0x129b   : > { %6579 = vrcp.f32 %v4488_v20  ;;  %4584 = vmatpush1.bf16.xpose.msra.mxu0 %v4567_v28 }
0x129d   : > { %v6576_v8 = vpop.eup %6575 }
0x129e   : > { %v4491_v9 = vpop.xlane.xlu1 %4490  ;;  %v4542_v11 = vmul.f32 %v6576_v8, %v9820_v25  ;;  %v4541_v41 = vmul.f32 %v6576_v8, %v9818_v63 }
0x129f   : > { %6581 = vrcp.f32 %v4491_v9 }
0x12a0   : > { %v4570_v57 = vpack.c.bf16 %v4542_v11, %v4540_v46  ;;  %v4569_v60 = vpack.c.bf16 %v4541_v41, %v4539_v3 }
0x12a1   : > { %v6578_v4 = vpop.eup %6577 }
0x12a2   : > { %4585 = vmatprep.subr.bf16.mxu0 %v4570_v57  ;;  %v4494_v16 = vpop.xlane.xlu0 %4493  ;;  %v4544_v26 = vmul.f32 %v6578_v4, %v9828_v52  ;;  %v4543_v25 = vmul.f32 %v6578_v4, %v9826_v1 }
0x12a3   : > { %6583 = vrcp.f32 %v4494_v16  ;;  %4586 = vmatpush1.bf16.xpose.msra.mxu0 %v4569_v60 }
0x12a5   : > { %v6580_v14 = vpop.eup %6579 }
0x12a6   : > { %v4497_v21 = vpop.xlane.xlu1 %4496  ;;  %v4546_v22 = vmul.f32 %v6580_v14, %v9836_v24  ;;  %v4545_v5 = vmul.f32 %v6580_v14, %v9834_v62 }
0x12a7   : > { %6585 = vrcp.f32 %v4497_v21 }
0x12a8   : > { %v4572_v12 = vpack.c.bf16 %v4546_v22, %v4544_v26  ;;  %v4571_v63 = vpack.c.bf16 %v4545_v5, %v4543_v25 }
0x12a9   : > { %v6582_v28 = vpop.eup %6581 }
0x12aa   : > { %4587 = vmatprep.subr.bf16.mxu0 %v4572_v12  ;;  %v4500_v23 = vpop.xlane.xlu0 %4499  ;;  %v4548_v8 = vmul.f32 %v6582_v28, %v9844_v13  ;;  %v4547_v24 = vmul.f32 %v6582_v28, %v9842_v39 }
0x12ab   : > { %6587 = vrcp.f32 %v4500_v23  ;;  %4588 = vmatpush1.bf16.xpose.msra.mxu0 %v4571_v63 }
0x12ad   : > { %v6584_v20 = vpop.eup %6583 }
0x12ae   : > { %v4503_v56 = vpop.xlane.xlu1 %4502  ;;  %v4550_v52 = vmul.f32 %v6584_v20, %v9852_v29  ;;  %v4549_v1 = vmul.f32 %v6584_v20, %v9850_v27 }
0x12af   : > { %6589 = vrcp.f32 %v4503_v56 }
0x12b0   : > { %v4574_v9 = vpack.c.bf16 %v4550_v52, %v4548_v8  ;;  %v4573_v62 = vpack.c.bf16 %v4549_v1, %v4547_v24  ;;  %v10742_v1 = vld [vmem:[#allocation81_spill] sm:$0xff] }
0x12b1   : > { %v6586_v11 = vpop.eup %6585 }
0x12b2   : > { %4589 = vmatprep.subr.bf16.mxu0 %v4574_v9  ;;  %v4506_v46 = vpop.xlane.xlu0 %4505  ;;  %v4552_v57 = vmul.f32 %v6586_v11, %v9860_v32  ;;  %v4551_v29 = vmul.f32 %v6586_v11, %v9858_v59  ;;  %v10744_v9 = vld [vmem:[#allocation21_spill] sm:$0xff] }
0x12b3   : > { %6591 = vrcp.f32 %v4506_v46  ;;  %4590 = vmatpush1.bf16.xpose.msra.mxu0 %v4573_v62  ;;  %v10745_v62 = vld [vmem:[#allocation23_spill] sm:$0xff]  ;;  %v10747_v11 = vld [vmem:[#allocation49_spill] sm:$0xff] }
0x12b4   : > { %v10746_v46 = vpack.c.bf16 %v10744_v9, %v10745_v62 }
0x12b5   : > { %v6588_v3 = vpop.eup %6587 }
0x12b6   : > { %v4509_v41 = vpop.xlane.xlu1 %4508  ;;  %v4554_v13 = vmul.f32 %v6588_v3, %v9870_v35  ;;  %v4553_v39 = vmul.f32 %v6588_v3, %v9866_v7 }
0x12b7   : > { %6593 = vrcp.f32 %v4509_v41 }
0x12b8   : > { %v4512_v27 = vpop.xlane.xlu0 %4511  ;;  %v4576_v60 = vpack.c.bf16 %v4554_v13, %v4552_v57  ;;  %v4575_v16 = vpack.c.bf16 %v4553_v39, %v4551_v29  ;;  %v10754_v57 = vld [vmem:[#allocation85_spill] sm:$0xff]  ;;  %v10756_v29 = vld [vmem:[#allocation86_spill] sm:$0xff]  ;;  %v10757_v39 = vld [vmem:[#allocation84_spill] sm:$0xff] }
0x12b9   : > { %6595 = vrcp.f32 %v4512_v27  ;;  %v6590_v4 = vpop.eup %6589  ;;  %v10758_v27 = vpack.c.bf16 %v10756_v29, %v10757_v39 }
0x12ba   : > { %4591 = vmatprep.subr.bf16.mxu0 %v4576_v60  ;;  %v4556_v26 = vmul.f32 %v6590_v4, %v9876_v45  ;;  %v4555_v35 = vmul.f32 %v6590_v4, %v9874_v58  ;;  %v10759_v60 = vld [vmem:[#allocation51_spill] sm:$0xff] }
0x12bb   : > { %4592 = vmatpush1.bf16.xpose.msra.mxu0 %v4575_v16  ;;  %v10760_v16 = vld [vmem:[#allocation22_spill] sm:$0xff] }
0x12bc   : > { %v10761_v4 = vpack.c.bf16 %v10759_v60, %v10760_v16 }
0x12bd   : > { %v6592_v14 = vpop.eup %6591 }
0x12be   : > { %v4515_v21 = vpop.xlane.xlu1 %4514  ;;  %v4558_v32 = vmul.f32 %v6592_v14, %v9884_v61  ;;  %v4557_v59 = vmul.f32 %v6592_v14, %v9882_v54 }
0x12bf   : > { %6597 = vrcp.f32 %v4515_v21 }
0x12c0   : > { %v4578_v22 = vpack.c.bf16 %v4558_v32, %v4556_v26  ;;  %v4577_v7 = vpack.c.bf16 %v4557_v59, %v4555_v35 }
0x12c1   : > { %v6594_v25 = vpop.eup %6593 }
0x12c2   : > { %4593 = vmatprep.subr.bf16.mxu0 %v4578_v22  ;;  %v4518_v5 = vpop.xlane.xlu0 %4517  ;;  %v4560_v63 = vmul.f32 %v6594_v25, %v9892_v19  ;;  %v4559_v58 = vmul.f32 %v6594_v25, %v9890_v37 }
0x12c3   : > { %v6596_v12 = vpop.eup %6595  ;;  %6599 = vrcp.f32 %v4518_v5  ;;  %4594 = vmatpush1.bf16.xpose.msra.mxu0 %v4577_v7 }
0x12c4   : > { %v4562_v23 = vmul.f32 %v6596_v12, %v9898_v48  ;;  %v4561_v45 = vmul.f32 %v6596_v12, %v9894_v51  ;;  %v10741_v51 = vld [vmem:[#allocation83_spill] sm:$0xff]  ;;  %v4642_v14 = vpop.trf.xlu1 }
0x12c5   : > { %v10743_v37 = vpack.c.bf16 %v10741_v51, %v10742_v1 }
0x12c6   : > { %v4580_v61 = vpack.c.bf16 %v4562_v23, %v4560_v63  ;;  %v4579_v54 = vpack.c.bf16 %v4561_v45, %v4559_v58 }
0x12c8   : > { %4595 = vmatprep.subr.bf16.mxu0 %v4580_v61  ;;  %v4643_v21 = vpop.trf.xlu1 }
0x12c9   : > { %v6598_v28 = vpop.eup %6597 }
0x12ca   : > { %v4564_v56 = vmul.f32 %v6598_v28, %v9904_v31  ;;  %v4563_v52 = vmul.f32 %v6598_v28, %v9902_v50  ;;  %v10748_v31 = vld [vmem:[#allocation20_spill] sm:$0xff] }
0x12cb   : > { %4596 = vmatpush1.bf16.xpose.msra.mxu0 %v4579_v54  ;;  %v10749_v3 = vpack.c.bf16 %v10747_v11, %v10748_v31  ;;  %v10751_v50 = vld [vmem:[#allocation80_spill] sm:$0xff] }
0x12cc   : > { %v4644_v26 = vpop.trf.xlu1 }
0x12cd   : > { %v6600_v20 = vpop.eup %6599 }
0x12ce   : > { %v4566_v8 = vmul.f32 %v6600_v20, %v9910_v30  ;;  %v4565_v19 = vmul.f32 %v6600_v20, %v9908_v18  ;;  %v10750_v30 = vld [vmem:[#allocation82_spill] sm:$0xff]  ;;  %v10753_v18 = vld [vmem:[#allocation87_spill] sm:$0xff] }
0x12cf   : > { %v10752_v41 = vpack.c.bf16 %v10750_v30, %v10751_v50  ;;  %v10755_v13 = vpack.c.bf16 %v10753_v18, %v10754_v57 }
0x12d0   : > { %v4582_v24 = vpack.c.bf16 %v4566_v8, %v4564_v56  ;;  %v4581_v48 = vpack.c.bf16 %v4565_v19, %v4563_v52  ;;  %v4645_v32 = vpop.trf.xlu1 }
0x12d2   : > { %4597 = vmatprep.subr.bf16.mxu0 %v4582_v24 }
0x12d3   : > { %4598 = vmatpush1.bf16.xpose.msra.mxu0 %v4581_v48 }
0x12d4   : > { %4674 = vmatprep.subr.bf16.mxu0 %v10743_v37  ;;  %v4646_v35 = vpop.trf.xlu1 }
0x12d8   : > { %v4647_v59 = vpop.trf.xlu1 }
0x12da   : > { %4616 = vmatmul.mubr.bf16.vlgmr.msra.gmra.mrb[208].mxu0 %v10746_v46 }
0x12db   : > { %4623 = vmatprep.mubr.bf16.mxu0 %v10749_v3  ;;  %4675 = vmatpush1.bf16.msra.mxu0 %v10752_v41 }
0x12dc   : > { %4676 = vmatprep.subr.bf16.mxu0 %v10755_v13  ;;  %v4648_v22 = vpop.trf.xlu1 }
0x12df   : > { %4677 = vmatpush1.bf16.msra.mxu0 %v10758_v27 }
0x12e0   : > { %v4649_v7 = vpop.trf.xlu1 }
0x12e2   : > { %4624 = vmatmul.mubr.bf16.gmra.mrb[212].mxu0 %v10761_v4 }
0x12e3   : > { %4706 = vmatprep.mubr.bf16.mxu0 %v10597_v0 }
0x12ea   : > { %5614 = vmatmul.mubr.msk.bf16.vlgmr.msra.gmra.mrb[216].mxu0 %vm1429_vm2, %v4642_v14 }
0x12eb   : > { %4716 = vmatprep.mubr.bf16.mxu0 %v10597_v0 }
0x12f2   : > { %5615 = vmatmul.mubr.msk.bf16.gmra.mrb[220].mxu0 %vm1429_vm2, %v4643_v21 }
0x12f3   : > { %4726 = vmatprep.mubr.bf16.mxu0 %v10597_v0 }
0x12fa   : > { %5616 = vmatmul.mubr.msk.bf16.gmra.mrb[224].mxu0 %vm1429_vm2, %v4644_v26 }
0x12fb   : > { %4736 = vmatprep.mubr.bf16.mxu0 %v10597_v0 }
0x1302   : > { %5617 = vmatmul.mubr.msk.bf16.gmra.mrb[228].mxu0 %vm1429_vm2, %v4645_v32 }
0x1303   : > { %4746 = vmatprep.mubr.bf16.mxu0 %v10597_v0 }
0x130a   : > { %5618 = vmatmul.mubr.msk.bf16.gmra.mrb[232].mxu0 %vm1429_vm2, %v4646_v35 }
0x130b   : > { %4756 = vmatprep.mubr.bf16.mxu0 %v10597_v0 }
0x1312   : > { %5619 = vmatmul.mubr.msk.bf16.gmra.mrb[236].mxu0 %vm1429_vm2, %v4647_v59 }
0x1313   : > { %4766 = vmatprep.mubr.bf16.mxu0 %v10597_v0 }
0x131a   : > { %5620 = vmatmul.mubr.msk.bf16.gmra.mrb[240].mxu0 %vm1429_vm2, %v4648_v22 }
0x131b   : > { %4776 = vmatprep.mubr.bf16.mxu0 %v10597_v0 }
0x1322   : > { %5621 = vmatmul.mubr.msk.bf16.gmra.mrb[244].mxu0 %vm1429_vm2, %v4649_v7 }
0x13ad   : > { %v9989_v25 = vpop.f32.mrb[208].mxu0 }
0x13ae   : > { %v4619_v5 = vpop.f32.mrb[209].mxu0 }
0x13af   : > { %v9991_v12 = vpop.f32.mrb[210].mxu0 }
0x13b0   : > { %v4622_v23 = vpop.f32.mrb[211].mxu0 }
0x13b5   : > { %v9995_v45 = vpop.f32.mrb[212].mxu0 }
0x13b6   : > { %v4627_v61 = vpop.f32.mrb[213].mxu0 }
0x13b7   : > { %v9997_v58 = vpop.f32.mrb[214].mxu0 }
0x13b8   : > { %v4630_v28 = vpop.f32.mrb[215].mxu0 }
0x13bd   : > { %v10001_v20 = vpop.f32.mrb[216].mxu0 }
0x13be   : > { %v10003_v56 = vpop.f32.mrb[217].mxu0 }
0x13bf   : > { %v4787_v8 = vmax.f32 %v10001_v20, %v10003_v56  ;;  %v10007_v52 = vpop.f32.mrb[218].mxu0 }
0x13c0   : > { %v10009_v19 = vpop.f32.mrb[219].mxu0 }
0x13c1   : > { %4788 = vmax.xlane.f32.xlu0 %v4787_v8  ;;  %v4790_v24 = vmax.f32 %v10007_v52, %v10009_v19 }
0x13c5   : > { %4791 = vmax.xlane.f32.xlu0 %v4790_v24  ;;  %v10013_v48 = vpop.f32.mrb[220].mxu0 }
0x13c6   : > { %v10015_v51 = vpop.f32.mrb[221].mxu0 }
0x13c7   : > { %v4793_v1 = vmax.f32 %v10013_v48, %v10015_v51  ;;  %v10019_v37 = vpop.f32.mrb[222].mxu0 }
0x13c8   : > { %v10021_v9 = vpop.f32.mrb[223].mxu0 }
0x13c9   : > { %4794 = vmax.xlane.f32.xlu0 %v4793_v1  ;;  %v4796_v62 = vmax.f32 %v10019_v37, %v10021_v9 }
0x13cd   : > { %4797 = vmax.xlane.f32.xlu0 %v4796_v62  ;;  %v10025_v46 = vpop.f32.mrb[224].mxu0 }
0x13ce   : > { %v10027_v11 = vpop.f32.mrb[225].mxu0 }
0x13cf   : > { %v4799_v31 = vmax.f32 %v10025_v46, %v10027_v11  ;;  %v10031_v3 = vpop.f32.mrb[226].mxu0 }
0x13d0   : > { %v10033_v30 = vpop.f32.mrb[227].mxu0 }
0x13d1   : > { %4800 = vmax.xlane.f32.xlu0 %v4799_v31  ;;  %v4802_v50 = vmax.f32 %v10031_v3, %v10033_v30 }
0x13d5   : > { %4803 = vmax.xlane.f32.xlu0 %v4802_v50  ;;  %v10037_v41 = vpop.f32.mrb[228].mxu0 }
0x13d6   : > { %v10039_v18 = vpop.f32.mrb[229].mxu0 }
0x13d7   : > { %v4805_v57 = vmax.f32 %v10037_v41, %v10039_v18  ;;  %v10043_v13 = vpop.f32.mrb[230].mxu0 }
0x13d8   : > { %v10045_v29 = vpop.f32.mrb[231].mxu0 }
0x13d9   : > { %4806 = vmax.xlane.f32.xlu0 %v4805_v57  ;;  %v4808_v39 = vmax.f32 %v10043_v13, %v10045_v29 }
0x13dd   : > { %4809 = vmax.xlane.f32.xlu0 %v4808_v39  ;;  %v10049_v27 = vpop.f32.mrb[232].mxu0 }
0x13de   : > { %v10051_v60 = vpop.f32.mrb[233].mxu0 }
0x13df   : > { %v4811_v16 = vmax.f32 %v10049_v27, %v10051_v60  ;;  %v10055_v4 = vpop.f32.mrb[234].mxu0 }
0x13e0   : > { %v10057_v14 = vpop.f32.mrb[235].mxu0 }
0x13e1   : > { %4812 = vmax.xlane.f32.xlu0 %v4811_v16  ;;  %v4814_v21 = vmax.f32 %v10055_v4, %v10057_v14 }
0x13e5   : > { %4815 = vmax.xlane.f32.xlu0 %v4814_v21  ;;  %v10061_v26 = vpop.f32.mrb[236].mxu0 }
0x13e6   : > { %v10063_v32 = vpop.f32.mrb[237].mxu0 }
0x13e7   : > { %v4817_v35 = vmax.f32 %v10061_v26, %v10063_v32  ;;  %v10067_v59 = vpop.f32.mrb[238].mxu0 }
0x13e8   : > { %v10069_v22 = vpop.f32.mrb[239].mxu0 }
0x13e9   : > { %4818 = vmax.xlane.f32.xlu0 %v4817_v35  ;;  %v4820_v7 = vmax.f32 %v10067_v59, %v10069_v22 }
0x13ed   : > { %4821 = vmax.xlane.f32.xlu0 %v4820_v7  ;;  %v10073_v5 = vpop.f32.mrb[240].mxu0 }
0x13ee   : > { %v10075_v23 = vpop.f32.mrb[241].mxu0 }
0x13ef   : > { %v4823_v61 = vmax.f32 %v10073_v5, %v10075_v23  ;;  %v10079_v28 = vpop.f32.mrb[242].mxu0 }
0x13f0   : > { %v10081_v8 = vpop.f32.mrb[243].mxu0 }
0x13f1   : > { %v4826_v24 = vmax.f32 %v10079_v28, %v10081_v8  ;;  %4824 = vmax.xlane.f32.xlu0 %v4823_v61 }
0x13f3   : > { %4827 = vmax.xlane.f32.xlu1 %v4826_v24 }
0x13f5   : > { %v10085_v1 = vpop.f32.mrb[244].mxu0 }
0x13f6   : > { %v10087_v62 = vpop.f32.mrb[245].mxu0 }
0x13f7   : > { %v4829_v31 = vmax.f32 %v10085_v1, %v10087_v62  ;;  %v10091_v50 = vpop.f32.mrb[246].mxu0 }
0x13f8   : > { %v10093_v57 = vpop.f32.mrb[247].mxu0 }
0x13f9   : > { %4830 = vmax.xlane.f32.xlu0 %v4829_v31  ;;  %v4832_v39 = vmax.f32 %v10091_v50, %v10093_v57 }
0x13fd   : > { %4833 = vmax.xlane.f32.xlu0 %v4832_v39 }
0x144e   : > { %v4789_v16 = vpop.xlane.xlu0 %4788 }
0x144f   : > { %v4835_v21 = vsub.f32 %v10001_v20, %v4789_v16  ;;  %v4836_v35 = vsub.f32 %v10003_v56, %v4789_v16 }
0x1451   : > { %v4867_v7 = vmul.f32 1.442695, %v4835_v21  ;;  %v4869_v61 = vmul.f32 1.442695, %v4836_v35 }
0x1452   : > { %v4792_v24 = vpop.xlane.xlu0 %4791 }
0x1453   : > { %6601 = vpow2.f32 %v4867_v7  ;;  %v4837_v2 = vsub.f32 %v10007_v52, %v4792_v24  ;;  %v4838_v54 = vsub.f32 %v10009_v19, %v4792_v24 }
0x1454   : > { %6603 = vpow2.f32 %v4869_v61 }
0x1455   : > { %v4871_v63 = vmul.f32 1.442695, %v4837_v2  ;;  %v4873_v31 = vmul.f32 1.442695, %v4838_v54 }
0x1456   : > { %v4795_v38 = vpop.xlane.xlu0 %4794 }
0x1457   : > { %6605 = vpow2.f32 %v4871_v63  ;;  %v4839_v39 = vsub.f32 %v10013_v48, %v4795_v38  ;;  %v4840_v47 = vsub.f32 %v10015_v51, %v4795_v38 }
0x1458   : > { %6607 = vpow2.f32 %v4873_v31 }
0x1459   : > { %v4875_v20 = vmul.f32 1.442695, %v4839_v39  ;;  %v4877_v56 = vmul.f32 1.442695, %v4840_v47 }
0x145a   : > { %v4798_v16 = vpop.xlane.xlu0 %4797 }
0x145b   : > { %6609 = vpow2.f32 %v4875_v20  ;;  %v4841_v21 = vsub.f32 %v10019_v37, %v4798_v16  ;;  %v4842_v52 = vsub.f32 %v10021_v9, %v4798_v16 }
0x145c   : > { %6611 = vpow2.f32 %v4877_v56 }
0x145d   : > { %v10105_v19 = vpop.eup %6601  ;;  %v4879_v2 = vmul.f32 1.442695, %v4841_v21  ;;  %v4881_v54 = vmul.f32 1.442695, %v4842_v52 }
0x145e   : > { %v10107_v35 = vpop.eup %6603  ;;  %v4801_v63 = vpop.xlane.xlu0 %4800 }
0x145f   : > { %6613 = vpow2.f32 %v4879_v2  ;;  %v4843_v38 = vsub.f32 %v10025_v46, %v4801_v63  ;;  %v4844_v48 = vsub.f32 %v10027_v11, %v4801_v63  ;;  %v4931_v47 = vadd.f32 %v10107_v35, %v10105_v19 }
0x1460   : > { %6615 = vpow2.f32 %v4881_v54 }
0x1461   : > { %v10113_v51 = vpop.eup %6605  ;;  %v4883_v37 = vmul.f32 1.442695, %v4843_v38  ;;  %v4885_v9 = vmul.f32 1.442695, %v4844_v48  ;;  %4932 = vadd.xlane.f32.xlu0 %v4931_v47 }
0x1462   : > { %v10115_v7 = vpop.eup %6607  ;;  %v4804_v61 = vpop.xlane.xlu0 %4803 }
0x1463   : > { %6617 = vpow2.f32 %v4883_v37  ;;  %v4845_v24 = vsub.f32 %v10031_v3, %v4804_v61  ;;  %v4846_v31 = vsub.f32 %v10033_v30, %v4804_v61  ;;  %v4934_v46 = vadd.f32 %v10115_v7, %v10113_v51 }
0x1464   : > { %6619 = vpow2.f32 %v4885_v9 }
0x1465   : > { %v10121_v11 = vpop.eup %6609  ;;  %v4887_v39 = vmul.f32 1.442695, %v4845_v24  ;;  %v4889_v20 = vmul.f32 1.442695, %v4846_v31  ;;  %4935 = vadd.xlane.f32.xlu0 %v4934_v46 }
0x1466   : > { %v10123_v56 = vpop.eup %6611  ;;  %v4807_v16 = vpop.xlane.xlu0 %4806 }
0x1467   : > { %6621 = vpow2.f32 %v4887_v39  ;;  %v4847_v21 = vsub.f32 %v10037_v41, %v4807_v16  ;;  %v4848_v52 = vsub.f32 %v10039_v18, %v4807_v16  ;;  %v4937_v3 = vadd.f32 %v10123_v56, %v10121_v11 }
0x1468   : > { %6623 = vpow2.f32 %v4889_v20 }
0x1469   : > { %v10129_v30 = vpop.eup %6613  ;;  %v4891_v2 = vmul.f32 1.442695, %v4847_v21  ;;  %v4893_v54 = vmul.f32 1.442695, %v4848_v52  ;;  %4938 = vadd.xlane.f32.xlu0 %v4937_v3 }
0x146a   : > { %v10131_v63 = vpop.eup %6615  ;;  %v4810_v38 = vpop.xlane.xlu0 %4809 }
0x146b   : > { %6625 = vpow2.f32 %v4891_v2  ;;  %v4849_v48 = vsub.f32 %v10043_v13, %v4810_v38  ;;  %v4850_v47 = vsub.f32 %v10045_v29, %v4810_v38  ;;  %v4940_v41 = vadd.f32 %v10131_v63, %v10129_v30 }
0x146c   : > { %6627 = vpow2.f32 %v4893_v54 }
0x146d   : > { %v10137_v18 = vpop.eup %6617  ;;  %v4895_v37 = vmul.f32 1.442695, %v4849_v48  ;;  %v4897_v9 = vmul.f32 1.442695, %v4850_v47  ;;  %4941 = vadd.xlane.f32.xlu0 %v4940_v41 }
0x146e   : > { %v10139_v61 = vpop.eup %6619  ;;  %v4813_v24 = vpop.xlane.xlu0 %4812 }
0x146f   : > { %6629 = vpow2.f32 %v4895_v37  ;;  %v4851_v31 = vsub.f32 %v10049_v27, %v4813_v24  ;;  %v4852_v46 = vsub.f32 %v10051_v60, %v4813_v24  ;;  %v4943_v13 = vadd.f32 %v10139_v61, %v10137_v18 }
0x1470   : > { %6631 = vpow2.f32 %v4897_v9 }
0x1471   : > { %v10145_v29 = vpop.eup %6621  ;;  %v4899_v39 = vmul.f32 1.442695, %v4851_v31  ;;  %v4901_v20 = vmul.f32 1.442695, %v4852_v46  ;;  %4944 = vadd.xlane.f32.xlu0 %v4943_v13 }
0x1472   : > { %v10147_v16 = vpop.eup %6623  ;;  %v4816_v21 = vpop.xlane.xlu0 %4815 }
0x1473   : > { %6633 = vpow2.f32 %v4899_v39  ;;  %v4853_v52 = vsub.f32 %v10055_v4, %v4816_v21  ;;  %v4854_v3 = vsub.f32 %v10057_v14, %v4816_v21  ;;  %v4946_v27 = vadd.f32 %v10147_v16, %v10145_v29 }
0x1474   : > { %6635 = vpow2.f32 %v4901_v20 }
0x1475   : > { %v10153_v60 = vpop.eup %6625  ;;  %v4903_v2 = vmul.f32 1.442695, %v4853_v52  ;;  %v4905_v54 = vmul.f32 1.442695, %v4854_v3  ;;  %4947 = vadd.xlane.f32.xlu0 %v4946_v27 }
0x1476   : > { %v10155_v38 = vpop.eup %6627  ;;  %v4819_v48 = vpop.xlane.xlu0 %4818 }
0x1477   : > { %6637 = vpow2.f32 %v4903_v2  ;;  %v4855_v47 = vsub.f32 %v10061_v26, %v4819_v48  ;;  %v4856_v41 = vsub.f32 %v10063_v32, %v4819_v48  ;;  %v4949_v4 = vadd.f32 %v10155_v38, %v10153_v60 }
0x1478   : > { %6639 = vpow2.f32 %v4905_v54 }
0x1479   : > { %v10161_v14 = vpop.eup %6629  ;;  %v4907_v37 = vmul.f32 1.442695, %v4855_v47  ;;  %v4909_v9 = vmul.f32 1.442695, %v4856_v41  ;;  %4950 = vadd.xlane.f32.xlu0 %v4949_v4 }
0x147a   : > { %v10163_v24 = vpop.eup %6631  ;;  %v4822_v31 = vpop.xlane.xlu0 %4821 }
0x147b   : > { %6641 = vpow2.f32 %v4907_v37  ;;  %v4857_v46 = vsub.f32 %v10067_v59, %v4822_v31  ;;  %v4858_v13 = vsub.f32 %v10069_v22, %v4822_v31  ;;  %v4952_v26 = vadd.f32 %v10163_v24, %v10161_v14 }
0x147c   : > { %6643 = vpow2.f32 %v4909_v9 }
0x147d   : > { %v10169_v32 = vpop.eup %6633  ;;  %v4911_v39 = vmul.f32 1.442695, %v4857_v46  ;;  %v4913_v20 = vmul.f32 1.442695, %v4858_v13  ;;  %4953 = vadd.xlane.f32.xlu1 %v4952_v26 }
0x147e   : > { %v10171_v21 = vpop.eup %6635  ;;  %v4825_v52 = vpop.xlane.xlu0 %4824 }
0x147f   : > { %6645 = vpow2.f32 %v4911_v39  ;;  %v4859_v3 = vsub.f32 %v10073_v5, %v4825_v52  ;;  %v4860_v27 = vsub.f32 %v10075_v23, %v4825_v52  ;;  %v4955_v59 = vadd.f32 %v10171_v21, %v10169_v32 }
0x1480   : > { %6647 = vpow2.f32 %v4913_v20  ;;  %v4828_v22 = vpop.xlane.xlu1 %4827 }
0x1481   : > { %v10177_v2 = vpop.eup %6637  ;;  %v4915_v54 = vmul.f32 1.442695, %v4859_v3  ;;  %v4917_v48 = vmul.f32 1.442695, %v4860_v27  ;;  %v4861_v47 = vsub.f32 %v10079_v28, %v4828_v22  ;;  %v4862_v41 = vsub.f32 %v10081_v8, %v4828_v22  ;;  %4956 = vadd.xlane.f32.xlu0 %v4955_v59 }
0x1482   : > { %v10181_v4 = vpop.eup %6639 }
0x1483   : > { %6649 = vpow2.f32 %v4915_v54  ;;  %v4919_v5 = vmul.f32 1.442695, %v4861_v47  ;;  %v4921_v37 = vmul.f32 1.442695, %v4862_v41  ;;  %v4958_v23 = vadd.f32 %v10181_v4, %v10177_v2 }
0x1484   : > { %6651 = vpow2.f32 %v4917_v48 }
0x1485   : > { %v10185_v9 = vpop.eup %6641  ;;  %6653 = vpow2.f32 %v4919_v5  ;;  %4959 = vadd.xlane.f32.xlu1 %v4958_v23 }
0x1486   : > { %v10187_v31 = vpop.eup %6643  ;;  %6655 = vpow2.f32 %v4921_v37  ;;  %v4831_v28 = vpop.xlane.xlu0 %4830 }
0x1487   : > { %v4863_v8 = vsub.f32 %v10085_v1, %v4831_v28  ;;  %v4864_v46 = vsub.f32 %v10087_v62, %v4831_v28  ;;  %v4961_v13 = vadd.f32 %v10187_v31, %v10185_v9 }
0x1489   : > { %v10193_v26 = vpop.eup %6645  ;;  %v4923_v39 = vmul.f32 1.442695, %v4863_v8  ;;  %v4925_v20 = vmul.f32 1.442695, %v4864_v46  ;;  %4962 = vadd.xlane.f32.xlu0 %v4961_v13 }
0x148a   : > { %v10195_v52 = vpop.eup %6647  ;;  %v4834_v3 = vpop.xlane.xlu0 %4833 }
0x148b   : > { %6657 = vpow2.f32 %v4923_v39  ;;  %v4865_v27 = vsub.f32 %v10091_v50, %v4834_v3  ;;  %v4866_v59 = vsub.f32 %v10093_v57, %v4834_v3  ;;  %v4964_v1 = vadd.f32 %v10195_v52, %v10193_v26 }
0x148c   : > { %6659 = vpow2.f32 %v4925_v20 }
0x148d   : > { %v10201_v62 = vpop.eup %6649  ;;  %v4927_v22 = vmul.f32 1.442695, %v4865_v27  ;;  %v4929_v54 = vmul.f32 1.442695, %v4866_v59  ;;  %4965 = vadd.xlane.f32.xlu1 %v4964_v1 }
0x148e   : > { %v10203_v48 = vpop.eup %6651 }
0x148f   : > { %v10205_v47 = vpop.eup %6653  ;;  %6661 = vpow2.f32 %v4927_v22  ;;  %v4967_v41 = vadd.f32 %v10203_v48, %v10201_v62 }
0x1490   : > { %v10209_v50 = vpop.eup %6655  ;;  %6663 = vpow2.f32 %v4929_v54 }
0x1491   : > { %4968 = vadd.xlane.f32.xlu0 %v4967_v41  ;;  %v4970_v57 = vadd.f32 %v10209_v50, %v10205_v47 }
0x1493   : > { %4971 = vadd.xlane.f32.xlu1 %v4970_v57 }
0x1495   : > { %v10213_v5 = vpop.eup %6657 }
0x1496   : > { %v10215_v37 = vpop.eup %6659 }
0x1497   : > { %v4973_v23 = vadd.f32 %v10215_v37, %v10213_v5 }
0x1499   : > { %v10219_v28 = vpop.eup %6661  ;;  %4974 = vadd.xlane.f32.xlu0 %v4973_v23 }
0x149a   : > { %v10221_v8 = vpop.eup %6663 }
0x149b   : > { %v4976_v46 = vadd.f32 %v10221_v8, %v10219_v28 }
0x149d   : > { %4977 = vadd.xlane.f32.xlu1 %v4976_v46 }
0x14ee   : > { %v4933_v13 = vpop.xlane.xlu0 %4932 }
0x14ef   : > { %6665 = vrcp.f32 %v4933_v13 }
0x14f2   : > { %v4936_v39 = vpop.xlane.xlu0 %4935 }
0x14f3   : > { %6667 = vrcp.f32 %v4936_v39 }
0x14f6   : > { %v4939_v20 = vpop.xlane.xlu0 %4938 }
0x14f7   : > { %6669 = vrcp.f32 %v4939_v20 }
0x14f9   : > { %v6666_v27 = vpop.eup %6665 }
0x14fa   : > { %v4942_v3 = vpop.xlane.xlu0 %4941  ;;  %v4996_v22 = vmul.f32 %v6666_v27, %v10107_v35  ;;  %v4995_v41 = vmul.f32 %v6666_v27, %v10105_v19 }
0x14fb   : > { %6671 = vrcp.f32 %v4942_v3 }
0x14fd   : > { %v6668_v59 = vpop.eup %6667 }
0x14fe   : > { %v4945_v1 = vpop.xlane.xlu0 %4944  ;;  %v4998_v54 = vmul.f32 %v6668_v59, %v10115_v7  ;;  %v4997_v57 = vmul.f32 %v6668_v59, %v10113_v51 }
0x14ff   : > { %6673 = vrcp.f32 %v4945_v1 }
0x1500   : > { %v5028_v23 = vpack.c.bf16 %v4998_v54, %v4996_v22  ;;  %v5027_v46 = vpack.c.bf16 %v4997_v57, %v4995_v41 }
0x1501   : > { %v6670_v39 = vpop.eup %6669 }
0x1502   : > { %5043 = vmatprep.subr.bf16.mxu1 %v5028_v23  ;;  %v4948_v13 = vpop.xlane.xlu0 %4947  ;;  %v5000_v44 = vmul.f32 %v6670_v39, %v10123_v56  ;;  %v4999_v7 = vmul.f32 %v6670_v39, %v10121_v11 }
0x1503   : > { %6675 = vrcp.f32 %v4948_v13  ;;  %5044 = vmatpush1.bf16.xpose.msra.mxu1 %v5027_v46 }
0x1505   : > { %v6672_v20 = vpop.eup %6671 }
0x1506   : > { %v4951_v3 = vpop.xlane.xlu0 %4950  ;;  %v5002_v35 = vmul.f32 %v6672_v20, %v10131_v63  ;;  %v5001_v19 = vmul.f32 %v6672_v20, %v10129_v30 }
0x1507   : > { %6677 = vrcp.f32 %v4951_v3 }
0x1508   : > { %v5030_v27 = vpack.c.bf16 %v5002_v35, %v5000_v44  ;;  %v5029_v51 = vpack.c.bf16 %v5001_v19, %v4999_v7 }
0x1509   : > { %v6674_v1 = vpop.eup %6673 }
0x150a   : > { %v4954_v59 = vpop.xlane.xlu1 %4953  ;;  %5045 = vmatprep.subr.bf16.mxu1 %v5030_v27  ;;  %v5004_v41 = vmul.f32 %v6674_v1, %v10139_v61  ;;  %v5003_v63 = vmul.f32 %v6674_v1, %v10137_v18 }
0x150b   : > { %6679 = vrcp.f32 %v4954_v59  ;;  %5046 = vmatpush1.bf16.xpose.msra.mxu1 %v5029_v51 }
0x150d   : > { %v6676_v22 = vpop.eup %6675 }
0x150e   : > { %v4957_v54 = vpop.xlane.xlu0 %4956  ;;  %v5006_v56 = vmul.f32 %v6676_v22, %v10147_v16  ;;  %v5005_v11 = vmul.f32 %v6676_v22, %v10145_v29 }
0x150f   : > { %6681 = vrcp.f32 %v4957_v54 }
0x1510   : > { %v5032_v57 = vpack.c.bf16 %v5006_v56, %v5004_v41  ;;  %v5031_v30 = vpack.c.bf16 %v5005_v11, %v5003_v63 }
0x1511   : > { %v6678_v23 = vpop.eup %6677 }
0x1512   : > { %v4960_v44 = vpop.xlane.xlu1 %4959  ;;  %5047 = vmatprep.subr.bf16.mxu1 %v5032_v57  ;;  %v5008_v39 = vmul.f32 %v6678_v23, %v10155_v38  ;;  %v5007_v16 = vmul.f32 %v6678_v23, %v10153_v60 }
0x1513   : > { %6683 = vrcp.f32 %v4960_v44  ;;  %5048 = vmatpush1.bf16.xpose.msra.mxu1 %v5031_v30 }
0x1515   : > { %v6680_v46 = vpop.eup %6679 }
0x1516   : > { %v4963_v13 = vpop.xlane.xlu0 %4962  ;;  %v5010_v61 = vmul.f32 %v6680_v46, %v10163_v24  ;;  %v5009_v18 = vmul.f32 %v6680_v46, %v10161_v14 }
0x1517   : > { %6685 = vrcp.f32 %v4963_v13 }
0x1518   : > { %v5034_v20 = vpack.c.bf16 %v5010_v61, %v5008_v39  ;;  %v5033_v29 = vpack.c.bf16 %v5009_v18, %v5007_v16  ;;  %v5915_v18 = vld [vmem:[#allocation8 + $0x48] sm:$0xff]  }
0x1519   : > { %v6682_v35 = vpop.eup %6681 }
0x151a   : > { %v4966_v3 = vpop.xlane.xlu1 %4965  ;;  %5049 = vmatprep.subr.bf16.mxu1 %v5034_v20  ;;  %v5012_v27 = vmul.f32 %v6682_v35, %v10171_v21  ;;  %v5011_v24 = vmul.f32 %v6682_v35, %v10169_v32  ;;  %v10762_v20 = vld [vmem:[#allocation55_spill] sm:$0xff]  ;;  %v10768_v35 = vld [vmem:[#allocation89_spill] sm:$0xff] }
0x151b   : > { %6687 = vrcp.f32 %v4966_v3  ;;  %5050 = vmatpush1.bf16.xpose.msra.mxu1 %v5033_v29 }
0x151d   : > { %v6684_v7 = vpop.eup %6683 }
0x151e   : > { %v4969_v19 = vpop.xlane.xlu0 %4968  ;;  %v5014_v38 = vmul.f32 %v6684_v7, %v10181_v4  ;;  %v5013_v60 = vmul.f32 %v6684_v7, %v10177_v2  ;;  %v10769_v7 = vld [vmem:[#allocation88_spill] sm:$0xff] }
0x151f   : > { %6689 = vrcp.f32 %v4969_v19  ;;  %v10770_v19 = vpack.c.bf16 %v10768_v35, %v10769_v7 }
0x1520   : > { %v4972_v14 = vpop.xlane.xlu1 %4971  ;;  %v5036_v51 = vpack.c.bf16 %v5014_v38, %v5012_v27  ;;  %v5035_v59 = vpack.c.bf16 %v5013_v60, %v5011_v24  ;;  %v10772_v27 = vld [vmem:[#allocation91_spill] sm:$0xff]  ;;  %v10773_v38 = vld [vmem:[#allocation90_spill] sm:$0xff]  ;;  %v10775_v60 = vpack.c.bf16 %v9680_v36, %v9678_v53 }
0x1521   : > { %6691 = vrcp.f32 %v4972_v14  ;;  %v6686_v1 = vpop.eup %6685  ;;  %v10774_v24 = vpack.c.bf16 %v10772_v27, %v10773_v38  ;;  %v5919_v14 = vld [vmem:[#allocation8 + $0x58] sm:$0xff]   ;;  %v5922_v53 = vld [vmem:[#allocation8 + $0x20] sm:$0xff]  }
0x1522   : > { %5051 = vmatprep.subr.bf16.mxu1 %v5036_v51  ;;  %v5016_v41 = vmul.f32 %v6686_v1, %v10187_v31  ;;  %v5015_v4 = vmul.f32 %v6686_v1, %v10185_v9  ;;  %v5920_v51 = vld [vmem:[#allocation8 + $0x18] sm:$0xff]   ;;  %v10777_v1 = vld [vmem:[#allocation54_spill] sm:$0xff] }
0x1523   : > { %5052 = vmatpush1.bf16.xpose.msra.mxu1 %v5035_v59  ;;  %v10776_v59 = vld [vmem:[#allocation92_spill] sm:$0xff]  ;;  %v10783_v36 = vld [vmem:[#allocation42_spill] sm:$0xff] }
0x1525   : > { %v6688_v22 = vpop.eup %6687 }
0x1526   : > { %v4975_v54 = vpop.xlane.xlu0 %4974  ;;  %v5018_v21 = vmul.f32 %v6688_v22, %v10195_v52  ;;  %v5017_v32 = vmul.f32 %v6688_v22, %v10193_v26  ;;  %v10778_v22 = vpack.c.bf16 %v10776_v59, %v10777_v1 }
0x1527   : > { %6693 = vrcp.f32 %v4975_v54  ;;  %v10781_v54 = vpack.c.bf16 %v10779_v40, %v10780_v15 }
0x1528   : > { %v5038_v56 = vpack.c.bf16 %v5018_v21, %v5016_v41  ;;  %v5037_v2 = vpack.c.bf16 %v5017_v32, %v5015_v4  ;;  %v10782_v41 = vpack.c.bf16 %v9686_v33, %v9684_v43  ;;  %v5921_v21 = vld [vmem:[#allocation8 + $0x60] sm:$0xff]   ;;  %v10790_v33 = vpack.c.bf16 %v9997_v58, %v9995_v45 }
0x1529   : > { %v6690_v63 = vpop.eup %6689  ;;  %v10784_v4 = vld [vmem:[#allocation41_spill] sm:$0xff] }
0x152a   : > { %v4978_v11 = vpop.xlane.xlu1 %4977  ;;  %5053 = vmatprep.subr.bf16.mxu1 %v5038_v56  ;;  %v5020_v30 = vmul.f32 %v6690_v63, %v10203_v48  ;;  %v5019_v9 = vmul.f32 %v6690_v63, %v10201_v62  ;;  %v5913_v62 = vld [vmem:[#allocation8 + $0x40] sm:$0xff]   ;;  %v10785_v32 = vpack.c.bf16 %v10783_v36, %v10784_v4  ;;  %v10786_v56 = vpack.c.bf16 %v9991_v12, %v9989_v25  ;;  %v5924_v63 = vld [vmem:[#allocation8 + $0x28] sm:$0xff]   ;;  %v5927_v12 = vld [vmem:[#allocation8 + $0x78] sm:$0xff]  }
0x152b   : > { %v6692_v57 = vpop.eup %6691  ;;  %6695 = vrcp.f32 %v4978_v11  ;;  %5054 = vmatpush1.bf16.xpose.msra.mxu1 %v5037_v2  ;;  %5244 = vxpose.xlu0.c.b16.start [1/8] (narrow) %v5913_v62, 16  ;;  %v5923_v2 = vld [vmem:[#allocation8 + $0x68] sm:$0xff]  }
0x152c   : > { %v5022_v44 = vmul.f32 %v6692_v57, %v10209_v50  ;;  %v5021_v31 = vmul.f32 %v6692_v57, %v10205_v47  ;;  %v5914_v47 = vld [vmem:[#allocation8] sm:$0xff]   ;;  %v10787_v11 = vld [vmem:[#allocation95_spill] sm:$0xff] }
0x152d   : > { %5228 = vxpose.xlu1.c.b16.start [1/8] (narrow) %v5914_v47, 16  ;;  %v10788_v57 = vld [vmem:[#allocation94_spill] sm:$0xff]  ;;  %v10796_v47 = vpack.c.bf16 %v9058_v6, %v9056_v17 }
0x152e   : > { %v5040_v52 = vpack.c.bf16 %v5022_v44, %v5020_v30  ;;  %v5039_v26 = vpack.c.bf16 %v5021_v31, %v5019_v9  ;;  %v10789_v43 = vpack.c.bf16 %v10787_v11, %v10788_v57  ;;  %v5925_v30 = vld [vmem:[#allocation8 + $0x70] sm:$0xff]   ;;  %v10791_v31 = vld [vmem:[#allocation97_spill] sm:$0xff] }
0x152f   : > { %5245 = vxpose.xlu0.c.b16.cont [2/8] (narrow) %v5915_v18, 16  ;;  %v5926_v44 = vld [vmem:[#allocation8 + $0x30] sm:$0xff]   ;;  %v5928_v9 = vld [vmem:[#allocation8 + $0x38] sm:$0xff]  }
0x1530   : > { %5055 = vmatprep.subr.bf16.mxu1 %v5040_v52  ;;  %v10792_v52 = vld [vmem:[#allocation96_spill] sm:$0xff] }
0x1531   : > { %v6694_v23 = vpop.eup %6693  ;;  %v10793_v25 = vpack.c.bf16 %v10791_v31, %v10792_v52 }
0x1532   : > { %v5024_v13 = vmul.f32 %v6694_v23, %v10215_v37  ;;  %v5023_v61 = vmul.f32 %v6694_v23, %v10213_v5  ;;  %v5916_v37 = vld [vmem:[#allocation8 + $0x8] sm:$0xff]   ;;  %v10765_v5 = vld [vmem:[#allocation93_spill] sm:$0xff] }
0x1533   : > { %5056 = vmatpush1.bf16.xpose.msra.mxu1 %v5039_v26  ;;  %5229 = vxpose.xlu1.c.b16.cont [2/8] (narrow) %v5916_v37, 16  ;;  %v5126_v23 = vld [vmem:[#allocation10] sm:$0xf] }
0x1534   : > { %5246 = vxpose.xlu0.c.b16.cont [3/8] (narrow) %v5917_v34, 16 }
0x1535   : > { %v6696_v46 = vpop.eup %6695 }
0x1536   : > { %v5026_v39 = vmul.f32 %v6696_v46, %v10221_v8  ;;  %v5025_v48 = vmul.f32 %v6696_v46, %v10219_v28  ;;  %v10763_v8 = vld [vmem:[#allocation50_spill] sm:$0xff]  ;;  %v10766_v28 = vld [vmem:[#allocation52_spill] sm:$0xff] }
0x1537   : > { %v10764_v29 = vpack.c.bf16 %v10762_v20, %v10763_v8  ;;  %v10767_v3 = vpack.c.bf16 %v10765_v5, %v10766_v28 }
0x1538   : > { %v5042_v16 = vpack.c.bf16 %v5026_v39, %v5024_v13  ;;  %v5041_v50 = vpack.c.bf16 %v5025_v48, %v5023_v61  ;;  %5247 = vxpose.xlu0.c.b16.cont [4/8] (narrow) %v5919_v14, 16  ;;  %v10795_v61 = vpack.c.bf16 %v9052_v10, %v9050_v49 }
0x153a   : > { %5057 = vmatprep.subr.bf16.mxu1 %v5042_v16 }
0x153b   : > { %5058 = vmatpush1.bf16.xpose.msra.mxu1 %v5041_v50 }
0x153c   : > { %5661 = vmatprep.subr.bf16.mxu1 %v3712_v42  ;;  %v5918_v42 = vld [vmem:[#allocation8 + $0x10] sm:$0xff]   ;;  %5248 = vxpose.xlu0.c.b16.cont [5/8] (narrow) %v5921_v21, 16 }
0x153d   : > { %5230 = vxpose.xlu1.c.b16.cont [3/8] (narrow) %v5918_v42, 16 }
0x1540   : > { %5249 = vxpose.xlu0.c.b16.cont [6/8] (narrow) %v5923_v2, 16 }
0x1541   : > { %5231 = vxpose.xlu1.c.b16.cont [4/8] (narrow) %v5920_v51, 16 }
0x1542   : > { %5076 = vmatmul.mubr.bf16.vlgmr.msra.gmra.mrb[224].mxu1 %v10764_v29 }
0x1543   : > { %5083 = vmatprep.mubr.bf16.mxu1 %v10767_v3  ;;  %5662 = vmatpush3.bf16.msra.mxu1 %v10770_v19 }
0x1544   : > { %5663 = vmatprep.subr.bf16.mxu1 %v10771_v55  ;;  %5250 = vxpose.xlu0.c.b16.cont [7/8] (narrow) %v5925_v30, 16 }
0x1545   : > { %5232 = vxpose.xlu1.c.b16.cont [5/8] (narrow) %v5922_v53, 16 }
0x1547   : > { %5664 = vmatpush3.bf16.msra.mxu1 %v10774_v24 }
0x1548   : > { %5665 = vmatprep.subr.bf16.mxu1 %v10775_v60  ;;  %5251 = vxpose.xlu0.c.b16.end [8/8] (narrow) %v5927_v12, 16 }
0x1549   : > { %5233 = vxpose.xlu1.c.b16.cont [6/8] (narrow) %v5924_v63, 16 }
0x154a   : > { %5084 = vmatmul.mubr.bf16.gmra.mrb[228].mxu1 %v10778_v22 }
0x154b   : > { %5666 = vmatpush3.bf16.msra.mxu1 %v10781_v54 }
0x154c   : > { %5667 = vmatprep.subr.bf16.mxu1 %v10782_v41 }
0x154d   : > { %5234 = vxpose.xlu1.c.b16.cont [7/8] (narrow) %v5926_v44, 16 }
0x154f   : > { %5668 = vmatpush3.bf16.msra.mxu1 %v10785_v32 }
0x1550   : > { %5669 = vmatprep.subr.bf16.mxu1 %v10786_v56 }
0x1551   : > { %5235 = vxpose.xlu1.c.b16.end [8/8] (narrow) %v5928_v9, 16  ;;  %5864 = vset.pattern.permute.xlu0 %v10597_v0 }
0x1552   : > { %5129 = vperm.xlu0 %5864, %v5126_v23  }
0x1553   : > { %5670 = vmatpush3.bf16.msra.mxu1 %v10789_v43 }
0x1554   : > { %5671 = vmatprep.subr.bf16.mxu1 %v10790_v33 }
0x1557   : > { %5672 = vmatpush3.bf16.msra.mxu1 %v10793_v25 }
0x1592   : > { %v5252_v26 = vpop.trf.xlu0 }
0x1593   : > { %5292 = vmatprep.mubr.bf16.mxu1 %v5252_v26 }
0x159b   : > { %v5236_v18 = vpop.trf.xlu1 }
0x15d1   : > { %v5130_v10 = vpop.permute.xlu0 %5129 }
0x1615   : > { %v5077_v45 = vpop.f32.mrb[224].mxu1 }
0x1616   : > { %v5079_v58 = vpop.f32.mrb[225].mxu1 }
0x1617   : > { %v5080_v46 = vpop.f32.mrb[226].mxu1 }
0x1618   : > { %v5092_v13 = vpack.c.bf16 %v5080_v46, %v5077_v45  ;;  %v5082_v39 = vpop.f32.mrb[227].mxu1 }
0x161a   : > { %5673 = vmatprep.subr.bf16.mxu1 %v5092_v13 }
0x161b   : > { %5674 = vmatpush3.bf16.msra.mxu1 %v10795_v61 }
0x161d   : > { %v5085_v48 = vpop.f32.mrb[228].mxu1 }
0x161e   : > { %v5087_v16 = vpop.f32.mrb[229].mxu1 }
0x161f   : > { %v5088_v0 = vpop.f32.mrb[230].mxu1 }
0x1620   : > { %v5093_v50 = vpack.c.bf16 %v5088_v0, %v5085_v48  ;;  %v5090_v62 = vpop.f32.mrb[231].mxu1 }
0x1622   : > { %5675 = vmatprep.subr.bf16.mxu1 %v5093_v50 }
0x1623   : > { %5676 = vmatpush3.bf16.msra.mxu1 %v10796_v47 }
0x1626   : > { %5293 = vmatmul.mubr.bf16.vlgmr.msra.gmra.mrb[232].mxu1 %v5236_v18 }
0x16f9   : > { %v5677_v37 = vpop.f32.mrb[232].mxu1 }
0x16fa   : > { %v5678_v49 = vpop.f32.mrb[233].mxu1 }
0x16fb   : > { %v5679_v20 = vadd.f32 %v5678_v49, %v5677_v37  ;;  %v5680_v8 = vpop.f32.mrb[234].mxu1 }
0x16fc   : > { %v5681_v29 = vpop.f32.mrb[235].mxu1 }
0x16fd   : > { %v5295_v5 = vadd.f32 %v5679_v20, %v5130_v10 }
0x16ff   : > { %5300 = vst [vmem:[%s310_s5] sm:$0xf] %v5295_v5 }
0x1700   : > { %6852 = shalt.err (!%p6849_p0)
}
0x1701   : > { %s6853_s14 = scalar_lea.hbm %s10315_s7, 64  ;;  %s6857_s5 = scalar_lea.hbm %s10797_s29, 256 }
0x1702   : > { %p6854_p7 = scmp.ne.s32.totalorder %s10315_s7, %s6853_s14  ;;  %p6858_p10 = scmp.lt.u32.totalorder %s10315_s7, %s10797_s29 }
0x1703   : > { %p6859_p9 = scmp.lt.u32.totalorder %s6857_s5, %s6853_s14  ;;  %p6861_p5 = scmp.lt.u32.totalorder %s6853_s14, %s10315_s7 }
0x1704   : > { %p6855_p13 = pnand %p6854_p7, %p10798_p2 }
0x1705   : > { %p6860_p1 = por %p6859_p9, %p6858_p10 }
0x1706   : > { %p6856_p4 = pneg %p6855_p13 }
0x1707   : > { %p6862_p6 = por %p6861_p5, %p6860_p1 }
0x1709   : > { %p6863_p3 = pnand %p6862_p6, %p6856_p4 }
0x170b   : > { %6866 = shalt.err (!%p6863_p3)
}
0x170c   : > { %5736 = dma.vmem_to_hbm [thread:$0]  (%p10798_p2), %s10317_s25, 64, %s10315_s7, %s5302_s1  }
0x170d PF: > { %p5768_p11 = scmp.ge.s32.totalorder %s6969_s28, 2  ;;  %s5329_s21 = sand.u32 1, %s6929_s18  }
0x170e   : > { %p10799_p12 = scmp.ne.s32.totalorder %s10512_s12, 0  ;;  %s5330_s30 = scalar_lea.sflag [#allocation4], %s5329_s21 }
0x1710   : > { %p5756_p8 = pnand %p5768_p11, %p10799_p12 }
0x1712   : > { %6924 = dma.done.wait (!%p5756_p8), %s5330_s30, 64  }
0x1713   : > { %6926 = vsyncadd (!%p5756_p8), %s5330_s30, 4294967232  ;;  %s23_s28 = sadd.s32 1, %s6969_s28   ;;  %s10800_s18 = smov %s6933_s19 }
0x1714   : > { %p20_p0 = scmp.ge.s32.totalorder %s23_s28, 6   ;;  %s10801_s19 = smov %s6937_s20 }
0x1715   : > { %s10802_s20 = smov %s7239_s15  ;;  %s10803_s21 = smov %s6945_s22 }
0x1716   : > { %s10804_s22 = smov %s6949_s23  ;;  %s10805_s23 = smov %s7236_s13 }
0x1717   : > { %s10806_s24 = smov %s6961_s26  ;;  %s10807_s25 = smov %s6965_s27 }
0x1718   : > { %s10808_s26 = smov %s10811_s10  ;;  %s10809_s27 = smov %s10815_s9 }
0x1719   :  { %22 = sbr.rel (!%p20_p0) target bundleno = 16 (0x10), region = 102 }
0x1720   :  { %5335 = vsyncpa [#allocation3], 1 }
0x1721   :  { %5337 = vsyncpa [#allocation3 + $0x1], 1 }
0x1722   :  { %5338 = vsyncpa [#allocation6], 1 }
0x1723   :  { %5339 = vsyncpa [#allocation9], 1 }
0x1724   :  { %5340 = vsyncpa [#allocation4], 1 }
0x1725   :  { %5342 = vsyncpa [#allocation4 + $0x1], 1 }

</bundles_post_ra>
